<compile_context>
chip_gen: v6e
topology: v6e:2x2x1
jax: 0.10.0
libtpu: 0.0.40
codegen_flags: <defaults>
</compile_context>

<pallas_src>
import jax
import jax.numpy as jnp
from jax.experimental import pallas as pl
from jax.experimental.pallas import tpu as pltpu

# padded / fixed sizes (MNIST-shaped net: 28x28 -> 12x12 -> 4x4 -> 320 -> 50 -> 10)
C1P = 128        # conv1 out channels (10) padded to lane width
C2P = 128        # conv2 out channels (20) padded
F1P = 128        # fc1 width (50) padded
F2P = 128        # logits width (10) padded
K1P = 32         # conv1 im2col feature count (1*5*5 = 25) padded
H1, W1 = 12, 12  # conv1 output after 2x2 max-pool
W1PAD = 16       # W1 padded so in-kernel reshapes keep sublane-tile alignment
H2, W2 = 8, 8    # conv2 output spatial (before pool)
KSZ = 5


def fused_net_kernel(p1_ref, w1c_ref, b1c_ref, w2c_ref, b2c_ref,
                     w1f_ref, b1f_ref, w2f_ref, b2f_ref,
                     o_ref, y1_ref, c2_ref):
    b = y1_ref.shape[0]
    n1 = b * H1 * W1PAD

    # ---- conv1: single im2col matmul covering all 4 pool offsets ------------
    a = jnp.dot(p1_ref[...], w1c_ref[...], preferred_element_type=jnp.float32)
    pooled1 = jnp.maximum(jnp.maximum(a[0:n1], a[n1:2 * n1]),
                          jnp.maximum(a[2 * n1:3 * n1], a[3 * n1:4 * n1]))
    y1 = jnp.maximum(pooled1 + b1c_ref[...], 0.0)            # (n1, 128)
    y1_ref[...] = y1.reshape(b, H1, W1PAD, C1P)              # NHWC in VMEM

    # ---- conv2: build im2col in VMEM, one matmul with K = 25*128 ------------
    pieces = []
    for kh in range(KSZ):
        for kw in range(KSZ):
            win = y1_ref[:, kh:kh + H2, kw:kw + W2, :]        # (b, 8, 8, 128)
            pieces.append(win.reshape(b * H2 * W2, C1P).astype(jnp.bfloat16))
    patches2 = jnp.concatenate(pieces, axis=-1)               # (b*64, 3200) bf16
    c2 = jnp.dot(patches2, w2c_ref[...], preferred_element_type=jnp.float32)
    c2_ref[...] = c2 + b2c_ref[...]                           # rows = (b, oh, ow)
    # TODO(synk): nn.Dropout2d / F.dropout are identity here (inference mode).

    # ---- 2x2 max-pool + relu + flatten ((ph, pw, c) order baked into w1f) ---
    row_stride = H2 * W2
    cols = []
    for ph in range(4):
        for pw in range(4):
            base = (2 * ph) * W2 + 2 * pw
            v00 = c2_ref[pl.ds(base, b, stride=row_stride), :]
            v01 = c2_ref[pl.ds(base + 1, b, stride=row_stride), :]
            v10 = c2_ref[pl.ds(base + W2, b, stride=row_stride), :]
            v11 = c2_ref[pl.ds(base + W2 + 1, b, stride=row_stride), :]
            cols.append(jnp.maximum(jnp.maximum(v00, v01),
                                    jnp.maximum(v10, v11)))   # (b, 128)
    flat = jnp.maximum(jnp.concatenate(cols, axis=-1), 0.0)   # (b, 2048)

    # ---- fc1 + relu, fc2, masked log_softmax --------------------------------
    h = jnp.dot(flat.astype(jnp.bfloat16), w1f_ref[...],
                preferred_element_type=jnp.float32) + b1f_ref[...]
    h = jnp.maximum(h, 0.0)
    logits = jnp.dot(h.astype(jnp.bfloat16), w2f_ref[...],
                     preferred_element_type=jnp.float32) + b2f_ref[...]
    lane = jax.lax.broadcasted_iota(jnp.int32, logits.shape, 1)
    masked = jnp.where(lane < 10, logits, -1e30)              # exclude pad lanes
    m = jnp.max(masked, axis=-1, keepdims=True)
    z = masked - m
    o_ref[...] = z - jnp.log(jnp.sum(jnp.exp(z), axis=-1, keepdims=True))


# ---------------------------------------------------------------------------
# Input-side im2col for conv1 (one-time prep on the raw image, plain JAX).
# Row order: (pool_offset(dy,dx), b, h1, w1pad); features (kh, kw) padded 25->32.
# Rows with w1pad >= 12 are zero padding (never read downstream: the conv2
# window extraction only touches columns 0..11 of y1_ref).
# ---------------------------------------------------------------------------
def build_conv1_patches(x):
    b = x.shape[0]
    img = x[:, 0]                                             # (B, 28, 28)
    offs = []
    for dy in range(2):
        for dx in range(2):
            feats = []
            for kh in range(KSZ):
                for kw in range(KSZ):
                    feats.append(img[:, dy + kh:dy + kh + 24:2,
                                        dx + kw:dx + kw + 24:2])  # (B, 12, 12)
            offs.append(jnp.stack(feats, axis=-1))            # (B, 12, 12, 25)
    p = jnp.stack(offs, axis=0)                               # (4, B, 12, 12, 25)
    p = jnp.pad(p, ((0, 0), (0, 0), (0, 0), (0, W1PAD - W1), (0, K1P - 25)))
    return p.reshape(4 * b * H1 * W1PAD, K1P).astype(jnp.bfloat16)


def net_forward(x, kparams):
    b = x.shape[0]
    patches1 = build_conv1_patches(x)
    out_pad = pl.pallas_call(
        fused_net_kernel,
        out_shape=jax.ShapeDtypeStruct((b, F2P), jnp.float32),
        in_specs=[pl.BlockSpec(memory_space=pltpu.MemorySpace.VMEM)] * 9,
        out_specs=pl.BlockSpec(memory_space=pltpu.MemorySpace.VMEM),
        scratch_shapes=[
            pltpu.VMEM((b, H1, W1PAD, C1P), jnp.float32),     # conv1 activations
            pltpu.VMEM((b * H2 * W2, C2P), jnp.float32),      # conv2 activations
        ],
    )(patches1, *kparams)
    return out_pad[:, :10]


# ---------------------------------------------------------------------------
# Parameters: torch layouts + one-time re-pack into kernel (lane-dense) layouts
# ---------------------------------------------------------------------------
def init_torch_params(key):
    ks = jax.random.split(key, 8)
    s = 0.1
    return (
        jax.random.normal(ks[0], (10, 1, 5, 5), jnp.float32) * s,   # conv1.weight
        jax.random.normal(ks[1], (10,), jnp.float32) * s,           # conv1.bias
        jax.random.normal(ks[2], (20, 10, 5, 5), jnp.float32) * s,  # conv2.weight
        jax.random.normal(ks[3], (20,), jnp.float32) * s,           # conv2.bias
        jax.random.normal(ks[4], (50, 320), jnp.float32) * s,       # fc1.weight
        jax.random.normal(ks[5], (50,), jnp.float32) * s,           # fc1.bias
        jax.random.normal(ks[6], (10, 50), jnp.float32) * s,        # fc2.weight
        jax.random.normal(ks[7], (10,), jnp.float32) * s,           # fc2.bias
    )


def prepare_kernel_params(tp):
    (c1w, c1b, c2w, c2b, f1w, f1b, f2w, f2b) = tp
    # conv1: (10,1,5,5) -> rows (kh,kw), cols cout, padded (32, 128)
    w1c = jnp.pad(c1w.reshape(10, 25).T,
                  ((0, K1P - 25), (0, C1P - 10))).astype(jnp.bfloat16)
    b1c = jnp.pad(c1b, (0, C1P - 10)).reshape(1, C1P)
    # conv2: (20,10,5,5) -> (kh,kw,cin,cout) padded -> (25*128, 128)
    w2r = jnp.transpose(c2w, (2, 3, 1, 0))
    w2r = jnp.pad(w2r, ((0, 0), (0, 0), (0, C1P - 10), (0, C2P - 20)))
    w2c = w2r.reshape(25 * C1P, C2P).astype(jnp.bfloat16)
    b2c = jnp.pad(c2b, (0, C2P - 20)).reshape(1, C2P)
    # fc1: torch input order (c, h, w) -> kernel order (h, w, c_pad128)
    w1r = jnp.transpose(f1w.reshape(50, 20, 4, 4), (2, 3, 1, 0))    # (h, w, c, out)
    w1r = jnp.pad(w1r, ((0, 0), (0, 0), (0, C2P - 20), (0, F1P - 50)))
    w1f = w1r.reshape(16 * C2P, F1P).astype(jnp.bfloat16)
    b1f = jnp.pad(f1b, (0, F1P - 50)).reshape(1, F1P)
    # fc2
    w2f = jnp.pad(f2w.T, ((0, F1P - 50), (0, F2P - 10))).astype(jnp.bfloat16)
    b2f = jnp.pad(f2b, (0, F2P - 10)).reshape(1, F2P)
    return (w1c, b1c, w2c, b2c, w1f, b1f, w2f, b2f)


if __name__ == "__main__":
    key = jax.random.PRNGKey(0)
    k_x, k_p = jax.random.split(key)
    # input shape forced by the .view(-1, 320): (B, 1, 28, 28), batch=2
    x = jax.random.normal(k_x, (2, 1, 28, 28), jnp.float32)
    torch_params = init_torch_params(k_p)
    kparams = prepare_kernel_params(torch_params)   # one-time layout/pad re-pack

    out = jax.jit(net_forward)(x, kparams)
    out = jax.block_until_ready(out)

    assert out.shape == (2, 10)
    # log_softmax rows should sum to ~1 after exp
    assert jnp.allclose(jnp.exp(out).sum(axis=-1), 1.0, atol=1e-3)
    print("KERNEL_OK")
</pallas_src>

<mosaic_0001>
module attributes {stable_mosaic.version = 11 : i64} {
  func.func @fused_net_kernel(%arg0: memref<1536x32xbf16, #tpu.memory_space<vmem>>, %arg1: memref<32x128xbf16, #tpu.memory_space<vmem>>, %arg2: memref<1x128xf32, #tpu.memory_space<vmem>>, %arg3: memref<3200x128xbf16, #tpu.memory_space<vmem>>, %arg4: memref<1x128xf32, #tpu.memory_space<vmem>>, %arg5: memref<2048x128xbf16, #tpu.memory_space<vmem>>, %arg6: memref<1x128xf32, #tpu.memory_space<vmem>>, %arg7: memref<128x128xbf16, #tpu.memory_space<vmem>>, %arg8: memref<1x128xf32, #tpu.memory_space<vmem>>, %arg9: memref<2x128xf32, #tpu.memory_space<vmem>>, %arg10: memref<2x12x16x128xf32, #tpu.memory_space<vmem>>, %arg11: memref<128x128xf32, #tpu.memory_space<vmem>>) attributes {dimension_semantics = [], scalar_prefetch = 0 : i64, scratch_operands = 2 : i64, tpu.core_type = #tpu.core_type<tc>} {
    %c0 = arith.constant 0 : index
    %c0_0 = arith.constant 0 : index
    %0 = vector.load %arg0[%c0, %c0_0] : memref<1536x32xbf16, #tpu.memory_space<vmem>>, vector<1536x32xbf16>
    %c0_1 = arith.constant 0 : index
    %c0_2 = arith.constant 0 : index
    %1 = vector.load %arg1[%c0_1, %c0_2] : memref<32x128xbf16, #tpu.memory_space<vmem>>, vector<32x128xbf16>
    %cst = arith.constant dense<0.000000e+00> : vector<1536x128xf32>
    %2 = tpu.matmul %0, %1, %cst {dimension_numbers = #tpu.dot_dimension_numbers<[1], [0], [0], [1], [0, 0, 1, 1], [], []>} : vector<1536x32xbf16>, vector<32x128xbf16>, vector<1536x128xf32> -> vector<1536x128xf32>
    %3 = vector.extract_strided_slice %2 {offsets = [0, 0], sizes = [384, 128], strides = [1, 1]} : vector<1536x128xf32> to vector<384x128xf32>
    %4 = vector.extract_strided_slice %2 {offsets = [384, 0], sizes = [384, 128], strides = [1, 1]} : vector<1536x128xf32> to vector<384x128xf32>
    %5 = arith.maximumf %3, %4 : vector<384x128xf32>
    %6 = vector.extract_strided_slice %2 {offsets = [768, 0], sizes = [384, 128], strides = [1, 1]} : vector<1536x128xf32> to vector<384x128xf32>
    %7 = vector.extract_strided_slice %2 {offsets = [1152, 0], sizes = [384, 128], strides = [1, 1]} : vector<1536x128xf32> to vector<384x128xf32>
    %8 = arith.maximumf %6, %7 : vector<384x128xf32>
    %9 = arith.maximumf %5, %8 : vector<384x128xf32>
    %c0_3 = arith.constant 0 : index
    %c0_4 = arith.constant 0 : index
    %10 = vector.load %arg2[%c0_3, %c0_4] : memref<1x128xf32, #tpu.memory_space<vmem>>, vector<1x128xf32>
    %11 = vector.broadcast %10 : vector<1x128xf32> to vector<384x128xf32>
    %12 = arith.addf %9, %11 : vector<384x128xf32>
    %cst_5 = arith.constant 0.000000e+00 : f32
    %13 = vector.broadcast %cst_5 : f32 to vector<384x128xf32>
    %14 = arith.maximumf %12, %13 : vector<384x128xf32>
    %15 = vector.shape_cast %14 : vector<384x128xf32> to vector<2x12x16x128xf32>
    %c0_6 = arith.constant 0 : index
    %c0_7 = arith.constant 0 : index
    %c0_8 = arith.constant 0 : index
    %c0_9 = arith.constant 0 : index
    %16 = vector.load %arg10[%c0_6, %c0_7, %c0_8, %c0_9] : memref<2x12x16x128xf32, #tpu.memory_space<vmem>>, vector<2x12x16x128xf32>
    tpu.vector_store %arg10[%c0_6, %c0_7, %c0_8, %c0_9], %15 {strides = array<i32>} : memref<2x12x16x128xf32, #tpu.memory_space<vmem>>, vector<2x12x16x128xf32>,
    %c0_10 = arith.constant 0 : index
    %c0_11 = arith.constant 0 : index
    %c0_12 = arith.constant 0 : index
    %c0_13 = arith.constant 0 : index
    %17 = vector.load %arg10[%c0_10, %c0_11, %c0_12, %c0_13] : memref<2x12x16x128xf32, #tpu.memory_space<vmem>>, vector<2x8x8x128xf32>
    %18 = vector.shape_cast %17 : vector<2x8x8x128xf32> to vector<128x128xf32>
    %19 = arith.truncf %18 : vector<128x128xf32> to vector<128x128xbf16>
    %c0_14 = arith.constant 0 : index
    %c0_15 = arith.constant 0 : index
    %c1 = arith.constant 1 : index
    %c0_16 = arith.constant 0 : index
    %20 = vector.load %arg10[%c0_14, %c0_15, %c1, %c0_16] : memref<2x12x16x128xf32, #tpu.memory_space<vmem>>, vector<2x8x8x128xf32>
    %21 = vector.shape_cast %20 : vector<2x8x8x128xf32> to vector<128x128xf32>
    %22 = arith.truncf %21 : vector<128x128xf32> to vector<128x128xbf16>
    %c0_17 = arith.constant 0 : index
    %c0_18 = arith.constant 0 : index
    %c2 = arith.constant 2 : index
    %c0_19 = arith.constant 0 : index
    %23 = vector.load %arg10[%c0_17, %c0_18, %c2, %c0_19] : memref<2x12x16x128xf32, #tpu.memory_space<vmem>>, vector<2x8x8x128xf32>
    %24 = vector.shape_cast %23 : vector<2x8x8x128xf32> to vector<128x128xf32>
    %25 = arith.truncf %24 : vector<128x128xf32> to vector<128x128xbf16>
    %c0_20 = arith.constant 0 : index
    %c0_21 = arith.constant 0 : index
    %c3 = arith.constant 3 : index
    %c0_22 = arith.constant 0 : index
    %26 = vector.load %arg10[%c0_20, %c0_21, %c3, %c0_22] : memref<2x12x16x128xf32, #tpu.memory_space<vmem>>, vector<2x8x8x128xf32>
    %27 = vector.shape_cast %26 : vector<2x8x8x128xf32> to vector<128x128xf32>
    %28 = arith.truncf %27 : vector<128x128xf32> to vector<128x128xbf16>
    %c0_23 = arith.constant 0 : index
    %c0_24 = arith.constant 0 : index
    %c4 = arith.constant 4 : index
    %c0_25 = arith.constant 0 : index
    %29 = vector.load %arg10[%c0_23, %c0_24, %c4, %c0_25] : memref<2x12x16x128xf32, #tpu.memory_space<vmem>>, vector<2x8x8x128xf32>
    %30 = vector.shape_cast %29 : vector<2x8x8x128xf32> to vector<128x128xf32>
    %31 = arith.truncf %30 : vector<128x128xf32> to vector<128x128xbf16>
    %c0_26 = arith.constant 0 : index
    %c1_27 = arith.constant 1 : index
    %c0_28 = arith.constant 0 : index
    %c0_29 = arith.constant 0 : index
    %32 = vector.load %arg10[%c0_26, %c1_27, %c0_28, %c0_29] : memref<2x12x16x128xf32, #tpu.memory_space<vmem>>, vector<2x8x8x128xf32>
    %33 = vector.shape_cast %32 : vector<2x8x8x128xf32> to vector<128x128xf32>
    %34 = arith.truncf %33 : vector<128x128xf32> to vector<128x128xbf16>
    %c0_30 = arith.constant 0 : index
    %c1_31 = arith.constant 1 : index
    %c1_32 = arith.constant 1 : index
    %c0_33 = arith.constant 0 : index
    %35 = vector.load %arg10[%c0_30, %c1_31, %c1_32, %c0_33] : memref<2x12x16x128xf32, #tpu.memory_space<vmem>>, vector<2x8x8x128xf32>
    %36 = vector.shape_cast %35 : vector<2x8x8x128xf32> to vector<128x128xf32>
    %37 = arith.truncf %36 : vector<128x128xf32> to vector<128x128xbf16>
    %c0_34 = arith.constant 0 : index
    %c1_35 = arith.constant 1 : index
    %c2_36 = arith.constant 2 : index
    %c0_37 = arith.constant 0 : index
    %38 = vector.load %arg10[%c0_34, %c1_35, %c2_36, %c0_37] : memref<2x12x16x128xf32, #tpu.memory_space<vmem>>, vector<2x8x8x128xf32>
    %39 = vector.shape_cast %38 : vector<2x8x8x128xf32> to vector<128x128xf32>
    %40 = arith.truncf %39 : vector<128x128xf32> to vector<128x128xbf16>
    %c0_38 = arith.constant 0 : index
    %c1_39 = arith.constant 1 : index
    %c3_40 = arith.constant 3 : index
    %c0_41 = arith.constant 0 : index
    %41 = vector.load %arg10[%c0_38, %c1_39, %c3_40, %c0_41] : memref<2x12x16x128xf32, #tpu.memory_space<vmem>>, vector<2x8x8x128xf32>
    %42 = vector.shape_cast %41 : vector<2x8x8x128xf32> to vector<128x128xf32>
    %43 = arith.truncf %42 : vector<128x128xf32> to vector<128x128xbf16>
    %c0_42 = arith.constant 0 : index
    %c1_43 = arith.constant 1 : index
    %c4_44 = arith.constant 4 : index
    %c0_45 = arith.constant 0 : index
    %44 = vector.load %arg10[%c0_42, %c1_43, %c4_44, %c0_45] : memref<2x12x16x128xf32, #tpu.memory_space<vmem>>, vector<2x8x8x128xf32>
    %45 = vector.shape_cast %44 : vector<2x8x8x128xf32> to vector<128x128xf32>
    %46 = arith.truncf %45 : vector<128x128xf32> to vector<128x128xbf16>
    %c0_46 = arith.constant 0 : index
    %c2_47 = arith.constant 2 : index
    %c0_48 = arith.constant 0 : index
    %c0_49 = arith.constant 0 : index
    %47 = vector.load %arg10[%c0_46, %c2_47, %c0_48, %c0_49] : memref<2x12x16x128xf32, #tpu.memory_space<vmem>>, vector<2x8x8x128xf32>
    %48 = vector.shape_cast %47 : vector<2x8x8x128xf32> to vector<128x128xf32>
    %49 = arith.truncf %48 : vector<128x128xf32> to vector<128x128xbf16>
    %c0_50 = arith.constant 0 : index
    %c2_51 = arith.constant 2 : index
    %c1_52 = arith.constant 1 : index
    %c0_53 = arith.constant 0 : index
    %50 = vector.load %arg10[%c0_50, %c2_51, %c1_52, %c0_53] : memref<2x12x16x128xf32, #tpu.memory_space<vmem>>, vector<2x8x8x128xf32>
    %51 = vector.shape_cast %50 : vector<2x8x8x128xf32> to vector<128x128xf32>
    %52 = arith.truncf %51 : vector<128x128xf32> to vector<128x128xbf16>
    %c0_54 = arith.constant 0 : index
    %c2_55 = arith.constant 2 : index
    %c2_56 = arith.constant 2 : index
    %c0_57 = arith.constant 0 : index
    %53 = vector.load %arg10[%c0_54, %c2_55, %c2_56, %c0_57] : memref<2x12x16x128xf32, #tpu.memory_space<vmem>>, vector<2x8x8x128xf32>
    %54 = vector.shape_cast %53 : vector<2x8x8x128xf32> to vector<128x128xf32>
    %55 = arith.truncf %54 : vector<128x128xf32> to vector<128x128xbf16>
    %c0_58 = arith.constant 0 : index
    %c2_59 = arith.constant 2 : index
    %c3_60 = arith.constant 3 : index
    %c0_61 = arith.constant 0 : index
    %56 = vector.load %arg10[%c0_58, %c2_59, %c3_60, %c0_61] : memref<2x12x16x128xf32, #tpu.memory_space<vmem>>, vector<2x8x8x128xf32>
    %57 = vector.shape_cast %56 : vector<2x8x8x128xf32> to vector<128x128xf32>
    %58 = arith.truncf %57 : vector<128x128xf32> to vector<128x128xbf16>
    %c0_62 = arith.constant 0 : index
    %c2_63 = arith.constant 2 : index
    %c4_64 = arith.constant 4 : index
    %c0_65 = arith.constant 0 : index
    %59 = vector.load %arg10[%c0_62, %c2_63, %c4_64, %c0_65] : memref<2x12x16x128xf32, #tpu.memory_space<vmem>>, vector<2x8x8x128xf32>
    %60 = vector.shape_cast %59 : vector<2x8x8x128xf32> to vector<128x128xf32>
    %61 = arith.truncf %60 : vector<128x128xf32> to vector<128x128xbf16>
    %c0_66 = arith.constant 0 : index
    %c3_67 = arith.constant 3 : index
    %c0_68 = arith.constant 0 : index
    %c0_69 = arith.constant 0 : index
    %62 = vector.load %arg10[%c0_66, %c3_67, %c0_68, %c0_69] : memref<2x12x16x128xf32, #tpu.memory_space<vmem>>, vector<2x8x8x128xf32>
    %63 = vector.shape_cast %62 : vector<2x8x8x128xf32> to vector<128x128xf32>
    %64 = arith.truncf %63 : vector<128x128xf32> to vector<128x128xbf16>
    %c0_70 = arith.constant 0 : index
    %c3_71 = arith.constant 3 : index
    %c1_72 = arith.constant 1 : index
    %c0_73 = arith.constant 0 : index
    %65 = vector.load %arg10[%c0_70, %c3_71, %c1_72, %c0_73] : memref<2x12x16x128xf32, #tpu.memory_space<vmem>>, vector<2x8x8x128xf32>
    %66 = vector.shape_cast %65 : vector<2x8x8x128xf32> to vector<128x128xf32>
    %67 = arith.truncf %66 : vector<128x128xf32> to vector<128x128xbf16>
    %c0_74 = arith.constant 0 : index
    %c3_75 = arith.constant 3 : index
    %c2_76 = arith.constant 2 : index
    %c0_77 = arith.constant 0 : index
    %68 = vector.load %arg10[%c0_74, %c3_75, %c2_76, %c0_77] : memref<2x12x16x128xf32, #tpu.memory_space<vmem>>, vector<2x8x8x128xf32>
    %69 = vector.shape_cast %68 : vector<2x8x8x128xf32> to vector<128x128xf32>
    %70 = arith.truncf %69 : vector<128x128xf32> to vector<128x128xbf16>
    %c0_78 = arith.constant 0 : index
    %c3_79 = arith.constant 3 : index
    %c3_80 = arith.constant 3 : index
    %c0_81 = arith.constant 0 : index
    %71 = vector.load %arg10[%c0_78, %c3_79, %c3_80, %c0_81] : memref<2x12x16x128xf32, #tpu.memory_space<vmem>>, vector<2x8x8x128xf32>
    %72 = vector.shape_cast %71 : vector<2x8x8x128xf32> to vector<128x128xf32>
    %73 = arith.truncf %72 : vector<128x128xf32> to vector<128x128xbf16>
    %c0_82 = arith.constant 0 : index
    %c3_83 = arith.constant 3 : index
    %c4_84 = arith.constant 4 : index
    %c0_85 = arith.constant 0 : index
    %74 = vector.load %arg10[%c0_82, %c3_83, %c4_84, %c0_85] : memref<2x12x16x128xf32, #tpu.memory_space<vmem>>, vector<2x8x8x128xf32>
    %75 = vector.shape_cast %74 : vector<2x8x8x128xf32> to vector<128x128xf32>
    %76 = arith.truncf %75 : vector<128x128xf32> to vector<128x128xbf16>
    %c0_86 = arith.constant 0 : index
    %c4_87 = arith.constant 4 : index
    %c0_88 = arith.constant 0 : index
    %c0_89 = arith.constant 0 : index
    %77 = vector.load %arg10[%c0_86, %c4_87, %c0_88, %c0_89] : memref<2x12x16x128xf32, #tpu.memory_space<vmem>>, vector<2x8x8x128xf32>
    %78 = vector.shape_cast %77 : vector<2x8x8x128xf32> to vector<128x128xf32>
    %79 = arith.truncf %78 : vector<128x128xf32> to vector<128x128xbf16>
    %c0_90 = arith.constant 0 : index
    %c4_91 = arith.constant 4 : index
    %c1_92 = arith.constant 1 : index
    %c0_93 = arith.constant 0 : index
    %80 = vector.load %arg10[%c0_90, %c4_91, %c1_92, %c0_93] : memref<2x12x16x128xf32, #tpu.memory_space<vmem>>, vector<2x8x8x128xf32>
    %81 = vector.shape_cast %80 : vector<2x8x8x128xf32> to vector<128x128xf32>
    %82 = arith.truncf %81 : vector<128x128xf32> to vector<128x128xbf16>
    %c0_94 = arith.constant 0 : index
    %c4_95 = arith.constant 4 : index
    %c2_96 = arith.constant 2 : index
    %c0_97 = arith.constant 0 : index
    %83 = vector.load %arg10[%c0_94, %c4_95, %c2_96, %c0_97] : memref<2x12x16x128xf32, #tpu.memory_space<vmem>>, vector<2x8x8x128xf32>
    %84 = vector.shape_cast %83 : vector<2x8x8x128xf32> to vector<128x128xf32>
    %85 = arith.truncf %84 : vector<128x128xf32> to vector<128x128xbf16>
    %c0_98 = arith.constant 0 : index
    %c4_99 = arith.constant 4 : index
    %c3_100 = arith.constant 3 : index
    %c0_101 = arith.constant 0 : index
    %86 = vector.load %arg10[%c0_98, %c4_99, %c3_100, %c0_101] : memref<2x12x16x128xf32, #tpu.memory_space<vmem>>, vector<2x8x8x128xf32>
    %87 = vector.shape_cast %86 : vector<2x8x8x128xf32> to vector<128x128xf32>
    %88 = arith.truncf %87 : vector<128x128xf32> to vector<128x128xbf16>
    %c0_102 = arith.constant 0 : index
    %c4_103 = arith.constant 4 : index
    %c4_104 = arith.constant 4 : index
    %c0_105 = arith.constant 0 : index
    %89 = vector.load %arg10[%c0_102, %c4_103, %c4_104, %c0_105] : memref<2x12x16x128xf32, #tpu.memory_space<vmem>>, vector<2x8x8x128xf32>
    %90 = vector.shape_cast %89 : vector<2x8x8x128xf32> to vector<128x128xf32>
    %91 = arith.truncf %90 : vector<128x128xf32> to vector<128x128xbf16>
    %92 = tpu.concatenate %19, %22, %25, %28, %31, %34, %37, %40, %43, %46, %49, %52, %55, %58, %61, %64 in 1 : vector<128x128xbf16>, vector<128x128xbf16>, vector<128x128xbf16>, vector<128x128xbf16>, vector<128x128xbf16>, vector<128x128xbf16>, vector<128x128xbf16>, vector<128x128xbf16>, vector<128x128xbf16>, vector<128x128xbf16>, vector<128x128xbf16>, vector<128x128xbf16>, vector<128x128xbf16>, vector<128x128xbf16>, vector<128x128xbf16>, vector<128x128xbf16> -> vector<128x2048xbf16>
    %93 = tpu.concatenate %67, %70, %73, %76, %79, %82, %85, %88, %91 in 1 : vector<128x128xbf16>, vector<128x128xbf16>, vector<128x128xbf16>, vector<128x128xbf16>, vector<128x128xbf16>, vector<128x128xbf16>, vector<128x128xbf16>, vector<128x128xbf16>, vector<128x128xbf16> -> vector<128x1152xbf16>
    %94 = tpu.concatenate %92, %93 in 1 : vector<128x2048xbf16>, vector<128x1152xbf16> -> vector<128x3200xbf16>
    %c0_106 = arith.constant 0 : index
    %c0_107 = arith.constant 0 : index
    %95 = vector.load %arg3[%c0_106, %c0_107] : memref<3200x128xbf16, #tpu.memory_space<vmem>>, vector<3200x128xbf16>
    %cst_108 = arith.constant dense<0.000000e+00> : vector<128x128xf32>
    %96 = tpu.matmul %94, %95, %cst_108 {dimension_numbers = #tpu.dot_dimension_numbers<[1], [0], [0], [1], [0, 0, 1, 1], [], []>} : vector<128x3200xbf16>, vector<3200x128xbf16>, vector<128x128xf32> -> vector<128x128xf32>
    %c0_109 = arith.constant 0 : index
    %c0_110 = arith.constant 0 : index
    %97 = vector.load %arg4[%c0_109, %c0_110] : memref<1x128xf32, #tpu.memory_space<vmem>>, vector<1x128xf32>
    %98 = vector.broadcast %97 : vector<1x128xf32> to vector<128x128xf32>
    %99 = arith.addf %96, %98 : vector<128x128xf32>
    %c0_111 = arith.constant 0 : index
    %c0_112 = arith.constant 0 : index
    %100 = vector.load %arg11[%c0_111, %c0_112] : memref<128x128xf32, #tpu.memory_space<vmem>>, vector<128x128xf32>
    tpu.vector_store %arg11[%c0_111, %c0_112], %99 {strides = array<i32>} : memref<128x128xf32, #tpu.memory_space<vmem>>, vector<128x128xf32>,
    %c0_113 = arith.constant 0 : index
    %c0_114 = arith.constant 0 : index
    %101 = tpu.strided_load %arg11[%c0_113, %c0_114] {strides = array<i32: 64, 1>} : memref<128x128xf32, #tpu.memory_space<vmem>>, vector<2x128xf32>
    %c1_115 = arith.constant 1 : index
    %c0_116 = arith.constant 0 : index
    %102 = tpu.strided_load %arg11[%c1_115, %c0_116] {strides = array<i32: 64, 1>} : memref<128x128xf32, #tpu.memory_space<vmem>>, vector<2x128xf32>
    %c8 = arith.constant 8 : index
    %c0_117 = arith.constant 0 : index
    %103 = tpu.strided_load %arg11[%c8, %c0_117] {strides = array<i32: 64, 1>} : memref<128x128xf32, #tpu.memory_space<vmem>>, vector<2x128xf32>
    %c9 = arith.constant 9 : index
    %c0_118 = arith.constant 0 : index
    %104 = tpu.strided_load %arg11[%c9, %c0_118] {strides = array<i32: 64, 1>} : memref<128x128xf32, #tpu.memory_space<vmem>>, vector<2x128xf32>
    %105 = arith.maximumf %101, %102 : vector<2x128xf32>
    %106 = arith.maximumf %103, %104 : vector<2x128xf32>
    %107 = arith.maximumf %105, %106 : vector<2x128xf32>
    %c2_119 = arith.constant 2 : index
    %c0_120 = arith.constant 0 : index
    %108 = tpu.strided_load %arg11[%c2_119, %c0_120] {strides = array<i32: 64, 1>} : memref<128x128xf32, #tpu.memory_space<vmem>>, vector<2x128xf32>
    %c3_121 = arith.constant 3 : index
    %c0_122 = arith.constant 0 : index
    %109 = tpu.strided_load %arg11[%c3_121, %c0_122] {strides = array<i32: 64, 1>} : memref<128x128xf32, #tpu.memory_space<vmem>>, vector<2x128xf32>
    %c10 = arith.constant 10 : index
    %c0_123 = arith.constant 0 : index
    %110 = tpu.strided_load %arg11[%c10, %c0_123] {strides = array<i32: 64, 1>} : memref<128x128xf32, #tpu.memory_space<vmem>>, vector<2x128xf32>
    %c11 = arith.constant 11 : index
    %c0_124 = arith.constant 0 : index
    %111 = tpu.strided_load %arg11[%c11, %c0_124] {strides = array<i32: 64, 1>} : memref<128x128xf32, #tpu.memory_space<vmem>>, vector<2x128xf32>
    %112 = arith.maximumf %108, %109 : vector<2x128xf32>
    %113 = arith.maximumf %110, %111 : vector<2x128xf32>
    %114 = arith.maximumf %112, %113 : vector<2x128xf32>
    %c4_125 = arith.constant 4 : index
    %c0_126 = arith.constant 0 : index
    %115 = tpu.strided_load %arg11[%c4_125, %c0_126] {strides = array<i32: 64, 1>} : memref<128x128xf32, #tpu.memory_space<vmem>>, vector<2x128xf32>
    %c5 = arith.constant 5 : index
    %c0_127 = arith.constant 0 : index
    %116 = tpu.strided_load %arg11[%c5, %c0_127] {strides = array<i32: 64, 1>} : memref<128x128xf32, #tpu.memory_space<vmem>>, vector<2x128xf32>
    %c12 = arith.constant 12 : index
    %c0_128 = arith.constant 0 : index
    %117 = tpu.strided_load %arg11[%c12, %c0_128] {strides = array<i32: 64, 1>} : memref<128x128xf32, #tpu.memory_space<vmem>>, vector<2x128xf32>
    %c13 = arith.constant 13 : index
    %c0_129 = arith.constant 0 : index
    %118 = tpu.strided_load %arg11[%c13, %c0_129] {strides = array<i32: 64, 1>} : memref<128x128xf32, #tpu.memory_space<vmem>>, vector<2x128xf32>
    %119 = arith.maximumf %115, %116 : vector<2x128xf32>
    %120 = arith.maximumf %117, %118 : vector<2x128xf32>
    %121 = arith.maximumf %119, %120 : vector<2x128xf32>
    %c6 = arith.constant 6 : index
    %c0_130 = arith.constant 0 : index
    %122 = tpu.strided_load %arg11[%c6, %c0_130] {strides = array<i32: 64, 1>} : memref<128x128xf32, #tpu.memory_space<vmem>>, vector<2x128xf32>
    %c7 = arith.constant 7 : index
    %c0_131 = arith.constant 0 : index
    %123 = tpu.strided_load %arg11[%c7, %c0_131] {strides = array<i32: 64, 1>} : memref<128x128xf32, #tpu.memory_space<vmem>>, vector<2x128xf32>
    %c14 = arith.constant 14 : index
    %c0_132 = arith.constant 0 : index
    %124 = tpu.strided_load %arg11[%c14, %c0_132] {strides = array<i32: 64, 1>} : memref<128x128xf32, #tpu.memory_space<vmem>>, vector<2x128xf32>
    %c15 = arith.constant 15 : index
    %c0_133 = arith.constant 0 : index
    %125 = tpu.strided_load %arg11[%c15, %c0_133] {strides = array<i32: 64, 1>} : memref<128x128xf32, #tpu.memory_space<vmem>>, vector<2x128xf32>
    %126 = arith.maximumf %122, %123 : vector<2x128xf32>
    %127 = arith.maximumf %124, %125 : vector<2x128xf32>
    %128 = arith.maximumf %126, %127 : vector<2x128xf32>
    %c16 = arith.constant 16 : index
    %c0_134 = arith.constant 0 : index
    %129 = tpu.strided_load %arg11[%c16, %c0_134] {strides = array<i32: 64, 1>} : memref<128x128xf32, #tpu.memory_space<vmem>>, vector<2x128xf32>
    %c17 = arith.constant 17 : index
    %c0_135 = arith.constant 0 : index
    %130 = tpu.strided_load %arg11[%c17, %c0_135] {strides = array<i32: 64, 1>} : memref<128x128xf32, #tpu.memory_space<vmem>>, vector<2x128xf32>
    %c24 = arith.constant 24 : index
    %c0_136 = arith.constant 0 : index
    %131 = tpu.strided_load %arg11[%c24, %c0_136] {strides = array<i32: 64, 1>} : memref<128x128xf32, #tpu.memory_space<vmem>>, vector<2x128xf32>
    %c25 = arith.constant 25 : index
    %c0_137 = arith.constant 0 : index
    %132 = tpu.strided_load %arg11[%c25, %c0_137] {strides = array<i32: 64, 1>} : memref<128x128xf32, #tpu.memory_space<vmem>>, vector<2x128xf32>
    %133 = arith.maximumf %129, %130 : vector<2x128xf32>
    %134 = arith.maximumf %131, %132 : vector<2x128xf32>
    %135 = arith.maximumf %133, %134 : vector<2x128xf32>
    %c18 = arith.constant 18 : index
    %c0_138 = arith.constant 0 : index
    %136 = tpu.strided_load %arg11[%c18, %c0_138] {strides = array<i32: 64, 1>} : memref<128x128xf32, #tpu.memory_space<vmem>>, vector<2x128xf32>
    %c19 = arith.constant 19 : index
    %c0_139 = arith.constant 0 : index
    %137 = tpu.strided_load %arg11[%c19, %c0_139] {strides = array<i32: 64, 1>} : memref<128x128xf32, #tpu.memory_space<vmem>>, vector<2x128xf32>
    %c26 = arith.constant 26 : index
    %c0_140 = arith.constant 0 : index
    %138 = tpu.strided_load %arg11[%c26, %c0_140] {strides = array<i32: 64, 1>} : memref<128x128xf32, #tpu.memory_space<vmem>>, vector<2x128xf32>
    %c27 = arith.constant 27 : index
    %c0_141 = arith.constant 0 : index
    %139 = tpu.strided_load %arg11[%c27, %c0_141] {strides = array<i32: 64, 1>} : memref<128x128xf32, #tpu.memory_space<vmem>>, vector<2x128xf32>
    %140 = arith.maximumf %136, %137 : vector<2x128xf32>
    %141 = arith.maximumf %138, %139 : vector<2x128xf32>
    %142 = arith.maximumf %140, %141 : vector<2x128xf32>
    %c20 = arith.constant 20 : index
    %c0_142 = arith.constant 0 : index
    %143 = tpu.strided_load %arg11[%c20, %c0_142] {strides = array<i32: 64, 1>} : memref<128x128xf32, #tpu.memory_space<vmem>>, vector<2x128xf32>
    %c21 = arith.constant 21 : index
    %c0_143 = arith.constant 0 : index
    %144 = tpu.strided_load %arg11[%c21, %c0_143] {strides = array<i32: 64, 1>} : memref<128x128xf32, #tpu.memory_space<vmem>>, vector<2x128xf32>
    %c28 = arith.constant 28 : index
    %c0_144 = arith.constant 0 : index
    %145 = tpu.strided_load %arg11[%c28, %c0_144] {strides = array<i32: 64, 1>} : memref<128x128xf32, #tpu.memory_space<vmem>>, vector<2x128xf32>
    %c29 = arith.constant 29 : index
    %c0_145 = arith.constant 0 : index
    %146 = tpu.strided_load %arg11[%c29, %c0_145] {strides = array<i32: 64, 1>} : memref<128x128xf32, #tpu.memory_space<vmem>>, vector<2x128xf32>
    %147 = arith.maximumf %143, %144 : vector<2x128xf32>
    %148 = arith.maximumf %145, %146 : vector<2x128xf32>
    %149 = arith.maximumf %147, %148 : vector<2x128xf32>
    %c22 = arith.constant 22 : index
    %c0_146 = arith.constant 0 : index
    %150 = tpu.strided_load %arg11[%c22, %c0_146] {strides = array<i32: 64, 1>} : memref<128x128xf32, #tpu.memory_space<vmem>>, vector<2x128xf32>
    %c23 = arith.constant 23 : index
    %c0_147 = arith.constant 0 : index
    %151 = tpu.strided_load %arg11[%c23, %c0_147] {strides = array<i32: 64, 1>} : memref<128x128xf32, #tpu.memory_space<vmem>>, vector<2x128xf32>
    %c30 = arith.constant 30 : index
    %c0_148 = arith.constant 0 : index
    %152 = tpu.strided_load %arg11[%c30, %c0_148] {strides = array<i32: 64, 1>} : memref<128x128xf32, #tpu.memory_space<vmem>>, vector<2x128xf32>
    %c31 = arith.constant 31 : index
    %c0_149 = arith.constant 0 : index
    %153 = tpu.strided_load %arg11[%c31, %c0_149] {strides = array<i32: 64, 1>} : memref<128x128xf32, #tpu.memory_space<vmem>>, vector<2x128xf32>
    %154 = arith.maximumf %150, %151 : vector<2x128xf32>
    %155 = arith.maximumf %152, %153 : vector<2x128xf32>
    %156 = arith.maximumf %154, %155 : vector<2x128xf32>
    %c32 = arith.constant 32 : index
    %c0_150 = arith.constant 0 : index
    %157 = tpu.strided_load %arg11[%c32, %c0_150] {strides = array<i32: 64, 1>} : memref<128x128xf32, #tpu.memory_space<vmem>>, vector<2x128xf32>
    %c33 = arith.constant 33 : index
    %c0_151 = arith.constant 0 : index
    %158 = tpu.strided_load %arg11[%c33, %c0_151] {strides = array<i32: 64, 1>} : memref<128x128xf32, #tpu.memory_space<vmem>>, vector<2x128xf32>
    %c40 = arith.constant 40 : index
    %c0_152 = arith.constant 0 : index
    %159 = tpu.strided_load %arg11[%c40, %c0_152] {strides = array<i32: 64, 1>} : memref<128x128xf32, #tpu.memory_space<vmem>>, vector<2x128xf32>
    %c41 = arith.constant 41 : index
    %c0_153 = arith.constant 0 : index
    %160 = tpu.strided_load %arg11[%c41, %c0_153] {strides = array<i32: 64, 1>} : memref<128x128xf32, #tpu.memory_space<vmem>>, vector<2x128xf32>
    %161 = arith.maximumf %157, %158 : vector<2x128xf32>
    %162 = arith.maximumf %159, %160 : vector<2x128xf32>
    %163 = arith.maximumf %161, %162 : vector<2x128xf32>
    %c34 = arith.constant 34 : index
    %c0_154 = arith.constant 0 : index
    %164 = tpu.strided_load %arg11[%c34, %c0_154] {strides = array<i32: 64, 1>} : memref<128x128xf32, #tpu.memory_space<vmem>>, vector<2x128xf32>
    %c35 = arith.constant 35 : index
    %c0_155 = arith.constant 0 : index
    %165 = tpu.strided_load %arg11[%c35, %c0_155] {strides = array<i32: 64, 1>} : memref<128x128xf32, #tpu.memory_space<vmem>>, vector<2x128xf32>
    %c42 = arith.constant 42 : index
    %c0_156 = arith.constant 0 : index
    %166 = tpu.strided_load %arg11[%c42, %c0_156] {strides = array<i32: 64, 1>} : memref<128x128xf32, #tpu.memory_space<vmem>>, vector<2x128xf32>
    %c43 = arith.constant 43 : index
    %c0_157 = arith.constant 0 : index
    %167 = tpu.strided_load %arg11[%c43, %c0_157] {strides = array<i32: 64, 1>} : memref<128x128xf32, #tpu.memory_space<vmem>>, vector<2x128xf32>
    %168 = arith.maximumf %164, %165 : vector<2x128xf32>
    %169 = arith.maximumf %166, %167 : vector<2x128xf32>
    %170 = arith.maximumf %168, %169 : vector<2x128xf32>
    %c36 = arith.constant 36 : index
    %c0_158 = arith.constant 0 : index
    %171 = tpu.strided_load %arg11[%c36, %c0_158] {strides = array<i32: 64, 1>} : memref<128x128xf32, #tpu.memory_space<vmem>>, vector<2x128xf32>
    %c37 = arith.constant 37 : index
    %c0_159 = arith.constant 0 : index
    %172 = tpu.strided_load %arg11[%c37, %c0_159] {strides = array<i32: 64, 1>} : memref<128x128xf32, #tpu.memory_space<vmem>>, vector<2x128xf32>
    %c44 = arith.constant 44 : index
    %c0_160 = arith.constant 0 : index
    %173 = tpu.strided_load %arg11[%c44, %c0_160] {strides = array<i32: 64, 1>} : memref<128x128xf32, #tpu.memory_space<vmem>>, vector<2x128xf32>
    %c45 = arith.constant 45 : index
    %c0_161 = arith.constant 0 : index
    %174 = tpu.strided_load %arg11[%c45, %c0_161] {strides = array<i32: 64, 1>} : memref<128x128xf32, #tpu.memory_space<vmem>>, vector<2x128xf32>
    %175 = arith.maximumf %171, %172 : vector<2x128xf32>
    %176 = arith.maximumf %173, %174 : vector<2x128xf32>
    %177 = arith.maximumf %175, %176 : vector<2x128xf32>
    %c38 = arith.constant 38 : index
    %c0_162 = arith.constant 0 : index
    %178 = tpu.strided_load %arg11[%c38, %c0_162] {strides = array<i32: 64, 1>} : memref<128x128xf32, #tpu.memory_space<vmem>>, vector<2x128xf32>
    %c39 = arith.constant 39 : index
    %c0_163 = arith.constant 0 : index
    %179 = tpu.strided_load %arg11[%c39, %c0_163] {strides = array<i32: 64, 1>} : memref<128x128xf32, #tpu.memory_space<vmem>>, vector<2x128xf32>
    %c46 = arith.constant 46 : index
    %c0_164 = arith.constant 0 : index
    %180 = tpu.strided_load %arg11[%c46, %c0_164] {strides = array<i32: 64, 1>} : memref<128x128xf32, #tpu.memory_space<vmem>>, vector<2x128xf32>
    %c47 = arith.constant 47 : index
    %c0_165 = arith.constant 0 : index
    %181 = tpu.strided_load %arg11[%c47, %c0_165] {strides = array<i32: 64, 1>} : memref<128x128xf32, #tpu.memory_space<vmem>>, vector<2x128xf32>
    %182 = arith.maximumf %178, %179 : vector<2x128xf32>
    %183 = arith.maximumf %180, %181 : vector<2x128xf32>
    %184 = arith.maximumf %182, %183 : vector<2x128xf32>
    %c48 = arith.constant 48 : index
    %c0_166 = arith.constant 0 : index
    %185 = tpu.strided_load %arg11[%c48, %c0_166] {strides = array<i32: 64, 1>} : memref<128x128xf32, #tpu.memory_space<vmem>>, vector<2x128xf32>
    %c49 = arith.constant 49 : index
    %c0_167 = arith.constant 0 : index
    %186 = tpu.strided_load %arg11[%c49, %c0_167] {strides = array<i32: 64, 1>} : memref<128x128xf32, #tpu.memory_space<vmem>>, vector<2x128xf32>
    %c56 = arith.constant 56 : index
    %c0_168 = arith.constant 0 : index
    %187 = tpu.strided_load %arg11[%c56, %c0_168] {strides = array<i32: 64, 1>} : memref<128x128xf32, #tpu.memory_space<vmem>>, vector<2x128xf32>
    %c57 = arith.constant 57 : index
    %c0_169 = arith.constant 0 : index
    %188 = tpu.strided_load %arg11[%c57, %c0_169] {strides = array<i32: 64, 1>} : memref<128x128xf32, #tpu.memory_space<vmem>>, vector<2x128xf32>
    %189 = arith.maximumf %185, %186 : vector<2x128xf32>
    %190 = arith.maximumf %187, %188 : vector<2x128xf32>
    %191 = arith.maximumf %189, %190 : vector<2x128xf32>
    %c50 = arith.constant 50 : index
    %c0_170 = arith.constant 0 : index
    %192 = tpu.strided_load %arg11[%c50, %c0_170] {strides = array<i32: 64, 1>} : memref<128x128xf32, #tpu.memory_space<vmem>>, vector<2x128xf32>
    %c51 = arith.constant 51 : index
    %c0_171 = arith.constant 0 : index
    %193 = tpu.strided_load %arg11[%c51, %c0_171] {strides = array<i32: 64, 1>} : memref<128x128xf32, #tpu.memory_space<vmem>>, vector<2x128xf32>
    %c58 = arith.constant 58 : index
    %c0_172 = arith.constant 0 : index
    %194 = tpu.strided_load %arg11[%c58, %c0_172] {strides = array<i32: 64, 1>} : memref<128x128xf32, #tpu.memory_space<vmem>>, vector<2x128xf32>
    %c59 = arith.constant 59 : index
    %c0_173 = arith.constant 0 : index
    %195 = tpu.strided_load %arg11[%c59, %c0_173] {strides = array<i32: 64, 1>} : memref<128x128xf32, #tpu.memory_space<vmem>>, vector<2x128xf32>
    %196 = arith.maximumf %192, %193 : vector<2x128xf32>
    %197 = arith.maximumf %194, %195 : vector<2x128xf32>
    %198 = arith.maximumf %196, %197 : vector<2x128xf32>
    %c52 = arith.constant 52 : index
    %c0_174 = arith.constant 0 : index
    %199 = tpu.strided_load %arg11[%c52, %c0_174] {strides = array<i32: 64, 1>} : memref<128x128xf32, #tpu.memory_space<vmem>>, vector<2x128xf32>
    %c53 = arith.constant 53 : index
    %c0_175 = arith.constant 0 : index
    %200 = tpu.strided_load %arg11[%c53, %c0_175] {strides = array<i32: 64, 1>} : memref<128x128xf32, #tpu.memory_space<vmem>>, vector<2x128xf32>
    %c60 = arith.constant 60 : index
    %c0_176 = arith.constant 0 : index
    %201 = tpu.strided_load %arg11[%c60, %c0_176] {strides = array<i32: 64, 1>} : memref<128x128xf32, #tpu.memory_space<vmem>>, vector<2x128xf32>
    %c61 = arith.constant 61 : index
    %c0_177 = arith.constant 0 : index
    %202 = tpu.strided_load %arg11[%c61, %c0_177] {strides = array<i32: 64, 1>} : memref<128x128xf32, #tpu.memory_space<vmem>>, vector<2x128xf32>
    %203 = arith.maximumf %199, %200 : vector<2x128xf32>
    %204 = arith.maximumf %201, %202 : vector<2x128xf32>
    %205 = arith.maximumf %203, %204 : vector<2x128xf32>
    %c54 = arith.constant 54 : index
    %c0_178 = arith.constant 0 : index
    %206 = tpu.strided_load %arg11[%c54, %c0_178] {strides = array<i32: 64, 1>} : memref<128x128xf32, #tpu.memory_space<vmem>>, vector<2x128xf32>
    %c55 = arith.constant 55 : index
    %c0_179 = arith.constant 0 : index
    %207 = tpu.strided_load %arg11[%c55, %c0_179] {strides = array<i32: 64, 1>} : memref<128x128xf32, #tpu.memory_space<vmem>>, vector<2x128xf32>
    %c62 = arith.constant 62 : index
    %c0_180 = arith.constant 0 : index
    %208 = tpu.strided_load %arg11[%c62, %c0_180] {strides = array<i32: 64, 1>} : memref<128x128xf32, #tpu.memory_space<vmem>>, vector<2x128xf32>
    %c63 = arith.constant 63 : index
    %c0_181 = arith.constant 0 : index
    %209 = tpu.strided_load %arg11[%c63, %c0_181] {strides = array<i32: 64, 1>} : memref<128x128xf32, #tpu.memory_space<vmem>>, vector<2x128xf32>
    %210 = arith.maximumf %206, %207 : vector<2x128xf32>
    %211 = arith.maximumf %208, %209 : vector<2x128xf32>
    %212 = arith.maximumf %210, %211 : vector<2x128xf32>
    %213 = tpu.concatenate %107, %114, %121, %128, %135, %142, %149, %156, %163, %170, %177, %184, %191, %198, %205, %212 in 1 : vector<2x128xf32>, vector<2x128xf32>, vector<2x128xf32>, vector<2x128xf32>, vector<2x128xf32>, vector<2x128xf32>, vector<2x128xf32>, vector<2x128xf32>, vector<2x128xf32>, vector<2x128xf32>, vector<2x128xf32>, vector<2x128xf32>, vector<2x128xf32>, vector<2x128xf32>, vector<2x128xf32>, vector<2x128xf32> -> vector<2x2048xf32>
    %cst_182 = arith.constant 0.000000e+00 : f32
    %214 = vector.broadcast %cst_182 : f32 to vector<2x2048xf32>
    %215 = arith.maximumf %213, %214 : vector<2x2048xf32>
    %216 = arith.truncf %215 : vector<2x2048xf32> to vector<2x2048xbf16>
    %c0_183 = arith.constant 0 : index
    %c0_184 = arith.constant 0 : index
    %217 = vector.load %arg5[%c0_183, %c0_184] : memref<2048x128xbf16, #tpu.memory_space<vmem>>, vector<2048x128xbf16>
    %cst_185 = arith.constant dense<0.000000e+00> : vector<2x128xf32>
    %218 = tpu.matmul %216, %217, %cst_185 {dimension_numbers = #tpu.dot_dimension_numbers<[1], [0], [0], [1], [0, 0, 1, 1], [], []>} : vector<2x2048xbf16>, vector<2048x128xbf16>, vector<2x128xf32> -> vector<2x128xf32>
    %c0_186 = arith.constant 0 : index
    %c0_187 = arith.constant 0 : index
    %219 = vector.load %arg6[%c0_186, %c0_187] : memref<1x128xf32, #tpu.memory_space<vmem>>, vector<1x128xf32>
    %220 = vector.broadcast %219 : vector<1x128xf32> to vector<2x128xf32>
    %221 = arith.addf %218, %220 : vector<2x128xf32>
    %cst_188 = arith.constant 0.000000e+00 : f32
    %222 = vector.broadcast %cst_188 : f32 to vector<2x128xf32>
    %223 = arith.maximumf %221, %222 : vector<2x128xf32>
    %224 = arith.truncf %223 : vector<2x128xf32> to vector<2x128xbf16>
    %c0_189 = arith.constant 0 : index
    %c0_190 = arith.constant 0 : index
    %225 = vector.load %arg7[%c0_189, %c0_190] : memref<128x128xbf16, #tpu.memory_space<vmem>>, vector<128x128xbf16>
    %cst_191 = arith.constant dense<0.000000e+00> : vector<2x128xf32>
    %226 = tpu.matmul %224, %225, %cst_191 {dimension_numbers = #tpu.dot_dimension_numbers<[1], [0], [0], [1], [0, 0, 1, 1], [], []>} : vector<2x128xbf16>, vector<128x128xbf16>, vector<2x128xf32> -> vector<2x128xf32>
    %c0_192 = arith.constant 0 : index
    %c0_193 = arith.constant 0 : index
    %227 = vector.load %arg8[%c0_192, %c0_193] : memref<1x128xf32, #tpu.memory_space<vmem>>, vector<1x128xf32>
    %228 = vector.broadcast %227 : vector<1x128xf32> to vector<2x128xf32>
    %229 = arith.addf %226, %228 : vector<2x128xf32>
    %230 = tpu.iota {dimensions = array<i32: 1>} : vector<2x128xi32>
    %c10_i32 = arith.constant 10 : i32
    %231 = vector.broadcast %c10_i32 : i32 to vector<2x128xi32>
    %232 = arith.cmpi slt, %230, %231 : vector<2x128xi32>
    %cst_194 = arith.constant -1.000000e+30 : f32
    %233 = vector.broadcast %cst_194 : f32 to vector<2x128xf32>
    %234 = arith.select %232, %229, %233 : vector<2x128xi1>, vector<2x128xf32>
    %cst_195 = arith.constant dense<0xFF800000> : vector<2xf32>
    %235 = vector.multi_reduction <maximumf>, %234, %cst_195 [1] : vector<2x128xf32> to vector<2xf32>
    %236 = vector.shape_cast %235 : vector<2xf32> to vector<2x1xf32>
    %237 = vector.broadcast %236 : vector<2x1xf32> to vector<2x128xf32>
    %238 = arith.subf %234, %237 : vector<2x128xf32>
    %239 = math.exp %238 : vector<2x128xf32>
    %cst_196 = arith.constant dense<0.000000e+00> : vector<2xf32>
    %240 = vector.multi_reduction <add>, %239, %cst_196 [1] : vector<2x128xf32> to vector<2xf32>
    %241 = vector.shape_cast %240 : vector<2xf32> to vector<2x1xf32>
    %242 = math.log %241 : vector<2x1xf32>
    %243 = vector.broadcast %242 : vector<2x1xf32> to vector<2x128xf32>
    %244 = arith.subf %238, %243 : vector<2x128xf32>
    %c0_197 = arith.constant 0 : index
    %c0_198 = arith.constant 0 : index
    %245 = vector.load %arg9[%c0_197, %c0_198] : memref<2x128xf32, #tpu.memory_space<vmem>>, vector<2x128xf32>
    tpu.vector_store %arg9[%c0_197, %c0_198], %244 {strides = array<i32>} : memref<2x128xf32, #tpu.memory_space<vmem>>, vector<2x128xf32>,
    return
  }
}

</mosaic_0001>

<bundles_post_ra>
// kernel: net_forward.1
= control target key start
LH: loop header
LB: loop body
LE: loop exit
PB: predicated region body
PF: predicated region fallthrough
CT: control target
= control target key end

     0   :  { %vm722_vm0 = vcmask 261120   ;;  %s12910_s0 = inlined_call_operand.vmem [shape: bf16[1536,32], index: 0, kind: input, shape index: {}]   ;;  %s12911_s1 = inlined_call_operand.vmem [shape: bf16[32,128], index: 1, kind: input, shape index: {}]   ;;  %s12912_s2 = inlined_call_operand.vmem [shape: f32[1,128], index: 2, kind: input, shape index: {}]   ;;  %s12913_s3 = inlined_call_operand.vmem [shape: bf16[3200,128], index: 3, kind: input, shape index: {}]   ;;  %s12914_s4 = inlined_call_operand.vmem [shape: f32[1,128], index: 4, kind: input, shape index: {}]   ;;  %s12915_s5 = inlined_call_operand.vmem [shape: bf16[2048,128], index: 5, kind: input, shape index: {}]   ;;  %s12916_s6 = inlined_call_operand.vmem [shape: f32[1,128], index: 6, kind: input, shape index: {}]   ;;  %s12917_s7 = inlined_call_operand.vmem [shape: bf16[128,128], index: 7, kind: input, shape index: {}]   ;;  %s12918_s8 = inlined_call_operand.vmem [shape: f32[1,128], index: 8, kind: input, shape index: {}]   ;;  %s12919_s9 = inlined_call_operand.hbm [shape: f32[2,128], index: 9, kind: output, shape index: {}]  }
   0x1   :  { %v9278_v0 = vld [vmem:[%s12911_s1 + $0x8] sm:$0xff]   ;;  %v9279_v1 = vld [vmem:[%s12911_s1] sm:$0xff]   ;;  %v9282_v4 = vld [vmem:[%s12910_s0 + $0x10] sm:$0xff]  }
   0x2   :  { %9027 = vmatprep.subr.bf16.mxu0 %v9278_v0  ;;  %v9280_v2 = vld [vmem:[%s12910_s0] sm:$0xff]   ;;  %v9281_v3 = vld [vmem:[%s12910_s0 + $0x8] sm:$0xff]   ;;  %v9283_v5 = vld [vmem:[%s12910_s0 + $0x18] sm:$0xff]  }
   0x3   :  { %9028 = vmatpush3.bf16.msra.mxu0 %v9278_v0  ;;  %9031 = vmatprep.mubr.msk.bf16.mxu0 %vm722_vm0, %v9280_v2  ;;  %v9284_v6 = vld [vmem:[%s12910_s0 + $0x20] sm:$0xff]   ;;  %v9285_v7 = vld [vmem:[%s12910_s0 + $0x28] sm:$0xff]   ;;  %v9286_v8 = vld [vmem:[%s12910_s0 + $0x30] sm:$0xff]  }
   0x4   :  { %9029 = vmatprep.subr.bf16.mxu0 %v9279_v1  ;;  %v9287_v9 = vld [vmem:[%s12910_s0 + $0x38] sm:$0xff]   ;;  %v9288_v10 = vld [vmem:[%s12910_s0 + $0x40] sm:$0xff]   ;;  %v9289_v11 = vld [vmem:[%s12910_s0 + $0x48] sm:$0xff]  }
   0x5   :  { %v9290_v12 = vld [vmem:[%s12910_s0 + $0x50] sm:$0xff]   ;;  %v9291_v13 = vld [vmem:[%s12910_s0 + $0x58] sm:$0xff]   ;;  %v9292_v14 = vld [vmem:[%s12910_s0 + $0x60] sm:$0xff]  }
   0x6   :  { %v9293_v15 = vld [vmem:[%s12910_s0 + $0x68] sm:$0xff]   ;;  %v9294_v16 = vld [vmem:[%s12910_s0 + $0x70] sm:$0xff]   ;;  %v9295_v17 = vld [vmem:[%s12910_s0 + $0x78] sm:$0xff]  }
   0x7   :  { %9030 = vmatpush3.bf16.msra.mxu0 %v9279_v1  ;;  %v9296_v18 = vld [vmem:[%s12910_s0 + $0x80] sm:$0xff]   ;;  %v9297_v19 = vld [vmem:[%s12910_s0 + $0x88] sm:$0xff]   ;;  %v9298_v20 = vld [vmem:[%s12910_s0 + $0x90] sm:$0xff]  }
   0x8   :  { %v9299_v21 = vld [vmem:[%s12910_s0 + $0x98] sm:$0xff]   ;;  %v9300_v22 = vld [vmem:[%s12910_s0 + $0xa0] sm:$0xff]   ;;  %v9301_v23 = vld [vmem:[%s12910_s0 + $0xa8] sm:$0xff]  }
   0x9   :  { %v9302_v24 = vld [vmem:[%s12910_s0 + $0xb0] sm:$0xff]   ;;  %v9303_v25 = vld [vmem:[%s12910_s0 + $0xb8] sm:$0xff]   ;;  %v9304_v26 = vld [vmem:[%s12910_s0 + $0xc0] sm:$0xff]  }
   0xa   :  { %9032 = vmatmul.mubr.msk.bf16.vlgmr.msra.gmra.mxu0 %vm722_vm0, %v9281_v3  ;;  %v9305_v27 = vld [vmem:[%s12910_s0 + $0xc8] sm:$0xff]   ;;  %v9306_v28 = vld [vmem:[%s12910_s0 + $0xd0] sm:$0xff]   ;;  %v9307_v29 = vld [vmem:[%s12910_s0 + $0xd8] sm:$0xff]  }
   0xb   :  { %9035 = vmatprep.mubr.msk.bf16.mxu0 %vm722_vm0, %v9282_v4  ;;  %v9308_v30 = vld [vmem:[%s12910_s0 + $0xe0] sm:$0xff]   ;;  %v9309_v31 = vld [vmem:[%s12910_s0 + $0xe8] sm:$0xff]   ;;  %v9310_v32 = vld [vmem:[%s12910_s0 + $0xf0] sm:$0xff]  }
   0xc   :  { %v9311_v33 = vld [vmem:[%s12910_s0 + $0xf8] sm:$0xff]   ;;  %v9312_v34 = vld [vmem:[%s12910_s0 + $0x100] sm:$0xff]   ;;  %v9313_v35 = vld [vmem:[%s12910_s0 + $0x108] sm:$0xff]  }
   0xd   :  { %v9314_v36 = vld [vmem:[%s12910_s0 + $0x110] sm:$0xff]   ;;  %v9315_v37 = vld [vmem:[%s12910_s0 + $0x118] sm:$0xff]   ;;  %v9316_v38 = vld [vmem:[%s12910_s0 + $0x120] sm:$0xff]  }
   0xe   :  { %v9317_v39 = vld [vmem:[%s12910_s0 + $0x128] sm:$0xff]   ;;  %v9318_v40 = vld [vmem:[%s12910_s0 + $0x130] sm:$0xff]   ;;  %v9319_v41 = vld [vmem:[%s12910_s0 + $0x138] sm:$0xff]  }
   0xf   :  { %v9320_v42 = vld [vmem:[%s12910_s0 + $0x140] sm:$0xff]   ;;  %v9321_v43 = vld [vmem:[%s12910_s0 + $0x148] sm:$0xff]   ;;  %v9322_v44 = vld [vmem:[%s12910_s0 + $0x150] sm:$0xff]  }
  0x10   :  { %v9323_v45 = vld [vmem:[%s12910_s0 + $0x158] sm:$0xff]   ;;  %v9324_v46 = vld [vmem:[%s12910_s0 + $0x160] sm:$0xff]   ;;  %v9325_v47 = vld [vmem:[%s12910_s0 + $0x168] sm:$0xff]  }
  0x11   :  { %v9326_v48 = vld [vmem:[%s12910_s0 + $0x170] sm:$0xff]   ;;  %v9327_v49 = vld [vmem:[%s12910_s0 + $0x178] sm:$0xff]   ;;  %v9328_v50 = vld [vmem:[%s12910_s0 + $0x180] sm:$0xff]  }
  0x12   :  { %9036 = vmatmul.mubr.msk.bf16.gmra.mxu0 %vm722_vm0, %v9283_v5  ;;  %v9329_v51 = vld [vmem:[%s12910_s0 + $0x188] sm:$0xff]   ;;  %v9330_v52 = vld [vmem:[%s12910_s0 + $0x190] sm:$0xff]   ;;  %v9331_v55 = vld [vmem:[%s12910_s0 + $0x198] sm:$0xff]  }
  0x13   :  { %9039 = vmatprep.mubr.msk.bf16.mxu0 %vm722_vm0, %v9284_v6  ;;  %v9332_v57 = vld [vmem:[%s12910_s0 + $0x1a0] sm:$0xff]   ;;  %v9333_v61 = vld [vmem:[%s12910_s0 + $0x1a8] sm:$0xff]   ;;  %v9334_v63 = vld [vmem:[%s12910_s0 + $0x1b0] sm:$0xff]  }
  0x14   :  { %v9335_v3 = vld [vmem:[%s12910_s0 + $0x1b8] sm:$0xff]   ;;  %v9336_v5 = vld [vmem:[%s12910_s0 + $0x1c0] sm:$0xff]  }
  0x1a   :  { %9040 = vmatmul.mubr.msk.bf16.gmra.mxu0 %vm722_vm0, %v9285_v7 }
  0x1b   :  { %9043 = vmatprep.mubr.msk.bf16.mxu0 %vm722_vm0, %v9286_v8 }
  0x22   :  { %9044 = vmatmul.mubr.msk.bf16.gmra.mxu0 %vm722_vm0, %v9287_v9  ;;  %v9337_v9 = vld [vmem:[%s12910_s0 + $0x1c8] sm:$0xff]  }
  0x23   :  { %9047 = vmatprep.mubr.msk.bf16.mxu0 %vm722_vm0, %v9288_v10 }
  0x2a   :  { %9048 = vmatmul.mubr.msk.bf16.gmra.mxu0 %vm722_vm0, %v9289_v11  ;;  %v9338_v11 = vld [vmem:[%s12910_s0 + $0x1d0] sm:$0xff]  }
  0x2b   :  { %9051 = vmatprep.mubr.msk.bf16.mxu0 %vm722_vm0, %v9290_v12 }
  0x32   :  { %9052 = vmatmul.mubr.msk.bf16.gmra.mxu0 %vm722_vm0, %v9291_v13 }
  0x33   :  { %9055 = vmatprep.mubr.msk.bf16.mxu0 %vm722_vm0, %v9292_v14 }
  0x3a   :  { %9056 = vmatmul.mubr.msk.bf16.gmra.mxu0 %vm722_vm0, %v9293_v15  ;;  %v9339_v15 = vld [vmem:[%s12910_s0 + $0x1d8] sm:$0xff]  }
  0x3b   :  { %9059 = vmatprep.mubr.msk.bf16.mxu0 %vm722_vm0, %v9294_v16 }
  0x42   :  { %9060 = vmatmul.mubr.msk.bf16.gmra.mxu0 %vm722_vm0, %v9295_v17  ;;  %v9340_v17 = vld [vmem:[%s12910_s0 + $0x1e0] sm:$0xff]  }
  0x43   :  { %9063 = vmatprep.mubr.msk.bf16.mxu0 %vm722_vm0, %v9296_v18 }
  0x4a   :  { %9064 = vmatmul.mubr.msk.bf16.gmra.mxu0 %vm722_vm0, %v9297_v19 }
  0x4b   :  { %9067 = vmatprep.mubr.msk.bf16.mxu0 %vm722_vm0, %v9298_v20 }
  0x52   :  { %9068 = vmatmul.mubr.msk.bf16.gmra.mxu0 %vm722_vm0, %v9299_v21  ;;  %v9341_v21 = vld [vmem:[%s12910_s0 + $0x1e8] sm:$0xff]  }
  0x53   :  { %9071 = vmatprep.mubr.msk.bf16.mxu0 %vm722_vm0, %v9300_v22 }
  0x5a   :  { %9072 = vmatmul.mubr.msk.bf16.gmra.mxu0 %vm722_vm0, %v9301_v23  ;;  %v9342_v23 = vld [vmem:[%s12910_s0 + $0x1f0] sm:$0xff]  }
  0x5b   :  { %9075 = vmatprep.mubr.msk.bf16.mxu0 %vm722_vm0, %v9302_v24 }
  0x62   :  { %9076 = vmatmul.mubr.msk.bf16.gmra.mxu0 %vm722_vm0, %v9303_v25 }
  0x63   :  { %9079 = vmatprep.mubr.msk.bf16.mxu0 %vm722_vm0, %v9304_v26 }
  0x6a   :  { %9080 = vmatmul.mubr.msk.bf16.gmra.mxu0 %vm722_vm0, %v9305_v27  ;;  %v9343_v27 = vld [vmem:[%s12910_s0 + $0x1f8] sm:$0xff]  }
  0x6b   :  { %9083 = vmatprep.mubr.msk.bf16.mxu0 %vm722_vm0, %v9306_v28 }
  0x72   :  { %9084 = vmatmul.mubr.msk.bf16.gmra.mxu0 %vm722_vm0, %v9307_v29  ;;  %v9344_v29 = vld [vmem:[%s12910_s0 + $0x200] sm:$0xff]  }
  0x73   :  { %9087 = vmatprep.mubr.msk.bf16.mxu0 %vm722_vm0, %v9308_v30 }
  0x7a   :  { %9088 = vmatmul.mubr.msk.bf16.gmra.mxu0 %vm722_vm0, %v9309_v31 }
  0x7b   :  { %9091 = vmatprep.mubr.msk.bf16.mxu0 %vm722_vm0, %v9310_v32 }
  0x82   :  { %9092 = vmatmul.mubr.msk.bf16.gmra.mxu0 %vm722_vm0, %v9311_v33  ;;  %v9345_v33 = vld [vmem:[%s12910_s0 + $0x208] sm:$0xff]  }
  0x83   :  { %9095 = vmatprep.mubr.msk.bf16.mxu0 %vm722_vm0, %v9312_v34  ;;  %v9346_v34 = vld [vmem:[%s12910_s0 + $0x210] sm:$0xff]  }
  0x8a   :  { %9096 = vmatmul.mubr.msk.bf16.gmra.mxu0 %vm722_vm0, %v9313_v35 }
  0x8b   :  { %9099 = vmatprep.mubr.msk.bf16.mxu0 %vm722_vm0, %v9314_v36 }
  0x92   :  { %9100 = vmatmul.mubr.msk.bf16.gmra.mxu0 %vm722_vm0, %v9315_v37 }
  0x93   :  { %9103 = vmatprep.mubr.msk.bf16.mxu0 %vm722_vm0, %v9316_v38 }
  0x9a   :  { %9104 = vmatmul.mubr.msk.bf16.gmra.mxu0 %vm722_vm0, %v9317_v39  ;;  %v9347_v39 = vld [vmem:[%s12910_s0 + $0x218] sm:$0xff]  }
  0x9b   :  { %9107 = vmatprep.mubr.msk.bf16.mxu0 %vm722_vm0, %v9318_v40  ;;  %v9348_v40 = vld [vmem:[%s12910_s0 + $0x220] sm:$0xff]  }
  0xa2   :  { %9108 = vmatmul.mubr.msk.bf16.gmra.mxu0 %vm722_vm0, %v9319_v41 }
  0xa3   :  { %9111 = vmatprep.mubr.msk.bf16.mxu0 %vm722_vm0, %v9320_v42 }
  0xaa   :  { %9112 = vmatmul.mubr.msk.bf16.gmra.mxu0 %vm722_vm0, %v9321_v43 }
  0xab   :  { %9115 = vmatprep.mubr.msk.bf16.mxu0 %vm722_vm0, %v9322_v44 }
  0xb2   :  { %9116 = vmatmul.mubr.msk.bf16.gmra.mxu0 %vm722_vm0, %v9323_v45  ;;  %v9349_v45 = vld [vmem:[%s12910_s0 + $0x228] sm:$0xff]  }
  0xb3   :  { %9119 = vmatprep.mubr.msk.bf16.mxu0 %vm722_vm0, %v9324_v46  ;;  %v9350_v46 = vld [vmem:[%s12910_s0 + $0x230] sm:$0xff]  }
  0xba   :  { %9120 = vmatmul.mubr.msk.bf16.gmra.mxu0 %vm722_vm0, %v9325_v47 }
  0xbb   :  { %9123 = vmatprep.mubr.msk.bf16.mxu0 %vm722_vm0, %v9326_v48 }
  0xc2   :  { %9124 = vmatmul.mubr.msk.bf16.gmra.mxu0 %vm722_vm0, %v9327_v49 }
  0xc3   :  { %9127 = vmatprep.mubr.msk.bf16.mxu0 %vm722_vm0, %v9328_v50 }
  0xca   :  { %v10006_v53 = vpop.f32.mrf.mxu0  ;;  %9128 = vmatmul.mubr.msk.bf16.gmra.mxu0 %vm722_vm0, %v9329_v51  ;;  %v9351_v51 = vld [vmem:[%s12910_s0 + $0x238] sm:$0xff]  }
  0xcb   :  { %9131 = vmatprep.mubr.msk.bf16.mxu0 %vm722_vm0, %v9330_v52  ;;  %v9352_v52 = vld [vmem:[%s12910_s0 + $0x240] sm:$0xff]  }
  0xcc   :  { %v10010_v54 = vpop.f32.mrf.mxu0 }
  0xce   :  { %v10015_v56 = vpop.f32.mrf.mxu0 }
  0xd0   :  { %v10020_v58 = vpop.f32.mrf.mxu0 }
  0xd2   :  { %v10022_v59 = vpop.f32.mrf.mxu0  ;;  %9132 = vmatmul.mubr.msk.bf16.gmra.mxu0 %vm722_vm0, %v9331_v55 }
  0xd3   :  { %9135 = vmatprep.mubr.msk.bf16.mxu0 %vm722_vm0, %v9332_v57 }
  0xd4   :  { %v10026_v60 = vpop.f32.mrf.mxu0 }
  0xd6   :  { %v10031_v62 = vpop.f32.mrf.mxu0 }
  0xd8   :  { %v10036_v0 = vpop.f32.mrf.mxu0 }
  0xda   :  { %v10038_v1 = vpop.f32.mrf.mxu0  ;;  %9136 = vmatmul.mubr.msk.bf16.gmra.mxu0 %vm722_vm0, %v9333_v61 }
  0xdb   :  { %9139 = vmatprep.mubr.msk.bf16.mxu0 %vm722_vm0, %v9334_v63 }
  0xdc   :  { %v10042_v2 = vpop.f32.mrf.mxu0 }
  0xde   :  { %v10047_v4 = vpop.f32.mrf.mxu0 }
  0xe0   :  { %v10052_v6 = vpop.f32.mrf.mxu0 }
  0xe2   :  { %v10054_v7 = vpop.f32.mrf.mxu0  ;;  %9140 = vmatmul.mubr.msk.bf16.gmra.mxu0 %vm722_vm0, %v9335_v3  ;;  %v9353_v3 = vld [vmem:[%s12910_s0 + $0x248] sm:$0xff]  }
  0xe3   :  { %9143 = vmatprep.mubr.msk.bf16.mxu0 %vm722_vm0, %v9336_v5  ;;  %v9354_v5 = vld [vmem:[%s12910_s0 + $0x250] sm:$0xff]  }
  0xe4   :  { %v10058_v8 = vpop.f32.mrf.mxu0 }
  0xe6   :  { %v10063_v10 = vpop.f32.mrf.mxu0 }
  0xe8   :  { %v10068_v12 = vpop.f32.mrf.mxu0 }
  0xea   :  { %v10070_v13 = vpop.f32.mrf.mxu0  ;;  %9144 = vmatmul.mubr.msk.bf16.gmra.mxu0 %vm722_vm0, %v9337_v9 }
  0xeb   :  { %9147 = vmatprep.mubr.msk.bf16.mxu0 %vm722_vm0, %v9338_v11 }
  0xec   :  { %v10074_v14 = vpop.f32.mrf.mxu0 }
  0xed   :  { %12934 = vst [vmem:[#allocation7_spill] sm:$0xff] %v10074_v14 }
  0xee   :  { %v10079_v16 = vpop.f32.mrf.mxu0 }
  0xef   :  { %12935 = vst [vmem:[#allocation8_spill] sm:$0xff] %v10079_v16 }
  0xf0   :  { %v10084_v18 = vpop.f32.mrf.mxu0 }
  0xf1   :  { %12936 = vst [vmem:[#allocation9_spill] sm:$0xff] %v10084_v18 }
  0xf2   :  { %v10086_v19 = vpop.f32.mrf.mxu0  ;;  %9148 = vmatmul.mubr.msk.bf16.gmra.mxu0 %vm722_vm0, %v9339_v15 }
  0xf3   :  { %12937 = vst [vmem:[#allocation10_spill] sm:$0xff] %v10086_v19  ;;  %9151 = vmatprep.mubr.msk.bf16.mxu0 %vm722_vm0, %v9340_v17 }
  0xf4   :  { %v10090_v20 = vpop.f32.mrf.mxu0 }
  0xf5   :  { %12938 = vst [vmem:[#allocation11_spill] sm:$0xff] %v10090_v20 }
  0xf6   :  { %v10095_v22 = vpop.f32.mrf.mxu0 }
  0xf7   :  { %12939 = vst [vmem:[#allocation12_spill] sm:$0xff] %v10095_v22 }
  0xf8   :  { %v10100_v24 = vpop.f32.mrf.mxu0 }
  0xf9   :  { %12940 = vst [vmem:[#allocation13_spill] sm:$0xff] %v10100_v24 }
  0xfa   :  { %v10102_v25 = vpop.f32.mrf.mxu0  ;;  %9152 = vmatmul.mubr.msk.bf16.gmra.mxu0 %vm722_vm0, %v9341_v21  ;;  %v9355_v21 = vld [vmem:[%s12910_s0 + $0x258] sm:$0xff]  }
  0xfb   :  { %12941 = vst [vmem:[#allocation14_spill] sm:$0xff] %v10102_v25  ;;  %9155 = vmatprep.mubr.msk.bf16.mxu0 %vm722_vm0, %v9342_v23  ;;  %v9356_v23 = vld [vmem:[%s12910_s0 + $0x260] sm:$0xff]  }
  0xfc   :  { %v10106_v26 = vpop.f32.mrf.mxu0 }
  0xfd   :  { %12942 = vst [vmem:[#allocation15_spill] sm:$0xff] %v10106_v26 }
  0xfe   :  { %v10111_v28 = vpop.f32.mrf.mxu0 }
  0xff   :  { %12943 = vst [vmem:[#allocation16_spill] sm:$0xff] %v10111_v28 }
 0x100   :  { %v10116_v30 = vpop.f32.mrf.mxu0 }
 0x101   :  { %12944 = vst [vmem:[#allocation17_spill] sm:$0xff] %v10116_v30 }
 0x102   :  { %v10118_v31 = vpop.f32.mrf.mxu0  ;;  %9156 = vmatmul.mubr.msk.bf16.gmra.mxu0 %vm722_vm0, %v9343_v27 }
 0x103   :  { %12945 = vst [vmem:[#allocation18_spill] sm:$0xff] %v10118_v31  ;;  %9159 = vmatprep.mubr.msk.bf16.mxu0 %vm722_vm0, %v9344_v29 }
 0x104   :  { %v10122_v32 = vpop.f32.mrf.mxu0 }
 0x105   :  { %12946 = vst [vmem:[#allocation19_spill] sm:$0xff] %v10122_v32 }
 0x106   :  { %v10130_v35 = vpop.f32.mrf.mxu0 }
 0x107   :  { %12947 = vst [vmem:[#allocation20_spill] sm:$0xff] %v10130_v35 }
 0x108   :  { %v10132_v36 = vpop.f32.mrf.mxu0 }
 0x109   :  { %12948 = vst [vmem:[#allocation21_spill] sm:$0xff] %v10132_v36 }
 0x10a   :  { %v10134_v37 = vpop.f32.mrf.mxu0  ;;  %9160 = vmatmul.mubr.msk.bf16.gmra.mxu0 %vm722_vm0, %v9345_v33 }
 0x10b   :  { %12949 = vst [vmem:[#allocation22_spill] sm:$0xff] %v10134_v37  ;;  %9163 = vmatprep.mubr.msk.bf16.mxu0 %vm722_vm0, %v9346_v34 }
 0x10c   :  { %v10138_v38 = vpop.f32.mrf.mxu0 }
 0x10d   :  { %12950 = vst [vmem:[#allocation23_spill] sm:$0xff] %v10138_v38 }
 0x10e   :  { %v10146_v41 = vpop.f32.mrf.mxu0 }
 0x10f   :  { %12951 = vst [vmem:[#allocation24_spill] sm:$0xff] %v10146_v41 }
 0x110   :  { %v10148_v42 = vpop.f32.mrf.mxu0 }
 0x111   :  { %12952 = vst [vmem:[#allocation25_spill] sm:$0xff] %v10148_v42 }
 0x112   :  { %v10150_v43 = vpop.f32.mrf.mxu0  ;;  %9164 = vmatmul.mubr.msk.bf16.gmra.mxu0 %vm722_vm0, %v9347_v39  ;;  %v9357_v39 = vld [vmem:[%s12910_s0 + $0x268] sm:$0xff]  }
 0x113   :  { %12953 = vst [vmem:[#allocation26_spill] sm:$0xff] %v10150_v43  ;;  %9167 = vmatprep.mubr.msk.bf16.mxu0 %vm722_vm0, %v9348_v40  ;;  %v9358_v40 = vld [vmem:[%s12910_s0 + $0x270] sm:$0xff]  }
 0x114   :  { %v10154_v44 = vpop.f32.mrf.mxu0 }
 0x115   :  { %12954 = vst [vmem:[#allocation27_spill] sm:$0xff] %v10154_v44 }
 0x116   :  { %v10162_v47 = vpop.f32.mrf.mxu0 }
 0x117   :  { %12955 = vst [vmem:[#allocation28_spill] sm:$0xff] %v10162_v47 }
 0x118   :  { %v10164_v48 = vpop.f32.mrf.mxu0 }
 0x119   :  { %12956 = vst [vmem:[#allocation29_spill] sm:$0xff] %v10164_v48 }
 0x11a   :  { %v10166_v49 = vpop.f32.mrf.mxu0  ;;  %9168 = vmatmul.mubr.msk.bf16.gmra.mxu0 %vm722_vm0, %v9349_v45 }
 0x11b   :  { %12957 = vst [vmem:[#allocation30_spill] sm:$0xff] %v10166_v49  ;;  %9171 = vmatprep.mubr.msk.bf16.mxu0 %vm722_vm0, %v9350_v46 }
 0x11c   :  { %v10170_v50 = vpop.f32.mrf.mxu0 }
 0x11d   :  { %12958 = vst [vmem:[#allocation31_spill] sm:$0xff] %v10170_v50 }
 0x11e   :  { %v10178_v55 = vpop.f32.mrf.mxu0 }
 0x11f   :  { %12959 = vst [vmem:[#allocation32_spill] sm:$0xff] %v10178_v55 }
 0x120   :  { %v10180_v57 = vpop.f32.mrf.mxu0 }
 0x121   :  { %12960 = vst [vmem:[#allocation33_spill] sm:$0xff] %v10180_v57 }
 0x122   :  { %v10182_v61 = vpop.f32.mrf.mxu0  ;;  %9172 = vmatmul.mubr.msk.bf16.gmra.mxu0 %vm722_vm0, %v9351_v51 }
 0x123   :  { %12961 = vst [vmem:[#allocation34_spill] sm:$0xff] %v10182_v61  ;;  %9175 = vmatprep.mubr.msk.bf16.mxu0 %vm722_vm0, %v9352_v52 }
 0x124   :  { %v10186_v63 = vpop.f32.mrf.mxu0 }
 0x125   :  { %12962 = vst [vmem:[#allocation35_spill] sm:$0xff] %v10186_v63 }
 0x126   :  { %v10194_v9 = vpop.f32.mrf.mxu0 }
 0x127   :  { %12963 = vst [vmem:[#allocation36_spill] sm:$0xff] %v10194_v9 }
 0x128   :  { %v10196_v11 = vpop.f32.mrf.mxu0 }
 0x129   :  { %12964 = vst [vmem:[#allocation37_spill] sm:$0xff] %v10196_v11 }
 0x12a   :  { %v10198_v15 = vpop.f32.mrf.mxu0  ;;  %9176 = vmatmul.mubr.msk.bf16.gmra.mxu0 %vm722_vm0, %v9353_v3  ;;  %v9359_v3 = vld [vmem:[%s12910_s0 + $0x278] sm:$0xff]  }
 0x12b   :  { %9179 = vmatprep.mubr.msk.bf16.mxu0 %vm722_vm0, %v9354_v5  ;;  %v9360_v5 = vld [vmem:[%s12910_s0 + $0x280] sm:$0xff]  }
 0x12c   :  { %v10202_v17 = vpop.f32.mrf.mxu0 }
 0x12e   :  { %v10210_v27 = vpop.f32.mrf.mxu0 }
 0x130   :  { %v10212_v29 = vpop.f32.mrf.mxu0 }
 0x132   :  { %v10214_v33 = vpop.f32.mrf.mxu0  ;;  %9180 = vmatmul.mubr.msk.bf16.gmra.mxu0 %vm722_vm0, %v9355_v21 }
 0x133   :  { %9183 = vmatprep.mubr.msk.bf16.mxu0 %vm722_vm0, %v9356_v23 }
 0x134   :  { %v10218_v34 = vpop.f32.mrf.mxu0 }
 0x136   :  { %v10226_v45 = vpop.f32.mrf.mxu0 }
 0x138   :  { %v10228_v46 = vpop.f32.mrf.mxu0 }
 0x13a   :  { %v10230_v51 = vpop.f32.mrf.mxu0  ;;  %9184 = vmatmul.mubr.msk.bf16.gmra.mxu0 %vm722_vm0, %v9357_v39 }
 0x13b   :  { %9187 = vmatprep.mubr.msk.bf16.mxu0 %vm722_vm0, %v9358_v40 }
 0x13c   :  { %v10234_v52 = vpop.f32.mrf.mxu0 }
 0x13e   :  { %v10242_v21 = vpop.f32.mrf.mxu0 }
 0x140   :  { %v10244_v23 = vpop.f32.mrf.mxu0 }
 0x142   :  { %v10246_v11 = vpop.f32.mrf.mxu0  ;;  %9188 = vmatmul.mubr.msk.bf16.gmra.mxu0 %vm722_vm0, %v9359_v3 }
 0x143   :  { %14 = vsyncpa [#allocation5], 0  ;;  %9191 = vmatprep.mubr.msk.bf16.mxu0 %vm722_vm0, %v9360_v5  ;;  %v9361_v9 = vld [vmem:[%s12910_s0 + $0x288] sm:$0xff]   ;;  %v9362_v63 = vld [vmem:[%s12910_s0 + $0x290] sm:$0xff]   ;;  %vm9746_vm1 = vmmov 0   ;;  %vm7398_vm3 = vcmask 1041408  }
 0x144   :  { %v10250_v39 = vpop.f32.mrf.mxu0  ;;  %v9363_v55 = vld [vmem:[%s12910_s0 + $0x298] sm:$0xff]   ;;  %v9364_v50 = vld [vmem:[%s12910_s0 + $0x2a0] sm:$0xff]   ;;  %v9365_v47 = vld [vmem:[%s12910_s0 + $0x2a8] sm:$0xff]  }
 0x145   :  { %v9366_v44 = vld [vmem:[%s12910_s0 + $0x2b0] sm:$0xff]   ;;  %v9367_v41 = vld [vmem:[%s12910_s0 + $0x2b8] sm:$0xff]   ;;  %v9368_v38 = vld [vmem:[%s12910_s0 + $0x2c0] sm:$0xff]  }
 0x146   :  { %v10252_v40 = vpop.f32.mrf.mxu0  ;;  %v9378_v31 = vld [vmem:[%s12913_s3 + $0x378] sm:$0xff]   ;;  %v9382_v30 = vld [vmem:[%s12913_s3 + $0x68] sm:$0xff]  }
 0x147   :  { %8442 = vmatprep.subr.bf16.mxu0 %v9378_v31  ;;  %v9383_v31 = vld [vmem:[%s12913_s3 + $0x28] sm:$0xff]  }
 0x148   :  { %v10260_v61 = vpop.f32.mrf.mxu0 }
 0x14a   :  { %v10262_v57 = vpop.f32.mrf.mxu0  ;;  %9192 = vmatmul.mubr.msk.bf16.gmra.mxu0 %vm722_vm0, %v9361_v9 }
 0x14b   :  { %9195 = vmatprep.mubr.msk.bf16.mxu0 %vm722_vm0, %v9362_v63 }
 0x14c   :  { %v10266_v3 = vpop.f32.mrf.mxu0 }
 0x14d   :  { %12965 = vst [vmem:[#allocation38_spill] sm:$0xff] %v10266_v3 }
 0x14e   :  { %v10268_v5 = vpop.f32.mrf.mxu0 }
 0x14f   :  { %12966 = vst [vmem:[#allocation39_spill] sm:$0xff] %v10268_v5 }
 0x150   :  { %v10276_v49 = vpop.f32.mrf.mxu0 }
 0x151   :  { %12967 = vst [vmem:[#allocation40_spill] sm:$0xff] %v10276_v49  ;;  %v9420_v49 = vld [vmem:[%s12913_s3 + $0x478] sm:$0xff]  }
 0x152   :  { %v10278_v48 = vpop.f32.mrf.mxu0  ;;  %9196 = vmatmul.mubr.msk.bf16.gmra.mxu0 %vm722_vm0, %v9363_v55 }
 0x153   :  { %12968 = vst [vmem:[#allocation41_spill] sm:$0xff] %v10278_v48  ;;  %9199 = vmatprep.mubr.msk.bf16.mxu0 %vm722_vm0, %v9364_v50 }
 0x154   :  { %v10282_v63 = vpop.f32.mrf.mxu0 }
 0x155   :  { %12969 = vst [vmem:[#allocation42_spill] sm:$0xff] %v10282_v63 }
 0x156   :  { %v10284_v9 = vpop.f32.mrf.mxu0 }
 0x157   :  { %12970 = vst [vmem:[#allocation43_spill] sm:$0xff] %v10284_v9 }
 0x158   :  { %v10292_v43 = vpop.f32.mrf.mxu0 }
 0x159   :  { %12971 = vst [vmem:[#allocation44_spill] sm:$0xff] %v10292_v43 }
 0x15a   :  { %v10294_v42 = vpop.f32.mrf.mxu0  ;;  %9200 = vmatmul.mubr.msk.bf16.gmra.mxu0 %vm722_vm0, %v9365_v47  ;;  %v9377_v47 = vld [vmem:[%s12913_s3 + $0x38] sm:$0xff]  }
 0x15b   :  { %12972 = vst [vmem:[#allocation45_spill] sm:$0xff] %v10294_v42  ;;  %9203 = vmatprep.mubr.msk.bf16.mxu0 %vm722_vm0, %v9366_v44  ;;  %v9376_v44 = vld [vmem:[%s12913_s3 + $0x78] sm:$0xff]  }
 0x15c   :  { %v10298_v50 = vpop.f32.mrf.mxu0  ;;  %8058 = vmatprep.subr.bf16.mxu1 %v9376_v44  ;;  %v9381_v44 = vld [vmem:[%s12913_s3 + $0x30] sm:$0xff]  }
 0x15d   :  { %12973 = vst [vmem:[#allocation46_spill] sm:$0xff] %v10298_v50  ;;  %8059 = vmatpush3.bf16.msra.mxu1 %v9377_v47 }
 0x15e   :  { %v10300_v55 = vpop.f32.mrf.mxu0 }
 0x15f   :  { %12974 = vst [vmem:[#allocation47_spill] sm:$0xff] %v10300_v55 }
 0x160   :  { %v10308_v37 = vpop.f32.mrf.mxu0 }
 0x161   :  { %12975 = vst [vmem:[#allocation48_spill] sm:$0xff] %v10308_v37  ;;  %v9389_v37 = vld [vmem:[%s12913_s3 + $0x368] sm:$0xff]  }
 0x162   :  { %v10310_v36 = vpop.f32.mrf.mxu0  ;;  %9204 = vmatmul.mubr.msk.bf16.gmra.mxu0 %vm722_vm0, %v9367_v41  ;;  %v9369_v41 = vld [vmem:[%s12910_s0 + $0x2c8] sm:$0xff]  }
 0x163   :  { %12976 = vst [vmem:[#allocation49_spill] sm:$0xff] %v10310_v36  ;;  %9207 = vmatprep.mubr.msk.bf16.mxu0 %vm722_vm0, %v9368_v38  ;;  %v9379_v38 = vld [vmem:[%s12913_s3 + $0x70] sm:$0xff]  }
 0x164   :  { %v10320_v35 = vpop.f32.mrf.mxu0  ;;  %8060 = vmatprep.subr.bf16.mxu1 %v9379_v38 }
 0x165   :  { %12977 = vst [vmem:[#allocation50_spill] sm:$0xff] %v10320_v35  ;;  %v9370_v35 = vld [vmem:[%s12910_s0 + $0x2d0] sm:$0xff]   ;;  %8061 = vmatpush3.bf16.msra.mxu1 %v9381_v44 }
 0x166   :  { %v10322_v32 = vpop.f32.mrf.mxu0  ;;  %8062 = vmatprep.subr.bf16.mxu1 %v9382_v30  ;;  %v9386_v30 = vld [vmem:[%s12913_s3 + $0x20] sm:$0xff]  }
 0x167   :  { %12978 = vst [vmem:[#allocation51_spill] sm:$0xff] %v10322_v32  ;;  %v9380_v32 = vld [vmem:[%s12913_s3 + $0x338] sm:$0xff]  }
 0x168   :  { %v10339_v47 = vpop.f32.mrf.mxu0  ;;  %8443 = vmatpush3.bf16.msra.mxu0 %v9380_v32  ;;  %v9385_v32 = vld [vmem:[%s12913_s3 + $0x370] sm:$0xff]  }
 0x169   :  { %12979 = vst [vmem:[#allocation52_spill] sm:$0xff] %v10339_v47  ;;  %8063 = vmatpush3.bf16.msra.mxu1 %v9383_v31  ;;  %v9387_v31 = vld [vmem:[%s12913_s3 + $0x330] sm:$0xff]   ;;  %8444 = vmatprep.subr.bf16.mxu0 %v9385_v32  ;;  %v9388_v47 = vld [vmem:[%s12913_s3 + $0x58] sm:$0xff]   ;;  %v9391_v32 = vld [vmem:[%s12913_s3 + $0x328] sm:$0xff]  }
 0x16a   :  { %v10344_v36 = vpop.f32.mrf.mxu0  ;;  %9208 = vmatmul.mubr.msk.bf16.gmra.mxu0 %vm722_vm0, %v9369_v41  ;;  %v9371_v41 = vld [vmem:[%s12910_s0 + $0x2d8] sm:$0xff]  }
 0x16b   :  { %12980 = vst [vmem:[#allocation53_spill] sm:$0xff] %v10344_v36  ;;  %9211 = vmatprep.mubr.msk.bf16.mxu0 %vm722_vm0, %v9370_v35  ;;  %v9384_v36 = vld [vmem:[%s12913_s3 + $0x60] sm:$0xff]  }
 0x16c   :  { %v10354_v38 = vpop.f32.mrf.mxu0  ;;  %v9372_v35 = vld [vmem:[%s12910_s0 + $0x2e0] sm:$0xff]   ;;  %8064 = vmatprep.subr.bf16.mxu1 %v9384_v36  ;;  %8445 = vmatpush3.bf16.msra.mxu0 %v9387_v31  ;;  %v9390_v36 = vld [vmem:[%s12913_s3 + $0x18] sm:$0xff]   ;;  %v9392_v31 = vld [vmem:[%s12913_s3 + $0x50] sm:$0xff]  }
 0x16d   :  { %12981 = vst [vmem:[#allocation54_spill] sm:$0xff] %v10354_v38  ;;  %8065 = vmatpush3.bf16.msra.mxu1 %v9386_v30  ;;  %8446 = vmatprep.subr.bf16.mxu0 %v9389_v37  ;;  %v9374_v37 = vld [vmem:[%s12910_s0 + $0x2f0] sm:$0xff]  }
 0x16e   :  { %v10356_v44 = vpop.f32.mrf.mxu0  ;;  %8066 = vmatprep.subr.bf16.mxu1 %v9388_v47  ;;  %v9394_v47 = vld [vmem:[%s12913_s3 + $0x10] sm:$0xff]  }
 0x16f   :  { %12982 = vst [vmem:[#allocation55_spill] sm:$0xff] %v10356_v44 }
 0x170   :  { %v10376_v44 = vpop.f32.mrf.mxu0  ;;  %8447 = vmatpush3.bf16.msra.mxu0 %v9391_v32 }
 0x171   :  { %12983 = vst [vmem:[#allocation56_spill] sm:$0xff] %v10376_v44  ;;  %8067 = vmatpush3.bf16.msra.mxu1 %v9390_v36  ;;  %v9395_v36 = vld [vmem:[%s12913_s3 + $0x320] sm:$0xff]   ;;  %v9397_v44 = vld [vmem:[%s12913_s3 + $0x358] sm:$0xff]  }
 0x172   :  { %v10378_v38 = vpop.f32.mrf.mxu0  ;;  %9212 = vmatmul.mubr.msk.bf16.gmra.mxu0 %vm722_vm0, %v9371_v41  ;;  %8068 = vmatprep.subr.bf16.mxu1 %v9392_v31  ;;  %v9399_v31 = vld [vmem:[%s12913_s3 + $0x318] sm:$0xff]  }
 0x173   :  { %12984 = vst [vmem:[#allocation57_spill] sm:$0xff] %v10378_v38  ;;  %9215 = vmatprep.mubr.msk.bf16.mxu0 %vm722_vm0, %v9372_v35  ;;  %v9373_v35 = vld [vmem:[%s12910_s0 + $0x2e8] sm:$0xff]   ;;  %v9393_v38 = vld [vmem:[%s12913_s3 + $0x360] sm:$0xff]  }
 0x174   :  { %v10394_v30 = vpop.f32.mrf.mxu0  ;;  %8448 = vmatprep.subr.bf16.mxu0 %v9393_v38  ;;  %v9398_v38 = vld [vmem:[%s12913_s3 + $0x8] sm:$0xff]  }
 0x175   :  { %12985 = vst [vmem:[#allocation58_spill] sm:$0xff] %v10394_v30  ;;  %8069 = vmatpush3.bf16.msra.mxu1 %v9394_v47  ;;  %8449 = vmatpush3.bf16.msra.mxu0 %v9395_v36  ;;  %v9396_v30 = vld [vmem:[%s12913_s3 + $0x48] sm:$0xff]   ;;  %v9400_v36 = vld [vmem:[%s12913_s3 + $0x40] sm:$0xff]  }
 0x176   :  { %v10396_v41 = vpop.f32.mrf.mxu0  ;;  %8070 = vmatprep.subr.bf16.mxu1 %v9396_v30  ;;  %8450 = vmatprep.subr.bf16.mxu0 %v9397_v44  ;;  %v9402_v44 = vld [vmem:[%s12913_s3] sm:$0xff]   ;;  %v9403_v30 = vld [vmem:[%s12913_s3 + $0x310] sm:$0xff]  }
 0x177   :  { %12986 = vst [vmem:[#allocation59_spill] sm:$0xff] %v10396_v41 }
 0x178   :  { %v10416_v32 = vpop.f32.mrf.mxu0 }
 0x179   :  { %12987 = vst [vmem:[#allocation60_spill] sm:$0xff] %v10416_v32  ;;  %8071 = vmatpush3.bf16.msra.mxu1 %v9398_v38  ;;  %8451 = vmatpush3.bf16.msra.mxu0 %v9399_v31  ;;  %v9405_v32 = vld [vmem:[%s12913_s3 + $0x308] sm:$0xff]  }
 0x17a   :  { %v10418_v41 = vpop.f32.mrf.mxu0  ;;  %9216 = vmatmul.mubr.msk.bf16.gmra.mxu0 %vm722_vm0, %v9373_v35  ;;  %8072 = vmatprep.subr.bf16.mxu1 %v9400_v36 }
 0x17b   :  { %12988 = vst [vmem:[#allocation61_spill] sm:$0xff] %v10418_v41  ;;  %9219 = vmatprep.mubr.msk.bf16.mxu0 %vm722_vm0, %v9374_v37  ;;  %v9375_v37 = vld [vmem:[%s12910_s0 + $0x2f8] sm:$0xff]   ;;  %v9401_v41 = vld [vmem:[%s12913_s3 + $0x350] sm:$0xff]  }
 0x17c   :  { %v10434_v47 = vpop.f32.mrf.mxu0  ;;  %8452 = vmatprep.subr.bf16.mxu0 %v9401_v41  ;;  %v9406_v41 = vld [vmem:[%s12913_s3 + $0x340] sm:$0xff]  }
 0x17d   :  { %12989 = vst [vmem:[#allocation62_spill] sm:$0xff] %v10434_v47  ;;  %8073 = vmatpush3.bf16.msra.mxu1 %v9402_v44  ;;  %8453 = vmatpush3.bf16.msra.mxu0 %v9403_v30 }
 0x17e   :  { %v10436_v35 = vpop.f32.mrf.mxu0 }
 0x17f   :  { %12990 = vst [vmem:[#allocation63_spill] sm:$0xff] %v10436_v35  ;;  %v9404_v35 = vld [vmem:[%s12913_s3 + $0x348] sm:$0xff]  }
 0x180   :  { %v10453_v38 = vpop.f32.mrf.mxu0  ;;  %8454 = vmatprep.subr.bf16.mxu0 %v9404_v35 }
 0x181   :  { %12991 = vst [vmem:[#allocation64_spill] sm:$0xff] %v10453_v38  ;;  %8455 = vmatpush3.bf16.msra.mxu0 %v9405_v32 }
 0x182   :  { %v10455_v31 = vpop.f32.mrf.mxu0  ;;  %9220 = vmatmul.mubr.msk.bf16.gmra.mxu0 %vm722_vm0, %v9375_v37  ;;  %v9407_v37 = vld [vmem:[%s12913_s3 + $0x300] sm:$0xff]   ;;  %8456 = vmatprep.subr.bf16.mxu0 %v9406_v41  ;;  %v9408_v41 = vld [vmem:[%s12913_s3 + $0xf8] sm:$0xff]  }
 0x183   :  { %12992 = vst [vmem:[#allocation65_spill] sm:$0xff] %v10455_v31  ;;  %8122 = vmatprep.subr.bf16.mxu1 %v9408_v41 }
 0x184   :  { %v10461_v47 = vpop.f32.mrf.mxu0 }
 0x185   :  { %12993 = vst [vmem:[#allocation66_spill] sm:$0xff] %v10461_v47  ;;  %8457 = vmatpush3.bf16.msra.mxu0 %v9407_v37 }
 0x186   :  { %v10466_v38 = vpop.f32.mrf.mxu0  ;;  %8570 = vmatprep.subr.bf16.mxu0 %v9420_v49 }
 0x187   :  { %12994 = vst [vmem:[#allocation67_spill] sm:$0xff] %v10466_v38 }
 0x188   :  { %v10471_v36 = vpop.f32.mrf.mxu0 }
 0x189   :  { %12995 = vst [vmem:[#allocation68_spill] sm:$0xff] %v10471_v36 }
 0x18a   :  { %v9129_v44 = vpop.f32.mrf.mxu0 }
 0x18c   :  { %v10476_v30 = vpop.f32.mrf.mxu0 }
 0x18e   :  { %v10478_v47 = vpop.f32.mrf.mxu0 }
 0x190   :  { %v10480_v35 = vpop.f32.mrf.mxu0 }
 0x192   :  { %v10482_v32 = vpop.f32.mrf.mxu0 }
 0x194   :  { %v10484_v38 = vpop.f32.mrf.mxu0 }
 0x196   :  { %v10486_v31 = vpop.f32.mrf.mxu0 }
 0x198   :  { %v10488_v36 = vpop.f32.mrf.mxu0 }
 0x19a   :  { %v10490_v28 = vpop.f32.mrf.mxu0 }
 0x19c   :  { %v10495_v37 = vpop.f32.mrf.mxu0 }
 0x19e   :  { %v10497_v55 = vpop.f32.mrf.mxu0 }
 0x1a0   :  { %v10499_v26 = vpop.f32.mrf.mxu0 }
 0x1a2   :  { %v10501_v50 = vpop.f32.mrf.mxu0 }
 0x1a4   :  { %v10503_v25 = vpop.f32.mrf.mxu0 }
 0x1a6   :  { %v10505_v42 = vpop.f32.mrf.mxu0 }
 0x1a8   :  { %v10507_v24 = vpop.f32.mrf.mxu0 }
 0x1aa   :  { %v10509_v43 = vpop.f32.mrf.mxu0 }
 0x1ac   :  { %v10511_v22 = vpop.f32.mrf.mxu0 }
 0x1ad   :  { %12996 = vst [vmem:[#allocation69_spill] sm:$0xff] %v10511_v22 }
 0x1ae   :  { %v10513_v9 = vpop.f32.mrf.mxu0 }
 0x1af   :  { %12997 = vst [vmem:[#allocation70_spill] sm:$0xff] %v10513_v9 }
 0x1b0   :  { %v10515_v20 = vpop.f32.mrf.mxu0 }
 0x1b1   :  { %12998 = vst [vmem:[#allocation71_spill] sm:$0xff] %v10515_v20 }
 0x1b2   :  { %v10517_v41 = vpop.f32.mrf.mxu0 }
 0x1b3   :  { %12999 = vst [vmem:[#allocation72_spill] sm:$0xff] %v10517_v41 }
 0x1b4   :  { %v10519_v63 = vpop.f32.mrf.mxu0 }
 0x1b5   :  { %13000 = vst [vmem:[#allocation73_spill] sm:$0xff] %v10519_v63 }
 0x1b6   :  { %v10521_v19 = vpop.f32.mrf.mxu0 }
 0x1b7   :  { %13001 = vst [vmem:[#allocation74_spill] sm:$0xff] %v10521_v19 }
 0x1b8   :  { %v10523_v48 = vpop.f32.mrf.mxu0 }
 0x1b9   :  { %13002 = vst [vmem:[#allocation75_spill] sm:$0xff] %v10523_v48 }
 0x1ba   :  { %v10525_v18 = vpop.f32.mrf.mxu0 }
 0x1bb   :  { %13003 = vst [vmem:[#allocation76_spill] sm:$0xff] %v10525_v18 }
 0x1bc   :  { %v10530_v16 = vpop.f32.mrf.mxu0 }
 0x1bd   :  { %13004 = vst [vmem:[#allocation77_spill] sm:$0xff] %v10530_v16 }
 0x1be   :  { %v10532_v9 = vpop.f32.mrf.mxu0 }
 0x1bf   :  { %13005 = vst [vmem:[#allocation78_spill] sm:$0xff] %v10532_v9 }
 0x1c0   :  { %v10534_v20 = vpop.f32.mrf.mxu0 }
 0x1c1   :  { %13006 = vst [vmem:[#allocation79_spill] sm:$0xff] %v10534_v20 }
 0x1c2   :  { %v10536_v41 = vpop.f32.mrf.mxu0 }
 0x1c3   :  { %13007 = vst [vmem:[#allocation80_spill] sm:$0xff] %v10536_v41 }
 0x1c4   :  { %v10538_v63 = vpop.f32.mrf.mxu0 }
 0x1c5   :  { %13008 = vst [vmem:[#allocation81_spill] sm:$0xff] %v10538_v63 }
 0x1c6   :  { %v10540_v19 = vpop.f32.mrf.mxu0 }
 0x1c7   :  { %13009 = vst [vmem:[#allocation82_spill] sm:$0xff] %v10540_v19 }
 0x1c8   :  { %v10542_v48 = vpop.f32.mrf.mxu0 }
 0x1c9   :  { %13010 = vst [vmem:[#allocation83_spill] sm:$0xff] %v10542_v48 }
 0x1ca   :  { %v10544_v18 = vpop.f32.mrf.mxu0 }
 0x1cb   :  { %13011 = vst [vmem:[#allocation84_spill] sm:$0xff] %v10544_v18 }
 0x1cc   :  { %v10546_v5 = vpop.f32.mrf.mxu0 }
 0x1cd   :  { %13012 = vst [vmem:[#allocation85_spill] sm:$0xff] %v10546_v5 }
 0x1ce   :  { %v10548_v22 = vpop.f32.mrf.mxu0 }
 0x1cf   :  { %13013 = vst [vmem:[#allocation86_spill] sm:$0xff] %v10548_v22 }
 0x1d0   :  { %v10550_v16 = vpop.f32.mrf.mxu0 }
 0x1d1   :  { %13014 = vst [vmem:[#allocation87_spill] sm:$0xff] %v10550_v16 }
 0x1d2   :  { %v10552_v49 = vpop.f32.mrf.mxu0 }
 0x1d3   :  { %13015 = vst [vmem:[#allocation88_spill] sm:$0xff] %v10552_v49 }
 0x1d4   :  { %v10554_v9 = vpop.f32.mrf.mxu0 }
 0x1d5   :  { %13016 = vst [vmem:[#allocation89_spill] sm:$0xff] %v10554_v9 }
 0x1d6   :  { %v10556_v20 = vpop.f32.mrf.mxu0 }
 0x1d7   :  { %13017 = vst [vmem:[#allocation90_spill] sm:$0xff] %v10556_v20 }
 0x1d8   :  { %v10558_v41 = vpop.f32.mrf.mxu0 }
 0x1d9   :  { %13018 = vst [vmem:[#allocation91_spill] sm:$0xff] %v10558_v41  ;;  %v1814_v41 = vmax.f32 %v10006_v53, %v10198_v15 }
 0x1da   :  { %v10560_v63 = vpop.f32.mrf.mxu0 }
 0x1db   :  { %13019 = vst [vmem:[#allocation92_spill] sm:$0xff] %v10560_v63 }
 0x1dc   :  { %v10562_v19 = vpop.f32.mrf.mxu0 }
 0x1dd   :  { %13020 = vst [vmem:[#allocation93_spill] sm:$0xff] %v10562_v19  ;;  %v10581_v19 = vld [vmem:[%s12912_s2] ss:$0 sm:$0xff] }
 0x1de   :  { %v10564_v48 = vpop.f32.mrf.mxu0 }
 0x1df   :  { %13021 = vst [vmem:[#allocation94_spill] sm:$0xff] %v10564_v48 }
 0x1e0   :  { %v10566_v18 = vpop.f32.mrf.mxu0 }
 0x1e1   :  { %13022 = vst [vmem:[#allocation95_spill] sm:$0xff] %v10566_v18 }
 0x1e2   :  { %v10568_v5 = vpop.f32.mrf.mxu0 }
 0x1e3   :  { %13023 = vst [vmem:[#allocation96_spill] sm:$0xff] %v10568_v5  ;;  %v1812_v5 = vmax.f32 %v10010_v54, %v10202_v17 }
 0x1e4   :  { %v10570_v22 = vpop.f32.mrf.mxu0 }
 0x1e5   :  { %13024 = vst [vmem:[#allocation97_spill] sm:$0xff] %v10570_v22 }
 0x1e6   :  { %v10572_v16 = vpop.f32.mrf.mxu0 }
 0x1e7   :  { %13025 = vst [vmem:[#allocation98_spill] sm:$0xff] %v10572_v16 }
 0x1e8   :  { %v10574_v49 = vpop.f32.mrf.mxu0 }
 0x1e9   :  { %13026 = vst [vmem:[#allocation99_spill] sm:$0xff] %v10574_v49  ;;  %v1815_v49 = vmax.f32 %v10015_v56, %v10210_v27 }
 0x1ea   :  { %v9177_v9 = vpop.f32.mrf.mxu0 }
 0x1eb   :  { %v1862_v20 = vmax.f32 %v9129_v44, %v9177_v9  ;;  %v1813_v9 = vmax.f32 %v10020_v58, %v10212_v29  ;;  %v1816_v58 = vmax.f32 %v10026_v60, %v10218_v34  ;;  %v1817_v34 = vmax.f32 %v10036_v0, %v10228_v46 }
 0x1ec   :  { %v1621_v48 = vpop.f32.mrf.mxu0  ;;  %v1820_v0 = vmax.f32 %v10042_v2, %v10234_v52  ;;  %v1821_v52 = vmax.f32 %v10052_v6, %v10244_v23 }
 0x1ed   :  { %v1910_v18 = vmax.f32 %v1814_v41, %v1862_v20  ;;  %v1860_v22 = vmax.f32 %v10476_v30, %v1621_v48  ;;  %v1818_v48 = vmax.f32 %v10022_v59, %v10214_v33  ;;  %v1819_v59 = vmax.f32 %v10031_v62, %v10226_v45 }
 0x1ee   :  { %v9178_v16 = vpop.f32.mrf.mxu0 }
 0x1ef   :  { %v1965_v63 = vadd.f32 %v10581_v19, %v1910_v18  ;;  %v1908_v53 = vmax.f32 %v1812_v5, %v1860_v22  ;;  %v1863_v15 = vmax.f32 %v10478_v47, %v9178_v16 }
 0x1f0   :  { %v1624_v44 = vpop.f32.mrf.mxu0 }
 0x1f1   :  { %v2013_v14 = vmax.f32 %v1965_v63, 0.0  ;;  %v1963_v3 = vadd.f32 %v10581_v19, %v1908_v53  ;;  %v1911_v54 = vmax.f32 %v1815_v49, %v1863_v15  ;;  %v1861_v20 = vmax.f32 %v10480_v35, %v1624_v44 }
 0x1f2   :  { %v9181_v17 = vpop.f32.mrf.mxu0 }
 0x1f3   :  { %2061 = vst [vmem:[#allocation2 + $0x10] sm:$0xff] %v2013_v14  ;;  %v2011_v56 = vmax.f32 %v1963_v3, 0.0  ;;  %v1966_v18 = vadd.f32 %v10581_v19, %v1911_v54  ;;  %v1909_v22 = vmax.f32 %v1813_v9, %v1861_v20  ;;  %v1866_v16 = vmax.f32 %v10482_v32, %v9181_v17 }
 0x1f4   :  { %v1637_v27 = vpop.f32.mrf.mxu0 }
 0x1f5   :  { %2059 = vst [vmem:[#allocation2] sm:$0xff] %v2011_v56  ;;  %v2014_v29 = vmax.f32 %v1966_v18, 0.0  ;;  %v1964_v5 = vadd.f32 %v10581_v19, %v1909_v22  ;;  %v1914_v63 = vmax.f32 %v1818_v48, %v1866_v16  ;;  %v1864_v47 = vmax.f32 %v10484_v38, %v1637_v27 }
 0x1f6   :  { %v9182_v33 = vpop.f32.mrf.mxu0  ;;  %v2123_v3 = vpack.c.bf16 %v2013_v14, %v2011_v56  ;;  %v1822_v14 = vmax.f32 %v10038_v1, %v10230_v51  ;;  %v1823_v1 = vmax.f32 %v10047_v4, %v10242_v21 }
 0x1f7   :  { %2062 = vst [vmem:[#allocation2 + $0x18] sm:$0xff] %v2014_v29  ;;  %v2012_v30 = vmax.f32 %v1964_v5, 0.0  ;;  %v1969_v35 = vadd.f32 %v10581_v19, %v1914_v63  ;;  %v1912_v32 = vmax.f32 %v1816_v58, %v1864_v47  ;;  %v1867_v60 = vmax.f32 %v10486_v31, %v9182_v33 }
 0x1f8   :  { %v1640_v41 = vpop.f32.mrf.mxu0  ;;  %v1826_v29 = vmax.f32 %v10054_v7, %v10246_v11  ;;  %v1824_v7 = vmax.f32 %v10058_v8, %v10250_v39  ;;  %v9411_v8 = vld [vmem:[%s12913_s3 + $0xb0] sm:$0xff]  }
 0x1f9   :  { %2060 = vst [vmem:[#allocation2 + $0x8] sm:$0xff] %v2012_v30  ;;  %v2017_v49 = vmax.f32 %v1969_v35, 0.0  ;;  %v1967_v38 = vadd.f32 %v10581_v19, %v1912_v32  ;;  %v1915_v53 = vmax.f32 %v1819_v59, %v1867_v60  ;;  %v1865_v62 = vmax.f32 %v10488_v36, %v1640_v41 }
 0x1fa   :  { %v9185_v45 = vpop.f32.mrf.mxu0 }
 0x1fb   :  { %2065 = vst [vmem:[#allocation2 + $0x30] sm:$0xff] %v2017_v49  ;;  %v2015_v15 = vmax.f32 %v1967_v38, 0.0  ;;  %v1970_v9 = vadd.f32 %v10581_v19, %v1915_v53  ;;  %v1913_v31 = vmax.f32 %v1817_v34, %v1865_v62  ;;  %v1870_v44 = vmax.f32 %v10490_v28, %v9185_v45 }
 0x1fc   :  { %v1653_v46 = vpop.f32.mrf.mxu0 }
 0x1fd   :  { %2063 = vst [vmem:[#allocation2 + $0x20] sm:$0xff] %v2015_v15  ;;  %v2018_v54 = vmax.f32 %v1970_v9, 0.0  ;;  %v1968_v20 = vadd.f32 %v10581_v19, %v1913_v31  ;;  %v1918_v36 = vmax.f32 %v1822_v14, %v1870_v44  ;;  %v1868_v48 = vmax.f32 %v10495_v37, %v1653_v46 }
 0x1fe   :  { %v9186_v51 = vpop.f32.mrf.mxu0  ;;  %v10620_v17 = vpack.c.bf16 %v2017_v49, %v2015_v15  ;;  %v2132_v27 = vld [vmem:[#allocation2 + $0x11] sm:$0xff]  ;;  %v1830_v46 = vmax.f32 %v10070_v13, %v10262_v57 }
 0x1ff   :  { %2066 = vst [vmem:[#allocation2 + $0x38] sm:$0xff] %v2018_v54  ;;  %v2016_v56 = vmax.f32 %v1968_v20, 0.0  ;;  %v1973_v28 = vadd.f32 %v10581_v19, %v1918_v36  ;;  %v1916_v18 = vmax.f32 %v1820_v0, %v1868_v48  ;;  %v1871_v2 = vmax.f32 %v10497_v55, %v9186_v51  ;;  %v9409_v55 = vld [vmem:[%s12913_s3 + $0xb8] sm:$0xff]   ;;  %v9414_v51 = vld [vmem:[%s12913_s3 + $0xe0] sm:$0xff]  }
 0x200   :  { %v1656_v22 = vpop.f32.mrf.mxu0  ;;  %v2131_v16 = vld [vmem:[#allocation2 + $0x1] sm:$0xff]  ;;  %v9421_v36 = vld [vmem:[%s12913_s3 + $0x438] sm:$0xff]  }
 0x201   :  { %2064 = vst [vmem:[#allocation2 + $0x28] sm:$0xff] %v2016_v56  ;;  %v2021_v37 = vmax.f32 %v1973_v28, 0.0  ;;  %v1971_v58 = vadd.f32 %v10581_v19, %v1916_v18  ;;  %v1919_v4 = vmax.f32 %v1823_v1, %v1871_v2  ;;  %v1869_v21 = vmax.f32 %v10499_v26, %v1656_v22  ;;  %v9410_v26 = vld [vmem:[%s12913_s3 + $0xf0] sm:$0xff]   ;;  %v13029_v18 = vld [vmem:[#allocation38_spill] sm:$0xff]  ;;  %v13030_v2 = vld [vmem:[#allocation7_spill] sm:$0xff] }
 0x202   :  { %v9189_v5 = vpop.f32.mrf.mxu0  ;;  %v2147_v63 = vpack.c.bf16 %v2132_v27, %v2131_v16  ;;  %v9422_v56 = vld [vmem:[%s12913_s3 + $0x470] sm:$0xff]  }
 0x203   :  { %2069 = vst [vmem:[#allocation2 + $0x50] sm:$0xff] %v2021_v37  ;;  %v2019_v6 = vmax.f32 %v1971_v58, 0.0  ;;  %v1974_v23 = vadd.f32 %v10581_v19, %v1919_v4  ;;  %v1917_v47 = vmax.f32 %v1821_v52, %v1869_v21  ;;  %v1874_v59 = vmax.f32 %v10501_v50, %v9189_v5  ;;  %v10686_v28 = vld [vmem:[#allocation2 + $0x14] sm:$0xff]  ;;  %v13034_v5 = vld [vmem:[#allocation8_spill] sm:$0xff] }
 0x204   :  { %4350 = vmatprep.mubr.bf16.mxu1 %v2147_v63  ;;  %v1669_v11 = vpop.f32.mrf.mxu0  ;;  %v1827_v50 = vmax.f32 %v10063_v10, %v10252_v40  ;;  %v9412_v10 = vld [vmem:[%s12913_s3 + $0xe8] sm:$0xff]   ;;  %v1825_v40 = vmax.f32 %v10068_v12, %v10260_v61  ;;  %13028 = vst [vmem:[#allocation101_spill] sm:$0xff] %v10686_v28  ;;  %v1828_v52 = vmax.f32 %v13030_v2, %v13029_v18  ;;  %v13031_v4 = vld [vmem:[#allocation69_spill] sm:$0xff]  ;;  %v9428_v2 = vld [vmem:[%s12913_s3 + $0x460] sm:$0xff]  }
 0x205   :  { %2067 = vst [vmem:[#allocation2 + $0x40] sm:$0xff] %v2019_v6  ;;  %v2022_v33 = vmax.f32 %v1974_v23, 0.0  ;;  %v1972_v30 = vadd.f32 %v10581_v19, %v1917_v47  ;;  %v1922_v35 = vmax.f32 %v1826_v29, %v1874_v59  ;;  %v1872_v32 = vmax.f32 %v10503_v25, %v1669_v11  ;;  %4351 = vmatmul.mubr.bf16.vlgmr.msra.gmra.mxu1 %v2123_v3  ;;  %v13033_v29 = vld [vmem:[#allocation39_spill] sm:$0xff]  ;;  %v9418_v18 = vld [vmem:[%s12913_s3 + $0xd0] sm:$0xff]  }
 0x206   :  { %v9190_v60 = vpop.f32.mrf.mxu0  ;;  %v10644_v34 = vpack.c.bf16 %v2021_v37, %v2019_v6  ;;  %8123 = vmatpush3.bf16.msra.mxu1 %v9409_v55  ;;  %v10651_v25 = vld [vmem:[#allocation2 + $0x31] sm:$0xff]  ;;  %v1831_v63 = vmax.f32 %v13034_v5, %v13033_v29  ;;  %v9415_v23 = vld [vmem:[%s12913_s3 + $0xa0] sm:$0xff]  }
 0x207   :  { %2070 = vst [vmem:[#allocation2 + $0x58] sm:$0xff] %v2022_v33  ;;  %v2020_v39 = vmax.f32 %v1972_v30, 0.0  ;;  %v1977_v41 = vadd.f32 %v10581_v19, %v1922_v35  ;;  %v1920_v49 = vmax.f32 %v1824_v7, %v1872_v32  ;;  %v1875_v38 = vmax.f32 %v10505_v42, %v9190_v60  ;;  %8124 = vmatprep.subr.bf16.mxu1 %v9410_v26  ;;  %v2422_v31 = vld [vmem:[#allocation2 + $0x33] sm:$0xff]  ;;  %v9426_v30 = vld [vmem:[%s12913_s3 + $0x468] sm:$0xff]  }
 0x208   :  { %v1672_v3 = vpop.f32.mrf.mxu0  ;;  %v2133_v53 = vld [vmem:[#allocation2 + $0x21] sm:$0xff]  ;;  %v10660_v44 = vld [vmem:[#allocation2 + $0x32] sm:$0xff]  ;;  %v13037_v32 = vld [vmem:[#allocation40_spill] sm:$0xff] }
 0x209   :  { %v2421_v62 = vld [vmem:[#allocation2 + $0x23] sm:$0xff]  ;;  %2068 = vst [vmem:[#allocation2 + $0x48] sm:$0xff] %v2020_v39  ;;  %v2025_v45 = vmax.f32 %v1977_v41, 0.0  ;;  %v1975_v15 = vadd.f32 %v10581_v19, %v1920_v49  ;;  %v1923_v9 = vmax.f32 %v1827_v50, %v1875_v38  ;;  %v1873_v42 = vmax.f32 %v10507_v24, %v1672_v3  ;;  %v13035_v7 = vld [vmem:[#allocation70_spill] sm:$0xff]  ;;  %v10717_v35 = vld [vmem:[#allocation2 + $0x31] sm:$0xff] }
 0x20a   :  { %v2397_v14 = vld [vmem:[#allocation2 + $0x22] sm:$0xff]  ;;  %v9193_v12 = vpop.f32.mrf.mxu0  ;;  %v2148_v61 = vpack.c.bf16 %v10651_v25, %v2133_v53  ;;  %v10667_v54 = vpack.c.bf16 %v2422_v31, %v2421_v62  ;;  %8125 = vmatpush3.bf16.msra.mxu1 %v9411_v8  ;;  %v9416_v33 = vld [vmem:[%s12913_s3 + $0xd8] sm:$0xff]   ;;  %13036 = vst [vmem:[#allocation7_spill] sm:$0xff] %v10717_v35 }
 0x20b   :  { %v10662_v0 = vld [vmem:[#allocation2 + $0x24] sm:$0xff]  ;;  %v10670_v20 = vpack.c.bf16 %v10660_v44, %v2397_v14  ;;  %2073 = vst [vmem:[#allocation2 + $0x70] sm:$0xff] %v2025_v45  ;;  %v2023_v48 = vmax.f32 %v1975_v15, 0.0  ;;  %v1978_v13 = vadd.f32 %v10581_v19, %v1923_v9  ;;  %v1921_v57 = vmax.f32 %v1825_v40, %v1873_v42  ;;  %8126 = vmatprep.subr.bf16.mxu1 %v9412_v10  ;;  %v13038_v50 = vld [vmem:[#allocation9_spill] sm:$0xff]  ;;  %v13040_v39 = vld [vmem:[#allocation10_spill] sm:$0xff] }
 0x20c   :  { %13027 = vst [vmem:[#allocation100_spill] sm:$0xff] %v10662_v0  ;;  %v9413_v24 = vld [vmem:[%s12913_s3 + $0xa8] sm:$0xff]   ;;  %v1878_v1 = vmax.f32 %v10509_v43, %v9193_v12  ;;  %4358 = vmatprep.mubr.bf16.mxu1 %v2148_v61  ;;  %4932 = vmatprep.mubr.bf16.mxu0 %v10667_v54  ;;  %v1685_v22 = vpop.f32.mrf.mxu0  ;;  %v1829_v60 = vmax.f32 %v13038_v50, %v13037_v32  ;;  %v13039_v8 = vld [vmem:[#allocation41_spill] sm:$0xff]  ;;  %v13049_v32 = vld [vmem:[#allocation74_spill] sm:$0xff] }
 0x20d   :  { %2071 = vst [vmem:[#allocation2 + $0x60] sm:$0xff] %v2023_v48  ;;  %v2026_v16 = vmax.f32 %v1978_v13, 0.0  ;;  %v1976_v37 = vadd.f32 %v10581_v19, %v1921_v57  ;;  %v1876_v21 = vmax.f32 %v13031_v4, %v1685_v22  ;;  %4359 = vmatmul.mubr.bf16.gmra.mxu1 %v10620_v17  ;;  %4933 = vmatmul.mubr.bf16.vlgmr.msra.gmra.mxu0 %v10670_v20  ;;  %v10697_v27 = vld [vmem:[#allocation2 + $0x21] sm:$0xff]  ;;  %v9423_v17 = vld [vmem:[%s12913_s3 + $0x430] sm:$0xff]  }
 0x20e   :  { %v1926_v58 = vmax.f32 %v1830_v46, %v1878_v1  ;;  %13032 = vst [vmem:[#allocation38_spill] sm:$0xff] %v10697_v27  ;;  %v9194_v55 = vpop.f32.mrf.mxu0  ;;  %v10701_v6 = vpack.c.bf16 %v2025_v45, %v2023_v48  ;;  %8127 = vmatpush3.bf16.msra.mxu1 %v9413_v24  ;;  %8571 = vmatpush3.bf16.msra.mxu0 %v9421_v36  ;;  %v13041_v45 = vld [vmem:[#allocation71_spill] sm:$0xff]  ;;  %v10731_v9 = vld [vmem:[#allocation2 + $0x51] sm:$0xff] }
 0x20f   :  { %2074 = vst [vmem:[#allocation2 + $0x78] sm:$0xff] %v2026_v16  ;;  %v2024_v47 = vmax.f32 %v1976_v37, 0.0  ;;  %v1924_v26 = vmax.f32 %v1828_v52, %v1876_v21  ;;  %v1879_v11 = vmax.f32 %v13035_v7, %v9194_v55  ;;  %8128 = vmatprep.subr.bf16.mxu1 %v9414_v51  ;;  %8572 = vmatprep.subr.bf16.mxu0 %v9422_v56  ;;  %v2424_v42 = vld [vmem:[#allocation2 + $0x53] sm:$0xff]  ;;  %v9427_v48 = vld [vmem:[%s12913_s3 + $0x428] sm:$0xff]  }
 0x210   :  { %v1981_v59 = vadd.f32 %v10581_v19, %v1926_v58  ;;  %v1834_v41 = vmax.f32 %v13040_v39, %v13039_v8  ;;  %v1688_v49 = vpop.f32.mrf.mxu0  ;;  %v10723_v38 = vld [vmem:[#allocation2 + $0x41] sm:$0xff]  ;;  %v10733_v31 = vld [vmem:[#allocation2 + $0x52] sm:$0xff]  ;;  %v13042_v51 = vld [vmem:[#allocation72_spill] sm:$0xff] }
 0x211   :  { %v2423_v10 = vld [vmem:[#allocation2 + $0x43] sm:$0xff]  ;;  %2072 = vst [vmem:[#allocation2 + $0x68] sm:$0xff] %v2024_v47  ;;  %v1979_v62 = vadd.f32 %v10581_v19, %v1924_v26  ;;  %v1927_v14 = vmax.f32 %v1831_v63, %v1879_v11  ;;  %v1877_v15 = vmax.f32 %v13041_v45, %v1688_v49  ;;  %v2149_v12 = vpack.c.bf16 %v10731_v9, %v10723_v38  ;;  %v9417_v36 = vld [vmem:[%s12913_s3 + $0x98] sm:$0xff]   ;;  %v9419_v7 = vld [vmem:[%s12913_s3 + $0x90] sm:$0xff]  }
 0x212   :  { %v10725_v40 = vld [vmem:[#allocation2 + $0x42] sm:$0xff]  ;;  %v2029_v53 = vmax.f32 %v1981_v59, 0.0  ;;  %v9197_v46 = vpop.f32.mrf.mxu0  ;;  %v10737_v61 = vpack.c.bf16 %v2424_v42, %v2423_v10  ;;  %8129 = vmatpush3.bf16.msra.mxu1 %v9415_v23  ;;  %8573 = vmatpush3.bf16.msra.mxu0 %v9423_v17  ;;  %v13043_v52 = vld [vmem:[#allocation42_spill] sm:$0xff]  ;;  %v13045_v63 = vld [vmem:[#allocation73_spill] sm:$0xff] }
 0x213   :  { %v10741_v24 = vpack.c.bf16 %v10733_v31, %v10725_v40  ;;  %v2027_v13 = vmax.f32 %v1979_v62, 0.0  ;;  %v1982_v57 = vadd.f32 %v10581_v19, %v1927_v14  ;;  %v1925_v1 = vmax.f32 %v1829_v60, %v1877_v15  ;;  %8130 = vmatprep.subr.bf16.mxu1 %v9416_v33  ;;  %8574 = vmatprep.subr.bf16.mxu0 %v9426_v30  ;;  %v13044_v22 = vld [vmem:[#allocation11_spill] sm:$0xff]  ;;  %v13048_v47 = vld [vmem:[#allocation12_spill] sm:$0xff]  ;;  %v9432_v8 = vld [vmem:[%s12913_s3 + $0x458] sm:$0xff]  }
 0x214   :  { %2077 = vst [vmem:[#allocation2 + $0x90] sm:$0xff] %v2029_v53  ;;  %v1882_v56 = vmax.f32 %v13042_v51, %v9197_v46  ;;  %v1832_v16 = vmax.f32 %v13044_v22, %v13043_v52  ;;  %4366 = vmatprep.mubr.bf16.mxu1 %v2149_v12  ;;  %4940 = vmatprep.mubr.bf16.mxu0 %v10737_v61  ;;  %v1701_v37 = vpop.f32.mrf.mxu0  ;;  %v10768_v23 = vld [vmem:[#allocation2 + $0x44] sm:$0xff]  ;;  %v10786_v39 = vld [vmem:[#allocation2 + $0x34] sm:$0xff] }
 0x215   :  { %2075 = vst [vmem:[#allocation2 + $0x80] sm:$0xff] %v2027_v13  ;;  %v2030_v21 = vmax.f32 %v1982_v57, 0.0  ;;  %v1980_v29 = vadd.f32 %v10581_v19, %v1925_v1  ;;  %v1880_v55 = vmax.f32 %v13045_v63, %v1701_v37  ;;  %4367 = vmatmul.mubr.bf16.gmra.mxu1 %v10644_v34  ;;  %4941 = vmatmul.mubr.bf16.gmra.mxu0 %v10741_v24  ;;  %13046 = vst [vmem:[#allocation69_spill] sm:$0xff] %v10768_v23  ;;  %v13047_v17 = vld [vmem:[#allocation43_spill] sm:$0xff]  ;;  %v13051_v49 = vld [vmem:[#allocation13_spill] sm:$0xff] }
 0x216   :  { %v1930_v5 = vmax.f32 %v1834_v41, %v1882_v56  ;;  %v1835_v59 = vmax.f32 %v13048_v47, %v13047_v17  ;;  %v9198_v26 = vpop.f32.mrf.mxu0  ;;  %8131 = vmatpush3.bf16.msra.mxu1 %v9417_v36  ;;  %8575 = vmatpush3.bf16.msra.mxu0 %v9427_v48  ;;  %v9429_v11 = vld [vmem:[%s12913_s3 + $0x420] sm:$0xff]   ;;  %v9424_v60 = vld [vmem:[%s12913_s3 + $0xc8] sm:$0xff]   ;;  %v13052_v53 = vld [vmem:[#allocation45_spill] sm:$0xff] }
 0x217   :  { %2078 = vst [vmem:[#allocation2 + $0x98] sm:$0xff] %v2030_v21  ;;  %v2028_v34 = vmax.f32 %v1980_v29, 0.0  ;;  %v1928_v30 = vmax.f32 %v1832_v16, %v1880_v55  ;;  %v1883_v50 = vmax.f32 %v13049_v32, %v9198_v26  ;;  %8132 = vmatprep.subr.bf16.mxu1 %v9418_v18  ;;  %8576 = vmatprep.subr.bf16.mxu0 %v9428_v2  ;;  %v13050_v41 = vld [vmem:[#allocation44_spill] sm:$0xff]  ;;  %v13053_v62 = vld [vmem:[#allocation14_spill] sm:$0xff]  ;;  %v13054_v57 = vld [vmem:[#allocation75_spill] sm:$0xff] }
 0x218   :  { %v1985_v33 = vadd.f32 %v10581_v19, %v1930_v5  ;;  %v1833_v10 = vmax.f32 %v13051_v49, %v13050_v41  ;;  %v1838_v14 = vmax.f32 %v13053_v62, %v13052_v53  ;;  %v1704_v45 = vpop.f32.mrf.mxu0  ;;  %v10792_v15 = vld [vmem:[#allocation2 + $0x61] sm:$0xff]  ;;  %v10800_v51 = vld [vmem:[#allocation2 + $0x71] sm:$0xff] }
 0x219   :  { %v2425_v42 = vld [vmem:[#allocation2 + $0x63] sm:$0xff]  ;;  %2076 = vst [vmem:[#allocation2 + $0x88] sm:$0xff] %v2028_v34  ;;  %v1983_v48 = vadd.f32 %v10581_v19, %v1928_v30  ;;  %v1931_v13 = vmax.f32 %v1835_v59, %v1883_v50  ;;  %v1881_v1 = vmax.f32 %v13054_v57, %v1704_v45  ;;  %v2426_v56 = vld [vmem:[#allocation2 + $0x73] sm:$0xff]  ;;  %v2150_v52 = vpack.c.bf16 %v10800_v51, %v10792_v15 }
 0x21a   :  { %v10794_v46 = vld [vmem:[#allocation2 + $0x62] sm:$0xff]  ;;  %v2033_v36 = vmax.f32 %v1985_v33, 0.0  ;;  %v10802_v18 = vld [vmem:[#allocation2 + $0x72] sm:$0xff]  ;;  %v9201_v2 = vpop.f32.mrf.mxu0  ;;  %v10806_v22 = vpack.c.bf16 %v2426_v56, %v2425_v42  ;;  %8133 = vmatpush3.bf16.msra.mxu1 %v9419_v7  ;;  %8577 = vmatpush3.bf16.msra.mxu0 %v9429_v11  ;;  %v13055_v55 = vld [vmem:[#allocation76_spill] sm:$0xff] }
 0x21b   :  { %v10810_v16 = vpack.c.bf16 %v10802_v18, %v10794_v46  ;;  %v9425_v37 = vld [vmem:[%s12913_s3 + $0x88] sm:$0xff]   ;;  %v9433_v21 = vld [vmem:[%s12913_s3 + $0x418] sm:$0xff]   ;;  %v2031_v29 = vmax.f32 %v1983_v48, 0.0  ;;  %v1986_v5 = vadd.f32 %v10581_v19, %v1931_v13  ;;  %v1929_v63 = vmax.f32 %v1833_v10, %v1881_v1  ;;  %8134 = vmatprep.subr.bf16.mxu1 %v9424_v60  ;;  %v9430_v47 = vld [vmem:[%s12913_s3 + $0xc0] sm:$0xff]   ;;  %8578 = vmatprep.subr.bf16.mxu0 %v9432_v8 }
 0x21c   :  { %2081 = vst [vmem:[#allocation2 + $0xb0] sm:$0xff] %v2033_v36  ;;  %v1886_v17 = vmax.f32 %v13055_v55, %v9201_v2  ;;  %v9434_v59 = vld [vmem:[%s12913_s3 + $0x450] sm:$0xff]   ;;  %v13056_v26 = vld [vmem:[#allocation46_spill] sm:$0xff]  ;;  %v13057_v7 = vld [vmem:[#allocation15_spill] sm:$0xff]  ;;  %4374 = vmatprep.mubr.bf16.mxu1 %v2150_v52  ;;  %4948 = vmatprep.mubr.bf16.mxu0 %v10806_v22  ;;  %v1717_v34 = vpop.f32.mrf.mxu0 }
 0x21d   :  { %v1836_v11 = vmax.f32 %v13057_v7, %v13056_v26  ;;  %2079 = vst [vmem:[#allocation2 + $0xa0] sm:$0xff] %v2031_v29  ;;  %v2034_v32 = vmax.f32 %v1986_v5, 0.0  ;;  %v1984_v50 = vadd.f32 %v10581_v19, %v1929_v63  ;;  %v13058_v8 = vld [vmem:[#allocation77_spill] sm:$0xff]  ;;  %4375 = vmatmul.mubr.bf16.gmra.mxu1 %v10701_v6  ;;  %4949 = vmatmul.mubr.bf16.gmra.mxu0 %v10810_v16  ;;  %v10837_v49 = vld [vmem:[#allocation2 + $0x61] sm:$0xff]  ;;  %v13060_v62 = vld [vmem:[#allocation16_spill] sm:$0xff] }
 0x21e   :  { %v1934_v60 = vmax.f32 %v1838_v14, %v1886_v17  ;;  %v1884_v41 = vmax.f32 %v13058_v8, %v1717_v34  ;;  %v10839_v10 = vld [vmem:[#allocation2 + $0x64] sm:$0xff]  ;;  %v9202_v42 = vpop.f32.mrf.mxu0  ;;  %8135 = vmatpush3.bf16.msra.mxu1 %v9425_v37  ;;  %8579 = vmatpush3.bf16.msra.mxu0 %v9433_v21  ;;  %v9435_v6 = vld [vmem:[%s12913_s3 + $0x410] sm:$0xff]   ;;  %v9436_v14 = vld [vmem:[%s12913_s3 + $0x178] sm:$0xff]  }
 0x21f   :  { %v13059_v53 = vld [vmem:[#allocation47_spill] sm:$0xff]  ;;  %2082 = vst [vmem:[#allocation2 + $0xb8] sm:$0xff] %v2034_v32  ;;  %v2032_v48 = vmax.f32 %v1984_v50, 0.0  ;;  %v13061_v1 = vld [vmem:[#allocation78_spill] sm:$0xff]  ;;  %8136 = vmatprep.subr.bf16.mxu1 %v9430_v47  ;;  %8580 = vmatprep.subr.bf16.mxu0 %v9434_v59  ;;  %v10857_v52 = vld [vmem:[#allocation2 + $0x51] sm:$0xff] }
 0x220   :  { %v1839_v45 = vmax.f32 %v13060_v62, %v13059_v53  ;;  %v9431_v36 = vld [vmem:[%s12913_s3 + $0x80] sm:$0xff]   ;;  %v1989_v13 = vadd.f32 %v10581_v19, %v1934_v60  ;;  %v1932_v57 = vmax.f32 %v1836_v11, %v1884_v41  ;;  %v1887_v56 = vmax.f32 %v13061_v1, %v9202_v42  ;;  %v9438_v2 = vld [vmem:[%s12913_s3 + $0x448] sm:$0xff]   ;;  %v10859_v37 = vld [vmem:[#allocation2 + $0x54] sm:$0xff]  ;;  %v1720_v26 = vpop.f32.mrf.mxu0 }
 0x221   :  { %v13062_v21 = vld [vmem:[#allocation48_spill] sm:$0xff]  ;;  %v13063_v29 = vld [vmem:[#allocation17_spill] sm:$0xff]  ;;  %v13065_v55 = vld [vmem:[#allocation18_spill] sm:$0xff]  ;;  %2080 = vst [vmem:[#allocation2 + $0xa8] sm:$0xff] %v2032_v48 }
 0x222   :  { %v1837_v5 = vmax.f32 %v13063_v29, %v13062_v21  ;;  %v13064_v63 = vld [vmem:[#allocation49_spill] sm:$0xff]  ;;  %v2427_v7 = vld [vmem:[#allocation2 + $0x83] sm:$0xff]  ;;  %v2037_v34 = vmax.f32 %v1989_v13, 0.0  ;;  %v1987_v32 = vadd.f32 %v10581_v19, %v1932_v57  ;;  %v1935_v50 = vmax.f32 %v1839_v45, %v1887_v56  ;;  %v9205_v62 = vpop.f32.mrf.mxu0  ;;  %8137 = vmatpush3.bf16.msra.mxu1 %v9431_v36  ;;  %8581 = vmatpush3.bf16.msra.mxu0 %v9435_v6  ;;  %v13105_v47 = vld [vmem:[#allocation62_spill] sm:$0xff] }
 0x223   :  { %v1842_v17 = vmax.f32 %v13065_v55, %v13064_v63  ;;  %v10865_v11 = vld [vmem:[#allocation2 + $0x82] sm:$0xff]  ;;  %v2428_v41 = vld [vmem:[#allocation2 + $0x93] sm:$0xff]  ;;  %v13067_v21 = vld [vmem:[#allocation80_spill] sm:$0xff]  ;;  %8186 = vmatprep.subr.bf16.mxu1 %v9436_v14  ;;  %8582 = vmatprep.subr.bf16.mxu0 %v9438_v2 }
 0x224   :  { %v13066_v60 = vld [vmem:[#allocation79_spill] sm:$0xff]  ;;  %v10873_v53 = vld [vmem:[#allocation2 + $0x92] sm:$0xff]  ;;  %v2440_v42 = vpack.c.bf16 %v2428_v41, %v2427_v7  ;;  %2085 = vst [vmem:[#allocation2 + $0xd0] sm:$0xff] %v2037_v34  ;;  %v2035_v45 = vmax.f32 %v1987_v32, 0.0  ;;  %v1990_v57 = vadd.f32 %v10581_v19, %v1935_v50  ;;  %v1890_v29 = vmax.f32 %v13067_v21, %v9205_v62  ;;  %v13069_v63 = vld [vmem:[#allocation50_spill] sm:$0xff]  ;;  %v1733_v7 = vpop.f32.mrf.mxu0 }
 0x225   :  { %v1885_v8 = vmax.f32 %v13066_v60, %v1720_v26  ;;  %v2416_v1 = vpack.c.bf16 %v10873_v53, %v10865_v11  ;;  %v9439_v48 = vld [vmem:[%s12913_s3 + $0x408] sm:$0xff]   ;;  %v9440_v36 = vld [vmem:[%s12913_s3 + $0x440] sm:$0xff]   ;;  %v13071_v60 = vld [vmem:[#allocation81_spill] sm:$0xff] }
 0x226   :  { %v10887_v6 = vld [vmem:[#allocation2 + $0x84] sm:$0xff]  ;;  %4956 = vmatprep.mubr.bf16.mxu0 %v2440_v42  ;;  %2083 = vst [vmem:[#allocation2 + $0xc0] sm:$0xff] %v2035_v45  ;;  %v2038_v32 = vmax.f32 %v1990_v57, 0.0  ;;  %v10893_v14 = vld [vmem:[#allocation2 + $0x74] sm:$0xff]  ;;  %v9206_v21 = vpop.f32.mrf.mxu0  ;;  %v10897_v3 = vpack.c.bf16 %v2037_v34, %v2035_v45  ;;  %8583 = vmatpush3.bf16.msra.mxu0 %v9439_v48 }
 0x227   :  { %v1933_v56 = vmax.f32 %v1837_v5, %v1885_v8  ;;  %13068 = vst [vmem:[#allocation39_spill] sm:$0xff] %v10887_v6  ;;  %v13070_v55 = vld [vmem:[#allocation19_spill] sm:$0xff]  ;;  %v1938_v5 = vmax.f32 %v1842_v17, %v1890_v29  ;;  %v1888_v8 = vmax.f32 %v13071_v60, %v1733_v7  ;;  %4957 = vmatmul.mubr.bf16.gmra.mxu0 %v2416_v1  ;;  %v13073_v41 = vld [vmem:[#allocation20_spill] sm:$0xff]  ;;  %v13074_v29 = vld [vmem:[#allocation82_spill] sm:$0xff] }
 0x228   :  { %v1840_v26 = vmax.f32 %v13070_v55, %v13069_v63  ;;  %v13072_v2 = vld [vmem:[#allocation51_spill] sm:$0xff]  ;;  %2086 = vst [vmem:[#allocation2 + $0xd8] sm:$0xff] %v2038_v32  ;;  %v1891_v63 = vmax.f32 %v13074_v29, %v9206_v21  ;;  %8584 = vmatprep.subr.bf16.mxu0 %v9440_v36  ;;  %v9452_v34 = vld [vmem:[%s12913_s3 + $0x578] sm:$0xff]   ;;  %v13075_v48 = vld [vmem:[#allocation52_spill] sm:$0xff]  ;;  %v1736_v7 = vpop.f32.mrf.mxu0 }
 0x229   :  { %v1988_v50 = vadd.f32 %v10581_v19, %v1933_v56  ;;  %v1843_v62 = vmax.f32 %v13073_v41, %v13072_v2  ;;  %v9441_v42 = vld [vmem:[%s12913_s3 + $0x400] sm:$0xff]   ;;  %v1993_v1 = vadd.f32 %v10581_v19, %v1938_v5  ;;  %v13076_v45 = vld [vmem:[#allocation21_spill] sm:$0xff]  ;;  %v13080_v59 = vld [vmem:[#allocation84_spill] sm:$0xff] }
 0x22a   :  { %v1936_v56 = vmax.f32 %v1840_v26, %v1888_v8  ;;  %v1841_v55 = vmax.f32 %v13076_v45, %v13075_v48  ;;  %v13078_v5 = vld [vmem:[#allocation53_spill] sm:$0xff]  ;;  %v13079_v26 = vld [vmem:[#allocation22_spill] sm:$0xff]  ;;  %v9209_v21 = vpop.f32.mrf.mxu0  ;;  %8585 = vmatpush3.bf16.msra.mxu0 %v9441_v42  ;;  %v13084_v42 = vld [vmem:[#allocation55_spill] sm:$0xff] }
 0x22b   :  { %v2036_v17 = vmax.f32 %v1988_v50, 0.0  ;;  %v2041_v60 = vmax.f32 %v1993_v1, 0.0  ;;  %v1939_v32 = vmax.f32 %v1843_v62, %v1891_v63  ;;  %v13077_v50 = vld [vmem:[#allocation83_spill] sm:$0xff]  ;;  %v1846_v8 = vmax.f32 %v13079_v26, %v13078_v5  ;;  %8698 = vmatprep.subr.bf16.mxu0 %v9452_v34  ;;  %v13085_v26 = vld [vmem:[#allocation24_spill] sm:$0xff]  ;;  %v13121_v6 = vld [vmem:[#allocation97_spill] sm:$0xff] }
 0x22c   :  { %v1991_v2 = vadd.f32 %v10581_v19, %v1936_v56  ;;  %v1889_v41 = vmax.f32 %v13077_v50, %v1736_v7  ;;  %v1894_v48 = vmax.f32 %v13080_v59, %v9209_v21  ;;  %v13082_v1 = vld [vmem:[#allocation23_spill] sm:$0xff]  ;;  %v1749_v56 = vpop.f32.mrf.mxu0  ;;  %v13083_v50 = vld [vmem:[#allocation85_spill] sm:$0xff]  ;;  %v13127_v23 = vld [vmem:[#allocation68_spill] sm:$0xff] }
 0x22d   :  { %2084 = vst [vmem:[#allocation2 + $0xc8] sm:$0xff] %v2036_v17  ;;  %2089 = vst [vmem:[#allocation2 + $0xf0] sm:$0xff] %v2041_v60  ;;  %v1994_v29 = vadd.f32 %v10581_v19, %v1939_v32  ;;  %v13081_v17 = vld [vmem:[#allocation54_spill] sm:$0xff]  ;;  %v1892_v5 = vmax.f32 %v13083_v50, %v1749_v56  ;;  %v13106_v13 = vld [vmem:[#allocation31_spill] sm:$0xff] }
 0x22e   :  { %v2039_v36 = vmax.f32 %v1991_v2, 0.0  ;;  %v1937_v57 = vmax.f32 %v1841_v55, %v1889_v41  ;;  %v1844_v45 = vmax.f32 %v13082_v1, %v13081_v17  ;;  %v1942_v7 = vmax.f32 %v1846_v8, %v1894_v48  ;;  %v9210_v12 = vpop.f32.mrf.mxu0  ;;  %v13086_v41 = vld [vmem:[#allocation86_spill] sm:$0xff]  ;;  %v13087_v17 = vld [vmem:[#allocation56_spill] sm:$0xff]  ;;  %v13128_v28 = vld [vmem:[#allocation37_spill] sm:$0xff] }
 0x22f   :  { %v2042_v62 = vmax.f32 %v1994_v29, 0.0  ;;  %v1847_v2 = vmax.f32 %v13085_v26, %v13084_v42  ;;  %v1895_v21 = vmax.f32 %v13086_v41, %v9210_v12  ;;  %v13088_v29 = vld [vmem:[#allocation25_spill] sm:$0xff]  ;;  %v13089_v42 = vld [vmem:[#allocation87_spill] sm:$0xff]  ;;  %v1857_v0 = vmax.f32 %v13128_v28, %v13127_v23 }
 0x230   :  { %2087 = vst [vmem:[#allocation2 + $0xe0] sm:$0xff] %v2039_v36  ;;  %v1992_v63 = vadd.f32 %v10581_v19, %v1937_v57  ;;  %v10923_v32 = vpack.c.bf16 %v2041_v60, %v2039_v36  ;;  %v1997_v34 = vadd.f32 %v10581_v19, %v1942_v7  ;;  %v1940_v55 = vmax.f32 %v1844_v45, %v1892_v5  ;;  %v1752_v57 = vpop.f32.mrf.mxu0  ;;  %v2140_v36 = vld [vmem:[#allocation2 + $0xd1] sm:$0xff] }
 0x231   :  { %2090 = vst [vmem:[#allocation2 + $0xf8] sm:$0xff] %v2042_v62  ;;  %v1845_v1 = vmax.f32 %v13088_v29, %v13087_v17  ;;  %v1943_v50 = vmax.f32 %v1847_v2, %v1895_v21  ;;  %v1893_v60 = vmax.f32 %v13089_v42, %v1752_v57  ;;  %v13090_v62 = vld [vmem:[#allocation57_spill] sm:$0xff]  ;;  %v13092_v17 = vld [vmem:[#allocation88_spill] sm:$0xff] }
 0x232   :  { %v2040_v59 = vmax.f32 %v1992_v63, 0.0  ;;  %v2045_v48 = vmax.f32 %v1997_v34, 0.0  ;;  %v1995_v56 = vadd.f32 %v10581_v19, %v1940_v55  ;;  %v13091_v63 = vld [vmem:[#allocation26_spill] sm:$0xff]  ;;  %v9213_v7 = vpop.f32.mrf.mxu0  ;;  %v13094_v34 = vld [vmem:[#allocation27_spill] sm:$0xff]  ;;  %v13095_v42 = vld [vmem:[#allocation89_spill] sm:$0xff] }
 0x233   :  { %v1850_v26 = vmax.f32 %v13091_v63, %v13090_v62  ;;  %v1998_v5 = vadd.f32 %v10581_v19, %v1943_v50  ;;  %v1941_v41 = vmax.f32 %v1845_v1, %v1893_v60  ;;  %v1898_v29 = vmax.f32 %v13092_v17, %v9213_v7 }
 0x234   :  { %v2139_v8 = vld [vmem:[#allocation2 + $0xc1] sm:$0xff]  ;;  %2088 = vst [vmem:[#allocation2 + $0xe8] sm:$0xff] %v2040_v59  ;;  %2093 = vst [vmem:[#allocation2 + $0x110] sm:$0xff] %v2045_v48  ;;  %v2043_v12 = vmax.f32 %v1995_v56, 0.0  ;;  %v1765_v2 = vpop.f32.mrf.mxu0  ;;  %v13097_v56 = vld [vmem:[#allocation28_spill] sm:$0xff] }
 0x235   :  { %v2151_v45 = vpack.c.bf16 %v2140_v36, %v2139_v8  ;;  %v13093_v59 = vld [vmem:[#allocation58_spill] sm:$0xff]  ;;  %v2046_v55 = vmax.f32 %v1998_v5, 0.0  ;;  %v1996_v21 = vadd.f32 %v10581_v19, %v1941_v41  ;;  %v1946_v57 = vmax.f32 %v1850_v26, %v1898_v29  ;;  %v13096_v8 = vld [vmem:[#allocation59_spill] sm:$0xff]  ;;  %v13099_v26 = vld [vmem:[#allocation60_spill] sm:$0xff] }
 0x236   :  { %v1848_v43 = vmax.f32 %v13094_v34, %v13093_v59  ;;  %2091 = vst [vmem:[#allocation2 + $0x100] sm:$0xff] %v2043_v12  ;;  %v1896_v62 = vmax.f32 %v13095_v42, %v1765_v2  ;;  %v1851_v50 = vmax.f32 %v13097_v56, %v13096_v8  ;;  %v9214_v1 = vpop.f32.mrf.mxu0  ;;  %v10942_v60 = vpack.c.bf16 %v2045_v48, %v2043_v12  ;;  %v13100_v41 = vld [vmem:[#allocation29_spill] sm:$0xff]  ;;  %v13103_v56 = vld [vmem:[#allocation30_spill] sm:$0xff] }
 0x237   :  { %4382 = vmatprep.mubr.bf16.mxu1 %v2151_v45  ;;  %2094 = vst [vmem:[#allocation2 + $0x118] sm:$0xff] %v2046_v55  ;;  %v2044_v36 = vmax.f32 %v1996_v21, 0.0  ;;  %v2001_v63 = vadd.f32 %v10581_v19, %v1946_v57  ;;  %v13098_v45 = vld [vmem:[#allocation90_spill] sm:$0xff]  ;;  %v1849_v29 = vmax.f32 %v13100_v41, %v13099_v26  ;;  %v13101_v55 = vld [vmem:[#allocation91_spill] sm:$0xff]  ;;  %v13102_v8 = vld [vmem:[#allocation61_spill] sm:$0xff] }
 0x238   :  { %4383 = vmatmul.mubr.bf16.gmra.mxu1 %v10897_v3  ;;  %v1944_v7 = vmax.f32 %v1848_v43, %v1896_v62  ;;  %v1899_v5 = vmax.f32 %v13098_v45, %v9214_v1  ;;  %v10946_v17 = vld [vmem:[#allocation2 + $0xf1] sm:$0xff]  ;;  %v1768_v59 = vpop.f32.mrf.mxu0  ;;  %v1854_v1 = vmax.f32 %v13103_v56, %v13102_v8  ;;  %v1852_v8 = vmax.f32 %v13106_v13, %v13105_v47  ;;  %v13109_v47 = vld [vmem:[#allocation63_spill] sm:$0xff] }
 0x239   :  { %2092 = vst [vmem:[#allocation2 + $0x108] sm:$0xff] %v2044_v36  ;;  %v2049_v42 = vmax.f32 %v2001_v63, 0.0  ;;  %v1897_v21 = vmax.f32 %v13101_v55, %v1768_v59  ;;  %v2430_v57 = vld [vmem:[#allocation2 + $0xf3] sm:$0xff]  ;;  %v13110_v13 = vld [vmem:[#allocation32_spill] sm:$0xff] }
 0x23a   :  { %v1999_v48 = vadd.f32 %v10581_v19, %v1944_v7  ;;  %v1947_v12 = vmax.f32 %v1851_v50, %v1899_v5  ;;  %v10952_v43 = vld [vmem:[#allocation2 + $0xf2] sm:$0xff]  ;;  %v9217_v45 = vpop.f32.mrf.mxu0  ;;  %v13104_v5 = vld [vmem:[#allocation92_spill] sm:$0xff]  ;;  %v1855_v56 = vmax.f32 %v13110_v13, %v13109_v47 }
 0x23b   :  { %v2141_v3 = vld [vmem:[#allocation2 + $0xe1] sm:$0xff]  ;;  %2097 = vst [vmem:[#allocation2 + $0x130] sm:$0xff] %v2049_v42  ;;  %v1945_v7 = vmax.f32 %v1849_v29, %v1897_v21  ;;  %v1902_v59 = vmax.f32 %v13104_v5, %v9217_v45  ;;  %v10966_v55 = vld [vmem:[#allocation2 + $0xd4] sm:$0xff] }
 0x23c   :  { %v2429_v34 = vld [vmem:[#allocation2 + $0xe3] sm:$0xff]  ;;  %v2152_v26 = vpack.c.bf16 %v10946_v17, %v2141_v3  ;;  %v2047_v50 = vmax.f32 %v1999_v48, 0.0  ;;  %v2002_v63 = vadd.f32 %v10581_v19, %v1947_v12  ;;  %v1781_v3 = vpop.f32.mrf.mxu0  ;;  %v13107_v29 = vld [vmem:[#allocation93_spill] sm:$0xff] }
 0x23d   :  { %v2405_v2 = vld [vmem:[#allocation2 + $0xe2] sm:$0xff]  ;;  %v10959_v41 = vpack.c.bf16 %v2430_v57, %v2429_v34  ;;  %v2000_v48 = vadd.f32 %v10581_v19, %v1945_v7  ;;  %v1950_v12 = vmax.f32 %v1854_v1, %v1902_v59  ;;  %v1900_v21 = vmax.f32 %v13107_v29, %v1781_v3  ;;  %v13111_v1 = vld [vmem:[#allocation94_spill] sm:$0xff]  ;;  %v10985_v3 = vld [vmem:[#allocation2 + $0xf1] sm:$0xff] }
 0x23e   :  { %v10954_v62 = vld [vmem:[#allocation2 + $0xe4] sm:$0xff]  ;;  %v10962_v36 = vpack.c.bf16 %v10952_v43, %v2405_v2  ;;  %4390 = vmatprep.mubr.bf16.mxu1 %v2152_v26  ;;  %2095 = vst [vmem:[#allocation2 + $0x120] sm:$0xff] %v2047_v50  ;;  %v2050_v2 = vmax.f32 %v2002_v63, 0.0  ;;  %v9218_v45 = vpop.f32.mrf.mxu0  ;;  %v10981_v26 = vpack.c.bf16 %v2049_v42, %v2047_v50  ;;  %13112 = vst [vmem:[#allocation70_spill] sm:$0xff] %v10985_v3  ;;  %v13114_v29 = vld [vmem:[#allocation33_spill] sm:$0xff] }
 0x23f   :  { %4964 = vmatprep.mubr.bf16.mxu0 %v10959_v41  ;;  %v10977_v57 = vld [vmem:[#allocation2 + $0xe1] sm:$0xff]  ;;  %v2048_v5 = vmax.f32 %v2000_v48, 0.0  ;;  %v2005_v63 = vadd.f32 %v10581_v19, %v1950_v12  ;;  %v1948_v7 = vmax.f32 %v1852_v8, %v1900_v21  ;;  %v1903_v59 = vmax.f32 %v13111_v1, %v9218_v45  ;;  %v10997_v21 = vld [vmem:[#allocation2 + $0x111] sm:$0xff] }
 0x240   :  { %4391 = vmatmul.mubr.bf16.gmra.mxu1 %v10923_v32  ;;  %4965 = vmatmul.mubr.bf16.gmra.mxu0 %v10962_v36  ;;  %13108 = vst [vmem:[#allocation8_spill] sm:$0xff] %v10977_v57  ;;  %2098 = vst [vmem:[#allocation2 + $0x138] sm:$0xff] %v2050_v2  ;;  %v13113_v32 = vld [vmem:[#allocation64_spill] sm:$0xff]  ;;  %v1784_v30 = vpop.f32.mrf.mxu0  ;;  %v10989_v33 = vld [vmem:[#allocation2 + $0x101] sm:$0xff] }
 0x241   :  { %v1853_v34 = vmax.f32 %v13114_v29, %v13113_v32  ;;  %v2431_v4 = vld [vmem:[#allocation2 + $0x103] sm:$0xff]  ;;  %2096 = vst [vmem:[#allocation2 + $0x128] sm:$0xff] %v2048_v5  ;;  %v2053_v50 = vmax.f32 %v2005_v63, 0.0  ;;  %v2003_v8 = vadd.f32 %v10581_v19, %v1948_v7  ;;  %v1951_v2 = vmax.f32 %v1855_v56, %v1903_v59  ;;  %v2432_v13 = vld [vmem:[#allocation2 + $0x113] sm:$0xff] }
 0x242   :  { %v10991_v47 = vld [vmem:[#allocation2 + $0x102] sm:$0xff]  ;;  %v10999_v45 = vld [vmem:[#allocation2 + $0x112] sm:$0xff]  ;;  %v13117_v32 = vld [vmem:[#allocation34_spill] sm:$0xff]  ;;  %v9221_v58 = vpop.f32.mrf.mxu0  ;;  %v11005_v27 = vpack.c.bf16 %v10997_v21, %v10989_v33  ;;  %v11007_v5 = vpack.c.bf16 %v2432_v13, %v2431_v4 }
 0x243   :  { %v13115_v48 = vld [vmem:[#allocation95_spill] sm:$0xff]  ;;  %v13116_v1 = vld [vmem:[#allocation65_spill] sm:$0xff]  ;;  %v11011_v56 = vpack.c.bf16 %v10999_v45, %v10991_v47  ;;  %2101 = vst [vmem:[#allocation2 + $0x150] sm:$0xff] %v2053_v50  ;;  %v2006_v63 = vadd.f32 %v10581_v19, %v1951_v2  ;;  %v13118_v59 = vld [vmem:[#allocation96_spill] sm:$0xff] }
 0x244   :  { %v1901_v12 = vmax.f32 %v13115_v48, %v1784_v30  ;;  %v1858_v29 = vmax.f32 %v13117_v32, %v13116_v1  ;;  %v2051_v30 = vmax.f32 %v2003_v8, 0.0  ;;  %v1906_v48 = vmax.f32 %v13118_v59, %v9221_v58  ;;  %v11015_v42 = vld [vmem:[#allocation2 + $0x104] sm:$0xff]  ;;  %v13119_v1 = vld [vmem:[#allocation66_spill] sm:$0xff]  ;;  %4398 = vmatprep.mubr.bf16.mxu1 %v11005_v27  ;;  %4972 = vmatprep.mubr.bf16.mxu0 %v11007_v5  ;;  %v1797_v4 = vpop.f32.mrf.mxu0 }
 0x245   :  { %v13120_v32 = vld [vmem:[#allocation35_spill] sm:$0xff]  ;;  %v2054_v13 = vmax.f32 %v2006_v63, 0.0  ;;  %v1904_v2 = vmax.f32 %v13121_v6, %v1797_v4  ;;  %v11025_v58 = vld [vmem:[#allocation2 + $0xf4] sm:$0xff]  ;;  %v13124_v59 = vld [vmem:[#allocation36_spill] sm:$0xff] }
 0x246   :  { %v1949_v7 = vmax.f32 %v1853_v34, %v1901_v12  ;;  %v1856_v35 = vmax.f32 %v13120_v32, %v13119_v1  ;;  %2099 = vst [vmem:[#allocation2 + $0x140] sm:$0xff] %v2051_v30  ;;  %v1954_v8 = vmax.f32 %v1858_v29, %v1906_v48  ;;  %v11027_v34 = vld [vmem:[#allocation2 + $0x101] sm:$0xff]  ;;  %v9222_v32 = vpop.f32.mrf.mxu0  ;;  %v11035_v4 = vld [vmem:[#allocation2 + $0x111] sm:$0xff] }
 0x247   :  { %13122 = vst [vmem:[#allocation40_spill] sm:$0xff] %v11027_v34  ;;  %v13123_v12 = vld [vmem:[#allocation67_spill] sm:$0xff]  ;;  %2102 = vst [vmem:[#allocation2 + $0x158] sm:$0xff] %v2054_v13  ;;  %v11049_v28 = vld [vmem:[#allocation2 + $0x131] sm:$0xff] }
 0x248   :  { %v2004_v50 = vadd.f32 %v10581_v19, %v1949_v7  ;;  %4399 = vmatmul.mubr.bf16.gmra.mxu1 %v10942_v60  ;;  %4973 = vmatmul.mubr.bf16.gmra.mxu0 %v11011_v56  ;;  %v1859_v1 = vmax.f32 %v13124_v59, %v13123_v12  ;;  %v2009_v29 = vadd.f32 %v10581_v19, %v1954_v8  ;;  %v13125_v7 = vld [vmem:[#allocation98_spill] sm:$0xff]  ;;  %v2179_v48 = vld [vmem:[#allocation2 + $0x3] sm:$0xff]  ;;  %v1800_v3 = vpop.f32.mrf.mxu0  ;;  %v11089_v34 = vld [vmem:[#allocation2 + $0x12] sm:$0xff] }
 0x249   :  { %v1952_v6 = vmax.f32 %v1856_v35, %v1904_v2  ;;  %v1907_v60 = vmax.f32 %v13125_v7, %v9222_v32  ;;  %13126 = vst [vmem:[#allocation9_spill] sm:$0xff] %v11035_v4  ;;  %v11039_v57 = vld [vmem:[#allocation2 + $0x121] sm:$0xff]  ;;  %v9716_v35 = vld [vmem:[%s12912_s2] ss:$0 sm:$0xff]  ;;  %v2434_v23 = vld [vmem:[#allocation2 + $0x133] sm:$0xff] }
 0x24a   :  { %v2052_v63 = vmax.f32 %v2004_v50, 0.0  ;;  %v2433_v12 = vld [vmem:[#allocation2 + $0x123] sm:$0xff]  ;;  %v2057_v19 = vmax.f32 %v2009_v29, 0.0  ;;  %v11051_v7 = vld [vmem:[#allocation2 + $0x132] sm:$0xff]  ;;  %v11055_v30 = vpack.c.bf16 %v11049_v28, %v11039_v57 }
 0x24b   :  { %v11041_v59 = vld [vmem:[#allocation2 + $0x122] sm:$0xff]  ;;  %v2007_v50 = vadd.f32 %v9716_v35, %v1952_v6  ;;  %v1955_v8 = vmax.f32 %v1859_v1, %v1907_v60  ;;  %v11057_v13 = vpack.c.bf16 %v2434_v23, %v2433_v12 }
 0x24c   :  { %2100 = vst [vmem:[#allocation2 + $0x148] sm:$0xff] %v2052_v63  ;;  %v13129_v2 = vld [vmem:[#allocation99_spill] sm:$0xff]  ;;  %v11061_v63 = vpack.c.bf16 %v11051_v7, %v11041_v59  ;;  %2105 = vst [vmem:[#allocation2 + $0x170] sm:$0xff] %v2057_v19  ;;  %4406 = vmatprep.mubr.bf16.mxu1 %v11055_v30  ;;  %v11071_v19 = vld [vmem:[#allocation2 + $0x114] sm:$0xff] }
 0x24d   :  { %v1905_v32 = vmax.f32 %v13129_v2, %v1800_v3  ;;  %v2055_v29 = vmax.f32 %v2007_v50, 0.0  ;;  %v2010_v1 = vadd.f32 %v9716_v35, %v1955_v8  ;;  %v2180_v3 = vld [vmem:[#allocation2 + $0x13] sm:$0xff]  ;;  %v11063_v60 = vld [vmem:[#allocation2 + $0x124] sm:$0xff]  ;;  %4980 = vmatprep.mubr.bf16.mxu0 %v11057_v13  ;;  %v13130_v8 = vpack.c.bf16 %v10725_v40, %v10660_v44 }
 0x24e   :  { %v11065_v2 = vld [vmem:[#allocation2 + $0x121] sm:$0xff]  ;;  %v2195_v4 = vpack.c.bf16 %v2180_v3, %v2179_v48  ;;  %v11085_v3 = vld [vmem:[#allocation2 + $0x134] sm:$0xff] }
 0x24f   :  { %v1953_v6 = vmax.f32 %v1857_v0, %v1905_v32  ;;  %2103 = vst [vmem:[#allocation2 + $0x160] sm:$0xff] %v2055_v29  ;;  %v2058_v12 = vmax.f32 %v2010_v1, 0.0  ;;  %v11073_v0 = vld [vmem:[#allocation2 + $0x131] sm:$0xff]  ;;  %v2155_v29 = vld [vmem:[#allocation2 + $0x2] sm:$0xff] }
 0x250   :  { %4407 = vmatmul.mubr.bf16.gmra.mxu1 %v10981_v26  ;;  %4981 = vmatmul.mubr.bf16.gmra.mxu0 %v11061_v63  ;;  %v2436_v32 = vld [vmem:[#allocation2 + $0x153] sm:$0xff]  ;;  %v9446_v44 = vld [vmem:[%s12913_s3 + $0x160] sm:$0xff]  }
 0x251   :  { %v2008_v23 = vadd.f32 %v9716_v35, %v1953_v6  ;;  %4447 = vmatprep.mubr.bf16.mxu1 %v2195_v4  ;;  %2106 = vst [vmem:[#allocation2 + $0x178] sm:$0xff] %v2058_v12  ;;  %v11081_v26 = vld [vmem:[#allocation2 + $0x152] sm:$0xff] }
 0x252   :  { %v9437_v12 = vld [vmem:[%s12913_s3 + $0x138] sm:$0xff]   ;;  %v9454_v40 = vld [vmem:[%s12913_s3 + $0x570] sm:$0xff]  }
 0x253   :  { %v2056_v48 = vmax.f32 %v2008_v23, 0.0  ;;  %v2435_v35 = vld [vmem:[#allocation2 + $0x143] sm:$0xff] }
 0x254   :  { %v11079_v1 = vld [vmem:[#allocation2 + $0x142] sm:$0xff]  ;;  %v2444_v6 = vpack.c.bf16 %v2436_v32, %v2435_v35  ;;  %v9442_v32 = vld [vmem:[%s12913_s3 + $0x170] sm:$0xff]  }
 0x255   :  { %2104 = vst [vmem:[#allocation2 + $0x168] sm:$0xff] %v2056_v48  ;;  %v2420_v4 = vpack.c.bf16 %v11081_v26, %v11079_v1  ;;  %v11087_v50 = vld [vmem:[#allocation2 + $0x144] sm:$0xff]  ;;  %v2171_v48 = vpack.c.bf16 %v11089_v34, %v2155_v29  ;;  %v9443_v35 = vld [vmem:[%s12913_s3 + $0x130] sm:$0xff]  }
 0x256   :  { %4988 = vmatprep.mubr.bf16.mxu0 %v2444_v6  ;;  %v9444_v29 = vld [vmem:[%s12913_s3 + $0x168] sm:$0xff]  }
 0x257   :  { %v9445_v6 = vld [vmem:[%s12913_s3 + $0x128] sm:$0xff]  }
 0x258   :  { %4448 = vmatmul.mubr.bf16.vlgmr.msra.gmra.mxu1 %v2171_v48  ;;  %4989 = vmatmul.mubr.bf16.gmra.mxu0 %v2420_v4  ;;  %v13132_v4 = vpack.c.bf16 %v10794_v46, %v10733_v31  ;;  %v9449_v31 = vld [vmem:[%s12913_s3 + $0x118] sm:$0xff]   ;;  %v9450_v46 = vld [vmem:[%s12913_s3 + $0x150] sm:$0xff]   ;;  %v9460_v48 = vld [vmem:[%s12913_s3 + $0x560] sm:$0xff]  }
 0x259   :  { %8187 = vmatpush3.bf16.msra.mxu1 %v9437_v12  ;;  %4455 = vmatprep.mubr.bf16.mxu1 %v10667_v54  ;;  %v9453_v54 = vld [vmem:[%s12913_s3 + $0x538] sm:$0xff]   ;;  %v9447_v12 = vld [vmem:[%s12913_s3 + $0x120] sm:$0xff]  }
 0x25a   :  { %5126 = vmatprep.mubr.bf16.mxu0 %v13130_v8  ;;  %8188 = vmatprep.subr.bf16.mxu1 %v9442_v32  ;;  %v13131_v8 = vpack.c.bf16 %v10723_v38, %v10651_v25  ;;  %v9448_v25 = vld [vmem:[%s12913_s3 + $0x158] sm:$0xff]   ;;  %v9458_v38 = vld [vmem:[%s12913_s3 + $0x568] sm:$0xff]   ;;  %v13133_v32 = vpack.c.bf16 %v10792_v15, %v10731_v9 }
 0x25b   :  { %v9456_v9 = vld [vmem:[%s12913_s3 + $0x148] sm:$0xff]   ;;  %v9464_v15 = vld [vmem:[%s12913_s3 + $0x558] sm:$0xff]  }
 0x25d   :  { %8189 = vmatpush3.bf16.msra.mxu1 %v9443_v35  ;;  %v13134_v35 = vpack.c.bf16 %v10865_v11, %v10802_v18  ;;  %v2187_v18 = vld [vmem:[#allocation2 + $0xc3] sm:$0xff] }
 0x25e   :  { %8190 = vmatprep.subr.bf16.mxu1 %v9444_v29  ;;  %v9451_v29 = vld [vmem:[%s12913_s3 + $0x110] sm:$0xff]  }
 0x260   :  { %4456 = vmatmul.mubr.bf16.gmra.mxu1 %v10670_v20  ;;  %5127 = vmatmul.mubr.bf16.vlgmr.msra.gmra.mxu0 %v13131_v8  ;;  %v9455_v20 = vld [vmem:[%s12913_s3 + $0x530] sm:$0xff]  }
 0x261   :  { %4463 = vmatprep.mubr.bf16.mxu1 %v10737_v61  ;;  %5134 = vmatprep.mubr.bf16.mxu0 %v13132_v4  ;;  %v9459_v61 = vld [vmem:[%s12913_s3 + $0x528] sm:$0xff]  }
 0x262   :  { %8191 = vmatpush3.bf16.msra.mxu1 %v9445_v6  ;;  %8699 = vmatpush3.bf16.msra.mxu0 %v9453_v54  ;;  %v11168_v6 = vld [vmem:[#allocation2 + $0x81] sm:$0xff]  ;;  %v2188_v54 = vld [vmem:[#allocation2 + $0xd3] sm:$0xff] }
 0x263   :  { %8192 = vmatprep.subr.bf16.mxu1 %v9446_v44  ;;  %8700 = vmatprep.subr.bf16.mxu0 %v9454_v40  ;;  %v2512_v11 = vpack.c.bf16 %v11168_v6, %v10800_v51  ;;  %v9457_v44 = vld [vmem:[%s12913_s3 + $0x108] sm:$0xff]   ;;  %v9465_v40 = vld [vmem:[%s12913_s3 + $0x518] sm:$0xff]   ;;  %v2199_v8 = vpack.c.bf16 %v2188_v54, %v2187_v18  ;;  %v9466_v51 = vld [vmem:[%s12913_s3 + $0x550] sm:$0xff]   ;;  %v2540_v18 = vpack.c.bf16 %v11079_v1, %v11051_v7 }
 0x264   :  { %v9469_v7 = vld [vmem:[%s12913_s3 + $0x1b8] sm:$0xff]   ;;  %v9474_v54 = vld [vmem:[%s12913_s3 + $0x1f0] sm:$0xff]  }
 0x265   :  { %v11251_v1 = vld [vmem:[#allocation2 + $0x151] sm:$0xff] }
 0x266   :  { %8193 = vmatpush3.bf16.msra.mxu1 %v9447_v12  ;;  %8701 = vmatpush3.bf16.msra.mxu0 %v9455_v20  ;;  %v9462_v12 = vld [vmem:[%s12913_s3 + $0x140] sm:$0xff]   ;;  %v9467_v20 = vld [vmem:[%s12913_s3 + $0x510] sm:$0xff]  }
 0x267   :  { %8194 = vmatprep.subr.bf16.mxu1 %v9448_v25  ;;  %8702 = vmatprep.subr.bf16.mxu0 %v9458_v38  ;;  %v9468_v25 = vld [vmem:[%s12913_s3 + $0x1f8] sm:$0xff]   ;;  %v2163_v38 = vld [vmem:[#allocation2 + $0xc2] sm:$0xff] }
 0x268   :  { %4464 = vmatmul.mubr.bf16.gmra.mxu1 %v10741_v24  ;;  %5135 = vmatmul.mubr.bf16.gmra.mxu0 %v13133_v32  ;;  %v9461_v24 = vld [vmem:[%s12913_s3 + $0x520] sm:$0xff]  }
 0x269   :  { %4471 = vmatprep.mubr.bf16.mxu1 %v10806_v22  ;;  %5142 = vmatprep.mubr.bf16.mxu0 %v13134_v35  ;;  %v2525_v22 = vld [vmem:[#allocation2 + $0xa2] sm:$0xff] }
 0x26a   :  { %8195 = vmatpush3.bf16.msra.mxu1 %v9449_v31  ;;  %8703 = vmatpush3.bf16.msra.mxu0 %v9459_v61  ;;  %v2537_v4 = vpack.c.bf16 %v2525_v22, %v10873_v53  ;;  %v9463_v53 = vld [vmem:[%s12913_s3 + $0x100] sm:$0xff]   ;;  %v2164_v61 = vld [vmem:[#allocation2 + $0xd2] sm:$0xff]  ;;  %v9471_v35 = vld [vmem:[%s12913_s3 + $0x508] sm:$0xff]  }
 0x26b   :  { %8196 = vmatprep.subr.bf16.mxu1 %v9450_v46  ;;  %8704 = vmatprep.subr.bf16.mxu0 %v9460_v48  ;;  %v11201_v31 = vld [vmem:[#allocation2 + $0xa1] sm:$0xff]  ;;  %v11206_v46 = vld [vmem:[#allocation2 + $0x91] sm:$0xff]  ;;  %v2175_v48 = vpack.c.bf16 %v2164_v61, %v2163_v38 }
 0x26c   :  { %v2513_v32 = vpack.c.bf16 %v11201_v31, %v11206_v46  ;;  %v9717_v22 = vld [vmem:[#allocation2 + $0x14] sm:$0xff] }
 0x26d   :  { %v11269_v38 = vld [vmem:[#allocation2 + $0x71] sm:$0xff] }
 0x26e   :  { %8197 = vmatpush3.bf16.msra.mxu1 %v9451_v29  ;;  %8705 = vmatpush3.bf16.msra.mxu0 %v9461_v24  ;;  %v2538_v29 = vpack.c.bf16 %v10991_v47, %v10952_v43  ;;  %v9472_v24 = vld [vmem:[%s12913_s3 + $0x540] sm:$0xff]   ;;  %v11225_v43 = vld [vmem:[%s12913_s3 + $0x638] sm:$0xff]   ;;  %v2514_v47 = vpack.c.bf16 %v10989_v33, %v10946_v17 }
 0x26f   :  { %8198 = vmatprep.subr.bf16.mxu1 %v9456_v9  ;;  %8706 = vmatprep.subr.bf16.mxu0 %v9464_v15  ;;  %v9473_v9 = vld [vmem:[%s12913_s3 + $0x500] sm:$0xff]   ;;  %v2539_v15 = vpack.c.bf16 %v11041_v59, %v10999_v45 }
 0x270   :  { %4472 = vmatmul.mubr.bf16.gmra.mxu1 %v10810_v16  ;;  %5143 = vmatmul.mubr.bf16.gmra.mxu0 %v2512_v11  ;;  %v9470_v16 = vld [vmem:[%s12913_s3 + $0x548] sm:$0xff]   ;;  %v2229_v17 = vld [vmem:[#allocation2 + $0x20] sm:$0xff] }
 0x271   :  { %4479 = vmatprep.mubr.bf16.mxu1 %v2199_v8  ;;  %5150 = vmatprep.mubr.bf16.mxu0 %v2537_v4  ;;  %v11240_v33 = vld [vmem:[#allocation2 + $0x141] sm:$0xff]  ;;  %v9475_v8 = vld [vmem:[%s12913_s3 + $0x1b0] sm:$0xff]  }
 0x272   :  { %8199 = vmatpush3.bf16.msra.mxu1 %v9457_v44  ;;  %8707 = vmatpush3.bf16.msra.mxu0 %v9465_v40  ;;  %v2516_v45 = vpack.c.bf16 %v11240_v33, %v11049_v28  ;;  %v11253_v28 = vld [vmem:[#allocation2 + $0x41] sm:$0xff] }
 0x273   :  { %8200 = vmatprep.subr.bf16.mxu1 %v9462_v12  ;;  %8708 = vmatprep.subr.bf16.mxu0 %v9466_v51  ;;  %v2631_v40 = vpack.c.bf16 %v10857_v52, %v11253_v28  ;;  %v9476_v4 = vld [vmem:[%s12913_s3 + $0x1e8] sm:$0xff]   ;;  %v2233_v12 = vld [vmem:[#allocation2 + $0x60] sm:$0xff]  ;;  %v2592_v51 = vld [vmem:[#allocation2 + $0x50] sm:$0xff] }
 0x274   :  { %v2246_v61 = vpack.c.bf16 %v2233_v12, %v2592_v51 }
 0x276   :  { %8201 = vmatpush3.bf16.msra.mxu1 %v9463_v53  ;;  %8709 = vmatpush3.bf16.msra.mxu0 %v9467_v20  ;;  %v9718_v53 = vld [vmem:[#allocation2 + $0x24] sm:$0xff] }
 0x277   :  { %8250 = vmatprep.subr.bf16.mxu1 %v9468_v25  ;;  %8710 = vmatprep.subr.bf16.mxu0 %v9470_v16  ;;  %v2220_v20 = vpack.c.bf16 %v10786_v39, %v9718_v53  ;;  %v9477_v16 = vld [vmem:[%s12913_s3 + $0x1a8] sm:$0xff]  }
 0x278   :  { %4480 = vmatmul.mubr.bf16.gmra.mxu1 %v2175_v48  ;;  %5151 = vmatmul.mubr.bf16.gmra.mxu0 %v2513_v32  ;;  %v2632_v48 = vpack.c.bf16 %v11269_v38, %v10837_v49  ;;  %v9478_v32 = vld [vmem:[%s12913_s3 + $0x1e0] sm:$0xff]   ;;  %v9496_v53 = vld [vmem:[%s12913_s3 + $0x608] sm:$0xff]  }
 0x279   :  { %4487 = vmatprep.mubr.bf16.mxu1 %v10959_v41  ;;  %5158 = vmatprep.mubr.bf16.mxu0 %v2538_v29  ;;  %v2515_v41 = vpack.c.bf16 %v11039_v57, %v10997_v21  ;;  %v2203_v21 = vld [vmem:[#allocation2 + $0x4] sm:$0xff] }
 0x27a   :  { %8711 = vmatpush3.bf16.msra.mxu0 %v9471_v35  ;;  %v2219_v11 = vpack.c.bf16 %v9717_v22, %v2203_v21  ;;  %v9485_v35 = vld [vmem:[%s12913_s3 + $0x630] sm:$0xff]   ;;  %v9479_v29 = vld [vmem:[%s12913_s3 + $0x1a0] sm:$0xff]  }
 0x27b   :  { %8712 = vmatprep.subr.bf16.mxu0 %v9472_v24  ;;  %v9480_v24 = vld [vmem:[%s12913_s3 + $0x1d8] sm:$0xff]   ;;  %v2237_v21 = vld [vmem:[#allocation2 + $0xe0] sm:$0xff] }
 0x27e   :  { %8713 = vmatpush3.bf16.msra.mxu0 %v9473_v9  ;;  %v9488_v9 = vld [vmem:[%s12913_s3 + $0x628] sm:$0xff]  }
 0x27f   :  { %9223 = vmatprep.subr.bf16.mxu0 %v11225_v43 }
 0x280   :  { %4488 = vmatmul.mubr.bf16.gmra.mxu1 %v10962_v36  ;;  %5159 = vmatmul.mubr.bf16.gmra.mxu0 %v2514_v47  ;;  %v2533_v36 = vld [vmem:[#allocation2 + $0x162] sm:$0xff] }
 0x281   :  { %4495 = vmatprep.mubr.bf16.mxu1 %v11007_v5  ;;  %5166 = vmatprep.mubr.bf16.mxu0 %v2539_v15  ;;  %v2228_v5 = vld [vmem:[#allocation2 + $0x10] sm:$0xff]  ;;  %v2541_v57 = vpack.c.bf16 %v2533_v36, %v11081_v26  ;;  %v2235_v47 = vld [vmem:[#allocation2 + $0x80] sm:$0xff] }
 0x282   :  { %v2244_v59 = vpack.c.bf16 %v2229_v17, %v2228_v5  ;;  %v2230_v26 = vld [vmem:[#allocation2 + $0x30] sm:$0xff] }
 0x283   :  { %v2594_v15 = vld [vmem:[#allocation2 + $0x70] sm:$0xff] }
 0x284   :  { %v2608_v17 = vpack.c.bf16 %v2594_v15, %v2233_v12  ;;  %v2247_v36 = vpack.c.bf16 %v2235_v47, %v2594_v15  ;;  %v9482_v5 = vld [vmem:[%s12913_s3 + $0x1d0] sm:$0xff]   ;;  %v2211_v12 = vld [vmem:[#allocation2 + $0xc4] sm:$0xff] }
 0x288   :  { %4496 = vmatmul.mubr.bf16.gmra.mxu1 %v11011_v56  ;;  %5167 = vmatmul.mubr.bf16.gmra.mxu0 %v2515_v41  ;;  %v11246_v56 = vld [vmem:[#allocation2 + $0x161] sm:$0xff] }
 0x289   :  { %4503 = vmatprep.mubr.bf16.mxu1 %v11057_v13  ;;  %5174 = vmatprep.mubr.bf16.mxu0 %v2540_v18  ;;  %v2231_v13 = vld [vmem:[#allocation2 + $0x40] sm:$0xff] }
 0x28a   :  { %v2245_v44 = vpack.c.bf16 %v2231_v13, %v2230_v26  ;;  %v2607_v25 = vpack.c.bf16 %v2592_v51, %v2231_v13  ;;  %v9719_v41 = vld [vmem:[#allocation2 + $0x44] sm:$0xff]  ;;  %v2596_v13 = vld [vmem:[#allocation2 + $0x90] sm:$0xff]  ;;  %v9494_v51 = vld [vmem:[%s12913_s3 + $0x278] sm:$0xff]  }
 0x28b   :  { %v11293_v18 = vpack.c.bf16 %v10859_v37, %v9719_v41  ;;  %v2609_v22 = vpack.c.bf16 %v2596_v13, %v2235_v47  ;;  %v9487_v26 = vld [vmem:[%s12913_s3 + $0x188] sm:$0xff]   ;;  %v2243_v41 = vld [vmem:[#allocation2 + $0x140] sm:$0xff]  ;;  %v11359_v13 = vpack.c.bf16 %v11085_v3, %v11063_v60 }
 0x290   :  { %4504 = vmatmul.mubr.bf16.gmra.mxu1 %v11061_v63  ;;  %5175 = vmatmul.mubr.bf16.gmra.mxu0 %v2516_v45  ;;  %v2517_v63 = vpack.c.bf16 %v11246_v56, %v11251_v1  ;;  %v2633_v45 = vpack.c.bf16 %v11206_v46, %v11168_v6  ;;  %v9483_v6 = vld [vmem:[%s12913_s3 + $0x190] sm:$0xff]   ;;  %v9486_v46 = vld [vmem:[%s12913_s3 + $0x1c8] sm:$0xff]  }
 0x291   :  { %4544 = vmatprep.mubr.bf16.mxu1 %v2244_v59  ;;  %5182 = vmatprep.mubr.bf16.mxu0 %v2541_v57  ;;  %v9489_v59 = vld [vmem:[%s12913_s3 + $0x620] sm:$0xff]   ;;  %v9492_v57 = vld [vmem:[%s12913_s3 + $0x618] sm:$0xff]  }
 0x298   :  { %4545 = vmatmul.mubr.bf16.vlgmr.msra.gmra.mxu1 %v2219_v11  ;;  %5183 = vmatmul.mubr.bf16.gmra.mxu0 %v2517_v63  ;;  %v2236_v11 = vld [vmem:[#allocation2 + $0xd0] sm:$0xff] }
 0x299   :  { %8251 = vmatpush3.bf16.msra.mxu1 %v9469_v7  ;;  %4552 = vmatprep.mubr.bf16.mxu1 %v2245_v44  ;;  %v11318_v7 = vpack.c.bf16 %v10893_v14, %v10839_v10  ;;  %v2622_v63 = vld [vmem:[#allocation2 + $0xb1] sm:$0xff] }
 0x29a   :  { %5320 = vmatprep.mubr.bf16.mxu0 %v2631_v40  ;;  %8252 = vmatprep.subr.bf16.mxu1 %v9474_v54  ;;  %v2248_v54 = vpack.c.bf16 %v2237_v21, %v2236_v11  ;;  %v2634_v44 = vpack.c.bf16 %v2622_v63, %v11201_v31  ;;  %v9490_v40 = vld [vmem:[%s12913_s3 + $0x1c0] sm:$0xff]   ;;  %v2630_v11 = vld [vmem:[#allocation2 + $0x171] sm:$0xff] }
 0x29b   :  { %v9491_v31 = vld [vmem:[%s12913_s3 + $0x180] sm:$0xff]   ;;  %v2638_v63 = vpack.c.bf16 %v2630_v11, %v11246_v56  ;;  %v9495_v56 = vld [vmem:[%s12913_s3 + $0x238] sm:$0xff]  }
 0x29c   :  { %v2280_v11 = vld [vmem:[#allocation2 + $0x52] sm:$0xff] }
 0x29d   :  { %8253 = vmatpush3.bf16.msra.mxu1 %v9475_v8  ;;  %v9493_v8 = vld [vmem:[%s12913_s3 + $0x610] sm:$0xff]  }
 0x29e   :  { %8254 = vmatprep.subr.bf16.mxu1 %v9476_v4  ;;  %v2597_v4 = vld [vmem:[#allocation2 + $0xa0] sm:$0xff] }
 0x2a0   :  { %4553 = vmatmul.mubr.bf16.gmra.mxu1 %v2220_v20  ;;  %5321 = vmatmul.mubr.bf16.vlgmr.msra.gmra.mxu0 %v2607_v25  ;;  %v2239_v20 = vld [vmem:[#allocation2 + $0x100] sm:$0xff]  ;;  %v2598_v25 = vld [vmem:[#allocation2 + $0xb0] sm:$0xff] }
 0x2a1   :  { %4560 = vmatprep.mubr.bf16.mxu1 %v2246_v61  ;;  %5328 = vmatprep.mubr.bf16.mxu0 %v2632_v48  ;;  %v2610_v61 = vpack.c.bf16 %v2598_v25, %v2597_v4  ;;  %v2238_v48 = vld [vmem:[#allocation2 + $0xf0] sm:$0xff] }
 0x2a2   :  { %8255 = vmatpush3.bf16.msra.mxu1 %v9477_v16  ;;  %9224 = vmatpush3.bf16.msra.mxu0 %v11225_v43  ;;  %v9481_v43 = vld [vmem:[%s12913_s3 + $0x198] sm:$0xff]   ;;  %v2223_v16 = vpack.c.bf16 %v10966_v55, %v2211_v12 }
 0x2a3   :  { %8256 = vmatprep.subr.bf16.mxu1 %v9478_v32  ;;  %9225 = vmatprep.subr.bf16.mxu0 %v9485_v35  ;;  %v2249_v32 = vpack.c.bf16 %v2239_v20, %v2238_v48 }
 0x2a6   :  { %8257 = vmatpush3.bf16.msra.mxu1 %v9479_v29  ;;  %9226 = vmatpush3.bf16.msra.mxu0 %v9485_v35  ;;  %v9497_v35 = vld [vmem:[%s12913_s3 + $0x600] sm:$0xff]  }
 0x2a7   :  { %8258 = vmatprep.subr.bf16.mxu1 %v9480_v24  ;;  %9227 = vmatprep.subr.bf16.mxu0 %v9488_v9  ;;  %v2241_v29 = vld [vmem:[#allocation2 + $0x120] sm:$0xff]  ;;  %v2600_v24 = vld [vmem:[#allocation2 + $0x110] sm:$0xff] }
 0x2a8   :  { %4561 = vmatmul.mubr.bf16.gmra.mxu1 %v11293_v18  ;;  %5329 = vmatmul.mubr.bf16.gmra.mxu0 %v2608_v17  ;;  %v2611_v47 = vpack.c.bf16 %v2600_v24, %v2239_v20  ;;  %v2250_v15 = vpack.c.bf16 %v2241_v29, %v2600_v24  ;;  %v2602_v17 = vld [vmem:[#allocation2 + $0x130] sm:$0xff] }
 0x2a9   :  { %4568 = vmatprep.mubr.bf16.mxu1 %v2247_v36  ;;  %5336 = vmatprep.mubr.bf16.mxu0 %v2633_v45  ;;  %v2251_v36 = vpack.c.bf16 %v2243_v41, %v2602_v17  ;;  %v2637_v45 = vpack.c.bf16 %v11251_v1, %v11240_v33  ;;  %v2606_v20 = vld [vmem:[#allocation2 + $0x170] sm:$0xff] }
 0x2aa   :  { %8259 = vmatpush3.bf16.msra.mxu1 %v9481_v43  ;;  %9228 = vmatpush3.bf16.msra.mxu0 %v9488_v9  ;;  %v2224_v9 = vpack.c.bf16 %v11025_v58, %v10954_v62  ;;  %v2612_v43 = vpack.c.bf16 %v2602_v17, %v2241_v29  ;;  %v9498_v29 = vld [vmem:[%s12913_s3 + $0x270] sm:$0xff]  }
 0x2ab   :  { %8260 = vmatprep.subr.bf16.mxu1 %v9482_v5  ;;  %9229 = vmatprep.subr.bf16.mxu0 %v9489_v59 }
 0x2ae   :  { %8261 = vmatpush3.bf16.msra.mxu1 %v9483_v6  ;;  %9230 = vmatpush3.bf16.msra.mxu0 %v9489_v59 }
 0x2af   :  { %8262 = vmatprep.subr.bf16.mxu1 %v9486_v46  ;;  %9231 = vmatprep.subr.bf16.mxu0 %v9492_v57  ;;  %v2277_v46 = vld [vmem:[#allocation2 + $0x22] sm:$0xff] }
 0x2b0   :  { %4569 = vmatmul.mubr.bf16.gmra.mxu1 %v11318_v7  ;;  %5337 = vmatmul.mubr.bf16.gmra.mxu0 %v2609_v22  ;;  %v2292_v1 = vpack.c.bf16 %v2277_v46, %v11089_v34  ;;  %v2279_v34 = vld [vmem:[#allocation2 + $0x42] sm:$0xff] }
 0x2b1   :  { %4576 = vmatprep.mubr.bf16.mxu1 %v2248_v54  ;;  %5344 = vmatprep.mubr.bf16.mxu0 %v2634_v44  ;;  %v2281_v46 = vld [vmem:[#allocation2 + $0x62] sm:$0xff] }
 0x2b2   :  { %8263 = vmatpush3.bf16.msra.mxu1 %v9487_v26  ;;  %9232 = vmatpush3.bf16.msra.mxu0 %v9492_v57  ;;  %v2604_v57 = vld [vmem:[#allocation2 + $0x150] sm:$0xff] }
 0x2b3   :  { %8264 = vmatprep.subr.bf16.mxu1 %v9490_v40  ;;  %9233 = vmatprep.subr.bf16.mxu0 %v9493_v8  ;;  %v2613_v22 = vpack.c.bf16 %v2604_v57, %v2243_v41  ;;  %v9499_v41 = vld [vmem:[%s12913_s3 + $0x230] sm:$0xff]  }
 0x2b6   :  { %8265 = vmatpush3.bf16.msra.mxu1 %v9491_v31  ;;  %9234 = vmatpush3.bf16.msra.mxu0 %v9493_v8  ;;  %v2605_v31 = vld [vmem:[#allocation2 + $0x160] sm:$0xff] }
 0x2b7   :  { %8314 = vmatprep.subr.bf16.mxu1 %v9494_v51  ;;  %9235 = vmatprep.subr.bf16.mxu0 %v9496_v53 }
 0x2b8   :  { %4577 = vmatmul.mubr.bf16.gmra.mxu1 %v2223_v16  ;;  %5345 = vmatmul.mubr.bf16.gmra.mxu0 %v2610_v61  ;;  %v9720_v61 = vld [vmem:[#allocation2 + $0x21] sm:$0xff] }
 0x2b9   :  { %4584 = vmatprep.mubr.bf16.mxu1 %v2249_v32  ;;  %5352 = vmatprep.mubr.bf16.mxu0 %v11005_v27  ;;  %v11350_v27 = vpack.c.bf16 %v11071_v19, %v11015_v42  ;;  %v2614_v32 = vpack.c.bf16 %v2606_v20, %v2605_v31  ;;  %v9502_v31 = vld [vmem:[%s12913_s3 + $0x260] sm:$0xff]  }
 0x2ba   :  { %9236 = vmatpush3.bf16.msra.mxu0 %v9496_v53  ;;  %v2252_v53 = vld [vmem:[#allocation2 + $0x11] sm:$0xff] }
 0x2bb   :  { %9237 = vmatprep.subr.bf16.mxu0 %v9497_v35  ;;  %v2268_v48 = vpack.c.bf16 %v9720_v61, %v2252_v53  ;;  %v2693_v61 = vld [vmem:[#allocation2 + $0xa4] sm:$0xff] }
 0x2be   :  { %9238 = vmatpush3.bf16.msra.mxu0 %v9497_v35  ;;  %v2278_v35 = vld [vmem:[#allocation2 + $0x32] sm:$0xff] }
 0x2c0   :  { %4585 = vmatmul.mubr.bf16.gmra.mxu1 %v2224_v9  ;;  %5353 = vmatmul.mubr.bf16.gmra.mxu0 %v2611_v47  ;;  %v2293_v9 = vpack.c.bf16 %v2279_v34, %v2278_v35  ;;  %v2283_v35 = vld [vmem:[#allocation2 + $0x82] sm:$0xff] }
 0x2c1   :  { %4592 = vmatprep.mubr.bf16.mxu1 %v2250_v15  ;;  %5360 = vmatprep.mubr.bf16.mxu0 %v11055_v30 }
 0x2c5   :  { %v8074_v5 = vpop.f32.mrf.mxu1 }
 0x2c7   :  { %v8075_v59 = vpop.f32.mrf.mxu1 }
 0x2c8   :  { %4593 = vmatmul.mubr.bf16.gmra.mxu1 %v11350_v27  ;;  %5361 = vmatmul.mubr.bf16.gmra.mxu0 %v2612_v43  ;;  %v11355_v6 = vadd.f32 %v8075_v59, %v8074_v5 }
 0x2c9   :  { %4600 = vmatprep.mubr.bf16.mxu1 %v2251_v36  ;;  %5368 = vmatprep.mubr.bf16.mxu0 %v2637_v45  ;;  %v8077_v30 = vpop.f32.mrf.mxu1  ;;  %v9500_v36 = vld [vmem:[%s12913_s3 + $0x268] sm:$0xff]  }
 0x2cb   :  { %v8078_v21 = vpop.f32.mrf.mxu1 }
 0x2cc   :  { %v11361_v33 = vadd.f32 %v8078_v21, %v8077_v30 }
 0x2cd   :  { %v8080_v26 = vpop.f32.mrf.mxu1  ;;  %v8458_v54 = vpop.f32.mrf.mxu0 }
 0x2cf   :  { %v8081_v44 = vpop.f32.mrf.mxu1  ;;  %v8459_v40 = vpop.f32.mrf.mxu0 }
 0x2d0   :  { %4601 = vmatmul.mubr.bf16.gmra.mxu1 %v11359_v13  ;;  %5369 = vmatmul.mubr.bf16.gmra.mxu0 %v2613_v22  ;;  %v11366_v8 = vadd.f32 %v8081_v44, %v8080_v26  ;;  %v11368_v4 = vadd.f32 %v8459_v40, %v8458_v54  ;;  %v2294_v54 = vpack.c.bf16 %v2281_v46, %v2280_v11  ;;  %v9722_v44 = vld [vmem:[#allocation2 + $0x84] sm:$0xff] }
 0x2d1   :  { %4641 = vmatprep.mubr.bf16.mxu1 %v2292_v1  ;;  %5376 = vmatprep.mubr.bf16.mxu0 %v2638_v63  ;;  %v8083_v12 = vpop.f32.mrf.mxu1  ;;  %v11370_v51 = vpop.f32.mrf.mxu0  ;;  %v2692_v1 = vld [vmem:[#allocation2 + $0x94] sm:$0xff]  ;;  %v9501_v63 = vld [vmem:[%s12913_s3 + $0x228] sm:$0xff]   ;;  %v13135_v46 = vpack.c.bf16 %v10837_v49, %v10857_v52 }
 0x2d2   :  { %v2705_v40 = vpack.c.bf16 %v2692_v1, %v9722_v44  ;;  %v11438_v1 = vld [vmem:[#allocation2 + $0x81] sm:$0xff] }
 0x2d3   :  { %v8084_v25 = vpop.f32.mrf.mxu1  ;;  %v11375_v16 = vpop.f32.mrf.mxu0  ;;  %v9508_v49 = vld [vmem:[%s12913_s3 + $0x248] sm:$0xff]  }
 0x2d4   :  { %v11380_v24 = vadd.f32 %v8084_v25, %v8083_v12  ;;  %v2285_v52 = vld [vmem:[#allocation2 + $0xe2] sm:$0xff] }
 0x2d5   :  { %v8086_v47 = vpop.f32.mrf.mxu1  ;;  %v8464_v15 = vpop.f32.mrf.mxu0  ;;  %v9509_v44 = vld [vmem:[%s12913_s3 + $0x208] sm:$0xff]  }
 0x2d7   :  { %v8087_v17 = vpop.f32.mrf.mxu1  ;;  %v8465_v43 = vpop.f32.mrf.mxu0 }
 0x2d8   :  { %4642 = vmatmul.mubr.bf16.vlgmr.msra.gmra.mxu1 %v2268_v48  ;;  %5377 = vmatmul.mubr.bf16.gmra.mxu0 %v2614_v32  ;;  %v11389_v45 = vadd.f32 %v8087_v17, %v8086_v47  ;;  %v11391_v5 = vadd.f32 %v8465_v43, %v8464_v15  ;;  %v9504_v48 = vld [vmem:[%s12913_s3 + $0x258] sm:$0xff]  }
 0x2d9   :  { %8315 = vmatpush3.bf16.msra.mxu1 %v9495_v56  ;;  %4649 = vmatprep.mubr.bf16.mxu1 %v2293_v9  ;;  %v8089_v59 = vpop.f32.mrf.mxu1  ;;  %v11393_v30 = vpop.f32.mrf.mxu0  ;;  %v9503_v56 = vld [vmem:[%s12913_s3 + $0x220] sm:$0xff]   ;;  %v9505_v17 = vld [vmem:[%s12913_s3 + $0x218] sm:$0xff]  }
 0x2da   :  { %9239 = vmatprep.mubr.bf16.mxu0 %v11293_v18  ;;  %8316 = vmatprep.subr.bf16.mxu1 %v9498_v29  ;;  %v9721_v18 = vld [vmem:[#allocation2 + $0x31] sm:$0xff] }
 0x2db   :  { %v8090_v57 = vpop.f32.mrf.mxu1  ;;  %v11395_v21 = vpop.f32.mrf.mxu0  ;;  %v2269_v22 = vpack.c.bf16 %v11253_v28, %v9721_v18  ;;  %v2694_v29 = vld [vmem:[#allocation2 + $0xb4] sm:$0xff] }
 0x2dc   :  { %v11401_v26 = vadd.f32 %v8090_v57, %v8089_v59  ;;  %v2706_v15 = vpack.c.bf16 %v2694_v29, %v2693_v61  ;;  %v9506_v59 = vld [vmem:[%s12913_s3 + $0x250] sm:$0xff]  }
 0x2dd   :  { %8317 = vmatpush3.bf16.msra.mxu1 %v9499_v41  ;;  %v8092_v12 = vpop.f32.mrf.mxu1  ;;  %v8470_v34 = vpop.f32.mrf.mxu0  ;;  %v2282_v41 = vld [vmem:[#allocation2 + $0x72] sm:$0xff] }
 0x2de   :  { %8318 = vmatprep.subr.bf16.mxu1 %v9500_v36  ;;  %v2295_v36 = vpack.c.bf16 %v2283_v35, %v2282_v41  ;;  %v2702_v61 = vld [vmem:[#allocation2 + $0x174] sm:$0xff] }
 0x2df   :  { %v8093_v28 = vpop.f32.mrf.mxu1  ;;  %v8471_v53 = vpop.f32.mrf.mxu0 }
 0x2e0   :  { %4650 = vmatmul.mubr.bf16.gmra.mxu1 %v2269_v22  ;;  %9240 = vmatmul.mubr.bf16.vlgmr.msra.gmra.mxu0 %v11318_v7  ;;  %v11410_v20 = vadd.f32 %v8093_v28, %v8092_v12  ;;  %v11412_v25 = vadd.f32 %v8471_v53, %v8470_v34  ;;  %v9507_v22 = vld [vmem:[%s12913_s3 + $0x210] sm:$0xff]   ;;  %v9510_v12 = vld [vmem:[%s12913_s3 + $0x240] sm:$0xff]   ;;  %v9512_v28 = vld [vmem:[%s12913_s3 + $0x2f8] sm:$0xff]  }
 0x2e1   :  { %4657 = vmatprep.mubr.bf16.mxu1 %v2294_v54  ;;  %9243 = vmatprep.mubr.bf16.mxu0 %v2705_v40  ;;  %v8095_v7 = vpop.f32.mrf.mxu1  ;;  %v11417_v32 = vpop.f32.mrf.mxu0  ;;  %v2700_v54 = vld [vmem:[#allocation2 + $0x154] sm:$0xff]  ;;  %v2701_v34 = vld [vmem:[#allocation2 + $0x164] sm:$0xff] }
 0x2e2   :  { %8319 = vmatpush3.bf16.msra.mxu1 %v9501_v63  ;;  %v2271_v63 = vpack.c.bf16 %v11438_v1, %v11269_v38  ;;  %v9511_v38 = vld [vmem:[%s12913_s3 + $0x200] sm:$0xff]   ;;  %v2710_v35 = vpack.c.bf16 %v2702_v61, %v2701_v34 }
 0x2e3   :  { %8320 = vmatprep.subr.bf16.mxu1 %v9502_v31  ;;  %v8096_v9 = vpop.f32.mrf.mxu1  ;;  %v11419_v47 = vpop.f32.mrf.mxu0  ;;  %v2709_v31 = vpack.c.bf16 %v2700_v54, %v11087_v50  ;;  %v2287_v53 = vld [vmem:[#allocation2 + $0x102] sm:$0xff] }
 0x2e4   :  { %v11424_v43 = vadd.f32 %v8096_v9, %v8095_v7 }
 0x2e6   :  { %8321 = vmatpush3.bf16.msra.mxu1 %v9503_v56  ;;  %v2260_v56 = vld [vmem:[#allocation2 + $0xd1] sm:$0xff] }
 0x2e7   :  { %8322 = vmatprep.subr.bf16.mxu1 %v9504_v48  ;;  %v8476_v57 = vpop.f32.mrf.mxu0  ;;  %v13136_v48 = vld [vmem:[#allocation8_spill] sm:$0xff] }
 0x2e8   :  { %4658 = vmatmul.mubr.bf16.gmra.mxu1 %v13135_v46  ;;  %9244 = vmatmul.mubr.bf16.gmra.mxu0 %v2706_v15  ;;  %v2272_v7 = vpack.c.bf16 %v13136_v48, %v2260_v56 }
 0x2e9   :  { %4665 = vmatprep.mubr.bf16.mxu1 %v2295_v36  ;;  %9247 = vmatprep.mubr.bf16.mxu0 %v11350_v27  ;;  %v8477_v18 = vpop.f32.mrf.mxu0  ;;  %v2284_v27 = vld [vmem:[#allocation2 + $0xd2] sm:$0xff] }
 0x2ea   :  { %8323 = vmatpush3.bf16.msra.mxu1 %v9505_v17  ;;  %v11436_v11 = vadd.f32 %v8477_v18, %v8476_v57  ;;  %v2296_v40 = vpack.c.bf16 %v2285_v52, %v2284_v27  ;;  %v13139_v18 = vld [vmem:[#allocation70_spill] sm:$0xff]  ;;  %v2288_v52 = vld [vmem:[#allocation2 + $0x112] sm:$0xff] }
 0x2eb   :  { %8324 = vmatprep.subr.bf16.mxu1 %v9506_v59  ;;  %v11460_v15 = vpop.f32.mrf.mxu0  ;;  %v2289_v59 = vld [vmem:[#allocation2 + $0x122] sm:$0xff] }
 0x2ec   :  { %13137 = vst [vmem:[#allocation41_spill] sm:$0xff] %v11460_v15  ;;  %v2298_v27 = vpack.c.bf16 %v2289_v59, %v2288_v52 }
 0x2ed   :  { %v11464_v46 = vpop.f32.mrf.mxu0 }
 0x2ee   :  { %8325 = vmatpush3.bf16.msra.mxu1 %v9507_v22  ;;  %13138 = vst [vmem:[#allocation10_spill] sm:$0xff] %v11464_v46  ;;  %v13140_v22 = vld [vmem:[#allocation40_spill] sm:$0xff] }
 0x2ef   :  { %8326 = vmatprep.subr.bf16.mxu1 %v9508_v49  ;;  %v2273_v49 = vpack.c.bf16 %v13140_v22, %v13139_v18 }
 0x2f0   :  { %4666 = vmatmul.mubr.bf16.gmra.mxu1 %v2271_v63  ;;  %9248 = vmatmul.mubr.bf16.gmra.mxu0 %v11359_v13  ;;  %v2286_v13 = vld [vmem:[#allocation2 + $0xf2] sm:$0xff] }
 0x2f1   :  { %4673 = vmatprep.mubr.bf16.mxu1 %v2296_v40  ;;  %9251 = vmatprep.mubr.bf16.mxu0 %v2709_v31  ;;  %v2297_v29 = vpack.c.bf16 %v2287_v53, %v2286_v13  ;;  %v2291_v53 = vld [vmem:[#allocation2 + $0x142] sm:$0xff]  ;;  %v2290_v13 = vld [vmem:[#allocation2 + $0x132] sm:$0xff] }
 0x2f2   :  { %8327 = vmatpush3.bf16.msra.mxu1 %v9509_v44 }
 0x2f3   :  { %8328 = vmatprep.subr.bf16.mxu1 %v9510_v12 }
 0x2f6   :  { %8329 = vmatpush3.bf16.msra.mxu1 %v9511_v38 }
 0x2f7   :  { %8378 = vmatprep.subr.bf16.mxu1 %v9512_v28 }
 0x2f8   :  { %v8098_v9 = vpop.f32.mrf.mxu1  ;;  %4674 = vmatmul.mubr.bf16.gmra.mxu1 %v2272_v7  ;;  %9252 = vmatmul.mubr.bf16.gmra.mxu0 %v2710_v35  ;;  %v13142_v7 = vld [vmem:[#allocation9_spill] sm:$0xff] }
 0x2f9   :  { %4681 = vmatprep.mubr.bf16.mxu1 %v2297_v29  ;;  %v2274_v35 = vpack.c.bf16 %v11065_v2, %v13142_v7 }
 0x2fa   :  { %v8099_v41 = vpop.f32.mrf.mxu1 }
 0x2fb   :  { %v11462_v17 = vadd.f32 %v8099_v41, %v8098_v9  ;;  %v2299_v41 = vpack.c.bf16 %v2291_v53, %v2290_v13  ;;  %v13146_v13 = vld [vmem:[#allocation100_spill] sm:$0xff] }
 0x2fc   :  { %v8101_v36 = vpop.f32.mrf.mxu1 }
 0x2fe   :  { %v8102_v57 = vpop.f32.mrf.mxu1 }
 0x2ff   :  { %v11468_v63 = vadd.f32 %v8102_v57, %v8101_v36 }
 0x300   :  { %v8104_v54 = vpop.f32.mrf.mxu1  ;;  %4682 = vmatmul.mubr.bf16.gmra.mxu1 %v2273_v49  ;;  %v8482_v44 = vpop.f32.mrf.mxu0 }
 0x301   :  { %4689 = vmatprep.mubr.bf16.mxu1 %v2298_v27 }
 0x302   :  { %v8105_v40 = vpop.f32.mrf.mxu1  ;;  %v8483_v31 = vpop.f32.mrf.mxu0 }
 0x303   :  { %v11470_v12 = vadd.f32 %v8105_v40, %v8104_v54  ;;  %v11472_v38 = vadd.f32 %v8483_v31, %v8482_v44  ;;  %v11484_v54 = vld [vmem:[#allocation2 + $0x141] sm:$0xff] }
 0x304   :  { %v8107_v34 = vpop.f32.mrf.mxu1  ;;  %v8485_v28 = vpop.f32.mrf.mxu0 }
 0x305   :  { %13141 = vst [vmem:[#allocation71_spill] sm:$0xff] %v11472_v38 }
 0x306   :  { %v8108_v56 = vpop.f32.mrf.mxu1  ;;  %v8486_v61 = vpop.f32.mrf.mxu0 }
 0x307   :  { %v11476_v29 = vadd.f32 %v8108_v56, %v8107_v34  ;;  %v11478_v9 = vadd.f32 %v8486_v61, %v8485_v28  ;;  %v2275_v28 = vpack.c.bf16 %v11484_v54, %v11073_v0 }
 0x308   :  { %v8110_v36 = vpop.f32.mrf.mxu1  ;;  %4690 = vmatmul.mubr.bf16.gmra.mxu1 %v2274_v35  ;;  %v8488_v59 = vpop.f32.mrf.mxu0 }
 0x309   :  { %13143 = vst [vmem:[#allocation72_spill] sm:$0xff] %v11478_v9  ;;  %4697 = vmatprep.mubr.bf16.mxu1 %v2299_v41  ;;  %v13147_v41 = vld [vmem:[#allocation101_spill] sm:$0xff] }
 0x30a   :  { %v8111_v57 = vpop.f32.mrf.mxu1  ;;  %v8489_v49 = vpop.f32.mrf.mxu0 }
 0x30b   :  { %v11480_v52 = vadd.f32 %v8111_v57, %v8110_v36  ;;  %v11482_v27 = vadd.f32 %v8489_v49, %v8488_v59  ;;  %v13148_v36 = vpack.c.bf16 %v13146_v13, %v13147_v41  ;;  %v9514_v13 = vld [vmem:[%s12913_s3 + $0x2f0] sm:$0xff]  }
 0x30c   :  { %v8113_v44 = vpop.f32.mrf.mxu1  ;;  %v8491_v40 = vpop.f32.mrf.mxu0 }
 0x30d   :  { %13144 = vst [vmem:[#allocation42_spill] sm:$0xff] %v11482_v27  ;;  %v2301_v27 = vld [vmem:[#allocation2 + $0x23] sm:$0xff] }
 0x30e   :  { %v8114_v31 = vpop.f32.mrf.mxu1  ;;  %v8492_v34 = vpop.f32.mrf.mxu0 }
 0x30f   :  { %v11488_v53 = vadd.f32 %v8114_v31, %v8113_v44  ;;  %v11490_v56 = vadd.f32 %v8492_v34, %v8491_v40  ;;  %v2300_v44 = vld [vmem:[#allocation2 + $0x13] sm:$0xff] }
 0x310   :  { %v8116_v61 = vpop.f32.mrf.mxu1  ;;  %4698 = vmatmul.mubr.bf16.gmra.mxu1 %v2275_v28  ;;  %v8494_v35 = vpop.f32.mrf.mxu0  ;;  %v9513_v40 = vld [vmem:[%s12913_s3 + $0x2b8] sm:$0xff]   ;;  %v2316_v28 = vpack.c.bf16 %v2301_v27, %v2300_v44 }
 0x311   :  { %13145 = vst [vmem:[#allocation11_spill] sm:$0xff] %v11490_v56  ;;  %4738 = vmatprep.mubr.bf16.mxu1 %v13148_v36 }
 0x312   :  { %v8117_v59 = vpop.f32.mrf.mxu1  ;;  %v8495_v57 = vpop.f32.mrf.mxu0 }
 0x313   :  { %v11495_v49 = vadd.f32 %v8117_v59, %v8116_v61  ;;  %v11497_v23 = vadd.f32 %v8495_v57, %v8494_v35  ;;  %v11512_v35 = vld [vmem:[%s12914_s4] ss:$0 sm:$0xff]  ;;  %v13151_v57 = vld [vmem:[#allocation69_spill] sm:$0xff] }
 0x314   :  { %v8119_v9 = vpop.f32.mrf.mxu1  ;;  %v8497_v38 = vpop.f32.mrf.mxu0  ;;  %v13152_v27 = vpack.c.bf16 %v13151_v57, %v10786_v39 }
 0x315   :  { %13149 = vst [vmem:[#allocation73_spill] sm:$0xff] %v11497_v23  ;;  %v2302_v23 = vld [vmem:[#allocation2 + $0x33] sm:$0xff] }
 0x316   :  { %v8120_v31 = vpop.f32.mrf.mxu1  ;;  %v8498_v34 = vpop.f32.mrf.mxu0 }
 0x317   :  { %v11505_v41 = vadd.f32 %v8120_v31, %v8119_v9  ;;  %v11507_v61 = vadd.f32 %v8498_v34, %v8497_v38  ;;  %v9515_v9 = vld [vmem:[%s12913_s3 + $0x2b0] sm:$0xff]   ;;  %v9516_v31 = vld [vmem:[%s12913_s3 + $0x2e8] sm:$0xff]   ;;  %v4353_v34 = vadd.f32 %v11355_v6, %v11512_v35  ;;  %v9518_v6 = vld [vmem:[%s12913_s3 + $0x2e0] sm:$0xff]  }
 0x318   :  { %v8138_v36 = vpop.f32.mrf.mxu1  ;;  %4739 = vmatmul.mubr.bf16.vlgmr.msra.gmra.mxu1 %v2316_v28  ;;  %v8500_v59 = vpop.f32.mrf.mxu0 }
 0x319   :  { %13150 = vst [vmem:[#allocation43_spill] sm:$0xff] %v11507_v61  ;;  %8379 = vmatpush3.bf16.msra.mxu1 %v9513_v40  ;;  %4746 = vmatprep.mubr.bf16.mxu1 %v13152_v27  ;;  %v2303_v61 = vld [vmem:[#allocation2 + $0x43] sm:$0xff] }
 0x31a   :  { %v8139_v44 = vpop.f32.mrf.mxu1  ;;  %v8501_v38 = vpop.f32.mrf.mxu0  ;;  %8380 = vmatprep.subr.bf16.mxu1 %v9514_v13  ;;  %v9517_v13 = vld [vmem:[%s12913_s3 + $0x2a8] sm:$0xff]   ;;  %v2317_v15 = vpack.c.bf16 %v2303_v61, %v2302_v23  ;;  %v9519_v23 = vld [vmem:[%s12913_s3 + $0x2a0] sm:$0xff]  }
 0x31b   :  { %v8140_v28 = vadd.f32 %v8139_v44, %v8138_v36  ;;  %v11525_v40 = vadd.f32 %v8501_v38, %v8500_v59  ;;  %v4356_v36 = vadd.f32 %v11361_v33, %v11512_v35  ;;  %v9520_v33 = vld [vmem:[%s12913_s3 + $0x2d8] sm:$0xff]  }
 0x31c   :  { %v8141_v39 = vpop.f32.mrf.mxu1  ;;  %v8503_v57 = vpop.f32.mrf.mxu0 }
 0x31d   :  { %v11527_v27 = vadd.f32 %v8140_v28, %v4353_v34  ;;  %8381 = vmatpush3.bf16.msra.mxu1 %v9515_v9  ;;  %v13153_v28 = vpack.c.bf16 %v10839_v10, %v10859_v37  ;;  %v2305_v10 = vld [vmem:[#allocation2 + $0x63] sm:$0xff] }
 0x31e   :  { %v8142_v56 = vpop.f32.mrf.mxu1  ;;  %v8504_v46 = vpop.f32.mrf.mxu0  ;;  %8382 = vmatprep.subr.bf16.mxu1 %v9516_v31 }
 0x31f   :  { %v8143_v59 = vadd.f32 %v8142_v56, %v8141_v39  ;;  %v11537_v44 = vadd.f32 %v8504_v46, %v8503_v57 }
 0x320   :  { %v8144_v38 = vpop.f32.mrf.mxu1  ;;  %4747 = vmatmul.mubr.bf16.gmra.mxu1 %v2317_v15  ;;  %v8586_v9 = vpop.f32.mrf.mxu0  ;;  %v4361_v15 = vadd.f32 %v11366_v8, %v11512_v35  ;;  %v9522_v8 = vld [vmem:[%s12913_s3 + $0x2d0] sm:$0xff]  }
 0x321   :  { %v11539_v34 = vadd.f32 %v8143_v59, %v4356_v36  ;;  %4754 = vmatprep.mubr.bf16.mxu1 %v13153_v28  ;;  %8383 = vmatpush3.bf16.msra.mxu1 %v9517_v13  ;;  %v2304_v13 = vld [vmem:[#allocation2 + $0x53] sm:$0xff] }
 0x322   :  { %v8145_v61 = vpop.f32.mrf.mxu1  ;;  %v8587_v31 = vpop.f32.mrf.mxu0  ;;  %8384 = vmatprep.subr.bf16.mxu1 %v9518_v6  ;;  %v9521_v6 = vld [vmem:[%s12913_s3 + $0x298] sm:$0xff]   ;;  %v2318_v28 = vpack.c.bf16 %v2305_v10, %v2304_v13 }
 0x323   :  { %v8146_v46 = vadd.f32 %v8145_v61, %v8144_v38  ;;  %v11552_v56 = vadd.f32 %v8587_v31, %v8586_v9  ;;  %v4364_v38 = vadd.f32 %v11380_v24, %v11512_v35  ;;  %v9524_v24 = vld [vmem:[%s12913_s3 + $0x2c8] sm:$0xff]  }
 0x324   :  { %v8147_v37 = vpop.f32.mrf.mxu1  ;;  %v8589_v39 = vpop.f32.mrf.mxu0 }
 0x325   :  { %13154 = vst [vmem:[#allocation12_spill] sm:$0xff] %v11552_v56  ;;  %v11554_v57 = vadd.f32 %v8146_v46, %v4361_v15  ;;  %8385 = vmatpush3.bf16.msra.mxu1 %v9519_v23  ;;  %v13155_v46 = vld [vmem:[#allocation39_spill] sm:$0xff] }
 0x326   :  { %v8148_v36 = vpop.f32.mrf.mxu1  ;;  %v8590_v59 = vpop.f32.mrf.mxu0  ;;  %8386 = vmatprep.subr.bf16.mxu1 %v9520_v33  ;;  %v13156_v56 = vpack.c.bf16 %v13155_v46, %v10893_v14  ;;  %v9523_v33 = vld [vmem:[%s12913_s3 + $0x290] sm:$0xff]   ;;  %v2307_v14 = vld [vmem:[#allocation2 + $0x83] sm:$0xff] }
 0x327   :  { %v8149_v9 = vadd.f32 %v8148_v36, %v8147_v37  ;;  %v11564_v61 = vadd.f32 %v8590_v59, %v8589_v39  ;;  %v4369_v37 = vadd.f32 %v11389_v45, %v11512_v35  ;;  %v9526_v45 = vld [vmem:[%s12913_s3 + $0x2c0] sm:$0xff]  }
 0x328   :  { %v8150_v31 = vpop.f32.mrf.mxu1  ;;  %4755 = vmatmul.mubr.bf16.gmra.mxu1 %v2318_v28  ;;  %v8592_v23 = vpop.f32.mrf.mxu0  ;;  %v2306_v28 = vld [vmem:[#allocation2 + $0x73] sm:$0xff] }
 0x329   :  { %v11566_v15 = vadd.f32 %v8149_v9, %v4364_v38  ;;  %4762 = vmatprep.mubr.bf16.mxu1 %v13156_v56  ;;  %8387 = vmatpush3.bf16.msra.mxu1 %v9521_v6  ;;  %v2319_v46 = vpack.c.bf16 %v2307_v14, %v2306_v28 }
 0x32a   :  { %v8151_v10 = vpop.f32.mrf.mxu1  ;;  %v8593_v13 = vpop.f32.mrf.mxu0  ;;  %8388 = vmatprep.subr.bf16.mxu1 %v9522_v8  ;;  %v9525_v8 = vld [vmem:[%s12913_s3 + $0x288] sm:$0xff]  }
 0x32b   :  { %v8152_v39 = vadd.f32 %v8151_v10, %v8150_v31  ;;  %v11579_v36 = vadd.f32 %v8593_v13, %v8592_v23  ;;  %v4372_v31 = vadd.f32 %v11401_v26, %v11512_v35  ;;  %v9528_v26 = vld [vmem:[%s12913_s3 + $0x3f8] sm:$0xff]  }
 0x32c   :  { %v8153_v56 = vpop.f32.mrf.mxu1  ;;  %v8595_v6 = vpop.f32.mrf.mxu0 }
 0x32d   :  { %13157 = vst [vmem:[#allocation74_spill] sm:$0xff] %v11579_v36  ;;  %v11581_v59 = vadd.f32 %v8152_v39, %v4369_v37  ;;  %8389 = vmatpush3.bf16.msra.mxu1 %v9523_v33  ;;  %v13159_v39 = vpack.c.bf16 %v10954_v62, %v10966_v55  ;;  %v2309_v62 = vld [vmem:[#allocation2 + $0xe3] sm:$0xff] }
 0x32e   :  { %v8154_v38 = vpop.f32.mrf.mxu1  ;;  %v8596_v9 = vpop.f32.mrf.mxu0  ;;  %8390 = vmatprep.subr.bf16.mxu1 %v9524_v24  ;;  %v9527_v24 = vld [vmem:[%s12913_s3 + $0x280] sm:$0xff]  }
 0x32f   :  { %v8155_v23 = vadd.f32 %v8154_v38, %v8153_v56  ;;  %v11591_v10 = vadd.f32 %v8596_v9, %v8595_v6  ;;  %v4377_v56 = vadd.f32 %v11410_v20, %v11512_v35 }
 0x330   :  { %v8156_v13 = vpop.f32.mrf.mxu1  ;;  %4763 = vmatmul.mubr.bf16.gmra.mxu1 %v2319_v46  ;;  %v8598_v33 = vpop.f32.mrf.mxu0  ;;  %v2308_v46 = vld [vmem:[#allocation2 + $0xd3] sm:$0xff] }
 0x331   :  { %13158 = vst [vmem:[#allocation44_spill] sm:$0xff] %v11591_v10  ;;  %v11593_v37 = vadd.f32 %v8155_v23, %v4372_v31  ;;  %4770 = vmatprep.mubr.bf16.mxu1 %v13159_v39  ;;  %8391 = vmatpush3.bf16.msra.mxu1 %v9525_v8  ;;  %v4380_v39 = vadd.f32 %v11424_v43, %v11512_v35  ;;  %v2311_v43 = vld [vmem:[#allocation2 + $0x103] sm:$0xff] }
 0x332   :  { %v8157_v14 = vpop.f32.mrf.mxu1  ;;  %v8599_v28 = vpop.f32.mrf.mxu0  ;;  %8392 = vmatprep.subr.bf16.mxu1 %v9526_v45  ;;  %v2320_v45 = vpack.c.bf16 %v2309_v62, %v2308_v46  ;;  %v2310_v46 = vld [vmem:[#allocation2 + $0xf3] sm:$0xff] }
 0x333   :  { %v8158_v6 = vadd.f32 %v8157_v14, %v8156_v13  ;;  %v11606_v38 = vadd.f32 %v8599_v28, %v8598_v33  ;;  %v13160_v14 = vpack.c.bf16 %v11015_v42, %v11025_v58  ;;  %v4388_v42 = vadd.f32 %v11468_v63, %v11512_v35  ;;  %v2313_v63 = vld [vmem:[#allocation2 + $0x123] sm:$0xff] }
 0x334   :  { %v8159_v55 = vpop.f32.mrf.mxu1  ;;  %v8601_v8 = vpop.f32.mrf.mxu0 }
 0x335   :  { %v11608_v9 = vadd.f32 %v8158_v6, %v4377_v56  ;;  %8393 = vmatpush3.bf16.msra.mxu1 %v9527_v24 }
 0x336   :  { %v8160_v31 = vpop.f32.mrf.mxu1  ;;  %v8602_v23 = vpop.f32.mrf.mxu0  ;;  %8506 = vmatprep.subr.bf16.mxu1 %v9528_v26  ;;  %v4385_v26 = vadd.f32 %v11462_v17, %v11512_v35 }
 0x337   :  { %v8161_v10 = vadd.f32 %v8160_v31, %v8159_v55  ;;  %v11612_v36 = vadd.f32 %v8602_v23, %v8601_v8  ;;  %v2321_v23 = vpack.c.bf16 %v2311_v43, %v2310_v46  ;;  %v2312_v46 = vld [vmem:[#allocation2 + $0x113] sm:$0xff] }
 0x338   :  { %v8162_v20 = vpop.f32.mrf.mxu1  ;;  %4771 = vmatmul.mubr.bf16.gmra.mxu1 %v2320_v45  ;;  %v8604_v13 = vpop.f32.mrf.mxu0 }
 0x339   :  { %v11614_v33 = vadd.f32 %v8161_v10, %v4380_v39  ;;  %4778 = vmatprep.mubr.bf16.mxu1 %v13160_v14 }
 0x33a   :  { %v8163_v24 = vpop.f32.mrf.mxu1  ;;  %v8605_v28 = vpop.f32.mrf.mxu0 }
 0x33b   :  { %v8164_v56 = vadd.f32 %v8163_v24, %v8162_v20  ;;  %v11621_v6 = vadd.f32 %v8605_v28, %v8604_v13  ;;  %v13161_v13 = vpack.c.bf16 %v11063_v60, %v11071_v19  ;;  %v4393_v28 = vadd.f32 %v11470_v12, %v11512_v35 }
 0x33c   :  { %v8165_v62 = vpop.f32.mrf.mxu1  ;;  %v8607_v55 = vpop.f32.mrf.mxu0  ;;  %v4396_v60 = vadd.f32 %v11476_v29, %v11512_v35  ;;  %v2315_v29 = vld [vmem:[#allocation2 + $0x143] sm:$0xff] }
 0x33d   :  { %v11623_v8 = vadd.f32 %v8164_v56, %v4385_v26 }
 0x33e   :  { %v8166_v10 = vpop.f32.mrf.mxu1  ;;  %v8608_v31 = vpop.f32.mrf.mxu0 }
 0x33f   :  { %v8167_v58 = vadd.f32 %v8166_v10, %v8165_v62  ;;  %v11627_v45 = vadd.f32 %v8608_v31, %v8607_v55 }
 0x340   :  { %v8168_v39 = vpop.f32.mrf.mxu1  ;;  %4779 = vmatmul.mubr.bf16.gmra.mxu1 %v2321_v23  ;;  %v8610_v17 = vpop.f32.mrf.mxu0  ;;  %v2322_v23 = vpack.c.bf16 %v2313_v63, %v2312_v46  ;;  %v2314_v46 = vld [vmem:[#allocation2 + $0x133] sm:$0xff] }
 0x341   :  { %v11629_v20 = vadd.f32 %v8167_v58, %v4388_v42  ;;  %4786 = vmatprep.mubr.bf16.mxu1 %v13161_v13 }
 0x342   :  { %v8169_v14 = vpop.f32.mrf.mxu1  ;;  %v8611_v24 = vpop.f32.mrf.mxu0 }
 0x343   :  { %v8170_v26 = vadd.f32 %v8169_v14, %v8168_v39  ;;  %v11636_v56 = vadd.f32 %v8611_v24, %v8610_v17  ;;  %v13162_v17 = vpack.c.bf16 %v11087_v50, %v11085_v3  ;;  %v4401_v24 = vadd.f32 %v11480_v52, %v11512_v35 }
 0x344   :  { %v8171_v43 = vpop.f32.mrf.mxu1  ;;  %v8613_v62 = vpop.f32.mrf.mxu0  ;;  %v4404_v50 = vadd.f32 %v11488_v53, %v11512_v35  ;;  %v2349_v53 = vld [vmem:[#allocation2 + $0x20] sm:$0xff] }
 0x345   :  { %v11638_v55 = vadd.f32 %v8170_v26, %v4393_v28 }
 0x346   :  { %v8172_v10 = vpop.f32.mrf.mxu1  ;;  %v8614_v31 = vpop.f32.mrf.mxu0 }
 0x347   :  { %v8173_v19 = vadd.f32 %v8172_v10, %v8171_v43  ;;  %v11642_v42 = vadd.f32 %v8614_v31, %v8613_v62 }
 0x348   :  { %v8174_v58 = vpop.f32.mrf.mxu1  ;;  %4787 = vmatmul.mubr.bf16.gmra.mxu1 %v2322_v23  ;;  %v8616_v12 = vpop.f32.mrf.mxu0  ;;  %v2323_v23 = vpack.c.bf16 %v2315_v29, %v2314_v46 }
 0x349   :  { %v11644_v39 = vadd.f32 %v8173_v19, %v4396_v60  ;;  %4794 = vmatprep.mubr.bf16.mxu1 %v13162_v17  ;;  %v13166_v17 = vld [vmem:[#allocation38_spill] sm:$0xff] }
 0x34a   :  { %v8175_v13 = vpop.f32.mrf.mxu1  ;;  %v8617_v14 = vpop.f32.mrf.mxu0 }
 0x34b   :  { %v8176_v28 = vadd.f32 %v8175_v13, %v8174_v58  ;;  %v11651_v26 = vadd.f32 %v8617_v14, %v8616_v12  ;;  %v13165_v12 = vld [vmem:[#allocation7_spill] sm:$0xff] }
 0x34c   :  { %v8177_v63 = vpop.f32.mrf.mxu1  ;;  %v8619_v43 = vpop.f32.mrf.mxu0  ;;  %v13167_v13 = vpack.c.bf16 %v13165_v12, %v13166_v17 }
 0x34d   :  { %13163 = vst [vmem:[#allocation13_spill] sm:$0xff] %v11651_v26  ;;  %v11653_v62 = vadd.f32 %v8176_v28, %v4401_v24  ;;  %v4409_v28 = vadd.f32 %v11495_v49, %v11512_v35  ;;  %v2376_v49 = vld [vmem:[#allocation2 + $0x51] sm:$0xff] }
 0x34e   :  { %v8178_v10 = vpop.f32.mrf.mxu1  ;;  %v8620_v31 = vpop.f32.mrf.mxu0 }
 0x34f   :  { %v8179_v3 = vadd.f32 %v8178_v10, %v8177_v63  ;;  %v11657_v60 = vadd.f32 %v8620_v31, %v8619_v43  ;;  %v2375_v10 = vld [vmem:[#allocation2 + $0x41] sm:$0xff] }
 0x350   :  { %v8180_v19 = vpop.f32.mrf.mxu1  ;;  %4795 = vmatmul.mubr.bf16.gmra.mxu1 %v2323_v23  ;;  %v8622_v52 = vpop.f32.mrf.mxu0  ;;  %v11670_v23 = vld [vmem:[#allocation2 + $0x30] sm:$0xff] }
 0x351   :  { %13164 = vst [vmem:[#allocation45_spill] sm:$0xff] %v11657_v60  ;;  %v11659_v58 = vadd.f32 %v8179_v3, %v4404_v50  ;;  %4835 = vmatprep.mubr.bf16.mxu1 %v13167_v13  ;;  %v9529_v50 = vld [vmem:[%s12913_s3 + $0x3b8] sm:$0xff]   ;;  %v2365_v17 = vpack.c.bf16 %v11670_v23, %v2349_v53  ;;  %v9531_v53 = vld [vmem:[%s12913_s3 + $0x3b0] sm:$0xff]  }
 0x352   :  { %v8181_v14 = vpop.f32.mrf.mxu1  ;;  %v8623_v24 = vpop.f32.mrf.mxu0 }
 0x353   :  { %v8182_v29 = vadd.f32 %v8181_v14, %v8180_v19  ;;  %v11666_v46 = vadd.f32 %v8623_v24, %v8622_v52  ;;  %v9530_v19 = vld [vmem:[%s12913_s3 + $0x3f0] sm:$0xff]   ;;  %v4412_v52 = vadd.f32 %v11505_v41, %v11512_v35  ;;  %v2390_v24 = vpack.c.bf16 %v2376_v49, %v2375_v10  ;;  %v9532_v41 = vld [vmem:[%s12913_s3 + $0x3e8] sm:$0xff]  }
 0x354   :  { %v8183_v63 = vpop.f32.mrf.mxu1  ;;  %v8625_v43 = vpop.f32.mrf.mxu0  ;;  %v9533_v49 = vld [vmem:[%s12913_s3 + $0x3a8] sm:$0xff]  }
 0x355   :  { %13168 = vst [vmem:[#allocation14_spill] sm:$0xff] %v11666_v46  ;;  %v11668_v31 = vadd.f32 %v8182_v29, %v4409_v28 }
 0x356   :  { %v8184_v3 = vpop.f32.mrf.mxu1  ;;  %v8626_v12 = vpop.f32.mrf.mxu0 }
 0x357   :  { %v8185_v13 = vadd.f32 %v8184_v3, %v8183_v63  ;;  %v11681_v14 = vadd.f32 %v8626_v12, %v8625_v43  ;;  %v11693_v43 = vld [vmem:[#allocation2 + $0x40] sm:$0xff] }
 0x358   :  { %v8202_v28 = vpop.f32.mrf.mxu1  ;;  %4836 = vmatmul.mubr.bf16.vlgmr.msra.gmra.mxu1 %v2365_v17  ;;  %v8628_v29 = vpop.f32.mrf.mxu0  ;;  %v11698_v17 = vld [vmem:[#allocation2 + $0x50] sm:$0xff] }
 0x359   :  { %13169 = vst [vmem:[#allocation75_spill] sm:$0xff] %v11681_v14  ;;  %v11683_v46 = vadd.f32 %v8185_v13, %v4412_v52  ;;  %8507 = vmatpush3.bf16.msra.mxu1 %v9529_v50  ;;  %4843 = vmatprep.mubr.bf16.mxu1 %v2390_v24  ;;  %v2377_v50 = vld [vmem:[#allocation2 + $0x61] sm:$0xff] }
 0x35a   :  { %v8203_v60 = vpop.f32.mrf.mxu1  ;;  %v8629_v26 = vpop.f32.mrf.mxu0  ;;  %8508 = vmatprep.subr.bf16.mxu1 %v9530_v19  ;;  %v9534_v13 = vld [vmem:[%s12913_s3 + $0x3e0] sm:$0xff]  }
 0x35b   :  { %v8204_v35 = vadd.f32 %v8203_v60, %v8202_v28  ;;  %v11691_v63 = vadd.f32 %v8629_v26, %v8628_v29  ;;  %v2366_v26 = vpack.c.bf16 %v11698_v17, %v11693_v43  ;;  %v2378_v60 = vld [vmem:[#allocation2 + $0x71] sm:$0xff] }
 0x35c   :  { %v8205_v10 = vpop.f32.mrf.mxu1  ;;  %v8631_v3 = vpop.f32.mrf.mxu0  ;;  %v2391_v28 = vpack.c.bf16 %v2378_v60, %v2377_v50 }
 0x35d   :  { %13170 = vst [vmem:[#allocation76_spill] sm:$0xff] %v11691_v63  ;;  %v11696_v12 = vadd.f32 %v8204_v35, %v11527_v27  ;;  %8509 = vmatpush3.bf16.msra.mxu1 %v9531_v53  ;;  %v9535_v35 = vld [vmem:[%s12913_s3 + $0x3a0] sm:$0xff]  }
 0x35e   :  { %v8206_v19 = vpop.f32.mrf.mxu1  ;;  %v8632_v52 = vpop.f32.mrf.mxu0  ;;  %8510 = vmatprep.subr.bf16.mxu1 %v9532_v41 }
 0x35f   :  { %v8207_v27 = vadd.f32 %v8206_v19, %v8205_v10  ;;  %v11708_v24 = vadd.f32 %v8632_v52, %v8631_v3  ;;  %v9536_v10 = vld [vmem:[%s12913_s3 + $0x3d8] sm:$0xff]   ;;  %v11719_v19 = vld [vmem:[#allocation2 + $0x60] sm:$0xff] }
 0x360   :  { %v8208_v29 = vpop.f32.mrf.mxu1  ;;  %4844 = vmatmul.mubr.bf16.gmra.mxu1 %v2366_v26 }
 0x361   :  { %13171 = vst [vmem:[#allocation46_spill] sm:$0xff] %v11708_v24  ;;  %v11711_v53 = vadd.f32 %v8207_v27, %v11539_v34  ;;  %4851 = vmatprep.mubr.bf16.mxu1 %v2391_v28  ;;  %8511 = vmatpush3.bf16.msra.mxu1 %v9533_v49  ;;  %v11724_v34 = vld [vmem:[#allocation2 + $0x70] sm:$0xff]  ;;  %v9537_v49 = vld [vmem:[%s12913_s3 + $0x398] sm:$0xff]  }
 0x362   :  { %v8209_v41 = vpop.f32.mrf.mxu1  ;;  %8512 = vmatprep.subr.bf16.mxu1 %v9534_v13  ;;  %v2367_v60 = vpack.c.bf16 %v11724_v34, %v11719_v19  ;;  %v2380_v13 = vld [vmem:[#allocation2 + $0x91] sm:$0xff] }
 0x363   :  { %v8210_v3 = vadd.f32 %v8209_v41, %v8208_v29  ;;  %v9538_v27 = vld [vmem:[%s12913_s3 + $0x3d0] sm:$0xff]  }
 0x364   :  { %v8211_v50 = vpop.f32.mrf.mxu1  ;;  %v9539_v41 = vld [vmem:[%s12913_s3 + $0x390] sm:$0xff]  }
 0x365   :  { %v11722_v52 = vadd.f32 %v8210_v3, %v11554_v57  ;;  %8513 = vmatpush3.bf16.msra.mxu1 %v9535_v35  ;;  %v2392_v57 = vpack.c.bf16 %v2380_v13, %v11438_v1 }
 0x366   :  { %v8212_v26 = vpop.f32.mrf.mxu1  ;;  %8514 = vmatprep.subr.bf16.mxu1 %v9536_v10  ;;  %v9540_v10 = vld [vmem:[%s12913_s3 + $0x3c8] sm:$0xff]  }
 0x367   :  { %v8213_v28 = vadd.f32 %v8212_v26, %v8211_v50  ;;  %v11744_v26 = vld [vmem:[#allocation2 + $0x80] sm:$0xff] }
 0x368   :  { %v8214_v29 = vpop.f32.mrf.mxu1  ;;  %4852 = vmatmul.mubr.bf16.gmra.mxu1 %v2367_v60 }
 0x369   :  { %v11736_v35 = vadd.f32 %v8213_v28, %v11566_v15  ;;  %4859 = vmatprep.mubr.bf16.mxu1 %v2392_v57  ;;  %8515 = vmatpush3.bf16.msra.mxu1 %v9537_v49  ;;  %v11749_v15 = vld [vmem:[#allocation2 + $0x90] sm:$0xff]  ;;  %v9541_v49 = vld [vmem:[%s12913_s3 + $0x388] sm:$0xff]   ;;  %v9542_v28 = vld [vmem:[%s12913_s3 + $0x3c0] sm:$0xff]  }
 0x36a   :  { %v8215_v3 = vpop.f32.mrf.mxu1  ;;  %8516 = vmatprep.subr.bf16.mxu1 %v9538_v27  ;;  %v2368_v27 = vpack.c.bf16 %v11749_v15, %v11744_v26 }
 0x36b   :  { %v8216_v50 = vadd.f32 %v8215_v3, %v8214_v29  ;;  %v9543_v3 = vld [vmem:[%s12913_s3 + $0x380] sm:$0xff]  }
 0x36c   :  { %v8217_v1 = vpop.f32.mrf.mxu1 }
 0x36d   :  { %v11747_v60 = vadd.f32 %v8216_v50, %v11581_v59  ;;  %8517 = vmatpush3.bf16.msra.mxu1 %v9539_v41  ;;  %v13172_v41 = vpack.c.bf16 %v13139_v18, %v13136_v48  ;;  %v9544_v50 = vld [vmem:[%s12913_s3 + $0x4f8] sm:$0xff]  }
 0x36e   :  { %v8218_v13 = vpop.f32.mrf.mxu1  ;;  %8518 = vmatprep.subr.bf16.mxu1 %v9540_v10 }
 0x36f   :  { %v8219_v57 = vadd.f32 %v8218_v13, %v8217_v1  ;;  %v2357_v13 = vld [vmem:[#allocation2 + $0xe0] sm:$0xff] }
 0x370   :  { %v8220_v29 = vpop.f32.mrf.mxu1  ;;  %4860 = vmatmul.mubr.bf16.gmra.mxu1 %v2368_v27 }
 0x371   :  { %v11760_v59 = vadd.f32 %v8219_v57, %v11593_v37  ;;  %4867 = vmatprep.mubr.bf16.mxu1 %v13172_v41  ;;  %8519 = vmatpush3.bf16.msra.mxu1 %v9541_v49  ;;  %v11774_v57 = vld [vmem:[#allocation2 + $0xf0] sm:$0xff] }
 0x372   :  { %v8221_v10 = vpop.f32.mrf.mxu1  ;;  %8520 = vmatprep.subr.bf16.mxu1 %v9542_v28  ;;  %v2369_v18 = vpack.c.bf16 %v11774_v57, %v2357_v13  ;;  %v11788_v13 = vld [vmem:[#allocation2 + $0x110] sm:$0xff] }
 0x373   :  { %v8222_v1 = vadd.f32 %v8221_v10, %v8220_v29  ;;  %v13173_v29 = vpack.c.bf16 %v13142_v7, %v13140_v22  ;;  %v13174_v7 = vpack.c.bf16 %v11073_v0, %v11065_v2 }
 0x374   :  { %v8223_v27 = vpop.f32.mrf.mxu1 }
 0x375   :  { %v11772_v37 = vadd.f32 %v8222_v1, %v11608_v9  ;;  %8521 = vmatpush3.bf16.msra.mxu1 %v9543_v3  ;;  %v11783_v1 = vld [vmem:[#allocation2 + $0x100] sm:$0xff] }
 0x376   :  { %v8224_v48 = vpop.f32.mrf.mxu1  ;;  %8634 = vmatprep.subr.bf16.mxu1 %v9544_v50 }
 0x377   :  { %v8225_v49 = vadd.f32 %v8224_v48, %v8223_v27  ;;  %v2370_v27 = vpack.c.bf16 %v11788_v13, %v11783_v1 }
 0x378   :  { %v8226_v41 = vpop.f32.mrf.mxu1  ;;  %4868 = vmatmul.mubr.bf16.gmra.mxu1 %v2369_v18 }
 0x379   :  { %v11778_v28 = vadd.f32 %v8225_v49, %v11614_v33  ;;  %4875 = vmatprep.mubr.bf16.mxu1 %v13173_v29 }
 0x37a   :  { %v8227_v10 = vpop.f32.mrf.mxu1 }
 0x37b   :  { %v8228_v9 = vadd.f32 %v8227_v10, %v8226_v41  ;;  %v11803_v10 = vld [vmem:[#allocation2 + $0x130] sm:$0xff] }
 0x37c   :  { %v8229_v24 = vpop.f32.mrf.mxu1 }
 0x37d   :  { %v11786_v3 = vadd.f32 %v8228_v9, %v11623_v8  ;;  %v11798_v8 = vld [vmem:[#allocation2 + $0x120] sm:$0xff] }
 0x37e   :  { %v8230_v50 = vpop.f32.mrf.mxu1  ;;  %v2371_v9 = vpack.c.bf16 %v11803_v10, %v11798_v8 }
 0x37f   :  { %v8231_v33 = vadd.f32 %v8230_v50, %v8229_v24 }
 0x380   :  { %v8232_v48 = vpop.f32.mrf.mxu1  ;;  %4876 = vmatmul.mubr.bf16.gmra.mxu1 %v2370_v27 }
 0x381   :  { %v11793_v22 = vadd.f32 %v8231_v33, %v11629_v20  ;;  %4883 = vmatprep.mubr.bf16.mxu1 %v13174_v7  ;;  %v2388_v20 = vld [vmem:[#allocation2 + $0x151] sm:$0xff] }
 0x382   :  { %v8233_v18 = vpop.f32.mrf.mxu1  ;;  %v2396_v27 = vpack.c.bf16 %v2388_v20, %v11484_v54 }
 0x383   :  { %v8234_v49 = vadd.f32 %v8233_v18, %v8232_v48 }
 0x384   :  { %v8235_v41 = vpop.f32.mrf.mxu1 }
 0x385   :  { %v11801_v29 = vadd.f32 %v8234_v49, %v11638_v55  ;;  %v11811_v55 = vld [vmem:[#allocation2 + $0x140] sm:$0xff]  ;;  %v11816_v49 = vld [vmem:[#allocation2 + $0x150] sm:$0xff] }
 0x386   :  { %v8236_v24 = vpop.f32.mrf.mxu1  ;;  %v2372_v54 = vpack.c.bf16 %v11816_v49, %v11811_v55 }
 0x387   :  { %v8237_v50 = vadd.f32 %v8236_v24, %v8235_v41 }
 0x388   :  { %v8238_v2 = vpop.f32.mrf.mxu1  ;;  %4884 = vmatmul.mubr.bf16.gmra.mxu1 %v2371_v9 }
 0x389   :  { %v11809_v0 = vadd.f32 %v8237_v50, %v11644_v39  ;;  %4891 = vmatprep.mubr.bf16.mxu1 %v2396_v27  ;;  %v2486_v39 = vpack.c.bf16 %v11693_v43, %v11670_v23 }
 0x38a   :  { %v8239_v33 = vpop.f32.mrf.mxu1 }
 0x38b   :  { %v8240_v48 = vadd.f32 %v8239_v33, %v8238_v2  ;;  %v11828_v33 = vld [vmem:[#allocation2 + $0x34] sm:$0xff] }
 0x38c   :  { %v8241_v7 = vpop.f32.mrf.mxu1 }
 0x38d   :  { %v11814_v18 = vadd.f32 %v8240_v48, %v11653_v62  ;;  %v2445_v62 = vld [vmem:[#allocation2 + $0x24] sm:$0xff] }
 0x38e   :  { %v8242_v63 = vpop.f32.mrf.mxu1  ;;  %v2461_v43 = vpack.c.bf16 %v11828_v33, %v2445_v62  ;;  %v9549_v62 = vld [vmem:[%s12913_s3 + $0x4a8] sm:$0xff]  }
 0x38f   :  { %v8243_v41 = vadd.f32 %v8242_v63, %v8241_v7  ;;  %v9545_v63 = vld [vmem:[%s12913_s3 + $0x4b8] sm:$0xff]   ;;  %v2487_v7 = vpack.c.bf16 %v11719_v19, %v11698_v17 }
 0x390   :  { %v8244_v24 = vpop.f32.mrf.mxu1  ;;  %4892 = vmatmul.mubr.bf16.gmra.mxu1 %v2372_v54 }
 0x391   :  { %v11823_v9 = vadd.f32 %v8243_v41, %v11659_v58  ;;  %5029 = vmatprep.mubr.bf16.mxu1 %v2486_v39  ;;  %v9546_v58 = vld [vmem:[%s12913_s3 + $0x4f0] sm:$0xff]  }
 0x392   :  { %v8245_v20 = vpop.f32.mrf.mxu1  ;;  %v9547_v41 = vld [vmem:[%s12913_s3 + $0x4b0] sm:$0xff]  }
 0x393   :  { %v8246_v50 = vadd.f32 %v8245_v20, %v8244_v24  ;;  %v9548_v24 = vld [vmem:[%s12913_s3 + $0x4e8] sm:$0xff]  }
 0x394   :  { %v8247_v27 = vpop.f32.mrf.mxu1 }
 0x395   :  { %v11826_v2 = vadd.f32 %v8246_v50, %v11668_v31  ;;  %v11848_v50 = vld [vmem:[#allocation2 + $0x44] sm:$0xff] }
 0x396   :  { %v8248_v23 = vpop.f32.mrf.mxu1 }
 0x397   :  { %v8249_v48 = vadd.f32 %v8248_v23, %v8247_v27  ;;  %v9550_v23 = vld [vmem:[%s12913_s3 + $0x4e0] sm:$0xff]  }
 0x398   :  { %v8266_v54 = vpop.f32.mrf.mxu1  ;;  %5030 = vmatmul.mubr.bf16.vlgmr.msra.gmra.mxu1 %v2461_v43 }
 0x399   :  { %v11840_v31 = vadd.f32 %v8249_v48, %v11683_v46  ;;  %8635 = vmatpush3.bf16.msra.mxu1 %v9545_v63  ;;  %5037 = vmatprep.mubr.bf16.mxu1 %v2487_v7  ;;  %v11853_v46 = vld [vmem:[#allocation2 + $0x54] sm:$0xff]  ;;  %v9551_v7 = vld [vmem:[%s12913_s3 + $0x4a0] sm:$0xff]  }
 0x39a   :  { %v8267_v39 = vpop.f32.mrf.mxu1  ;;  %8636 = vmatprep.subr.bf16.mxu1 %v9546_v58  ;;  %v2462_v63 = vpack.c.bf16 %v11853_v46, %v11848_v50 }
 0x39b   :  { %v8268_v20 = vadd.f32 %v8267_v39, %v8266_v54 }
 0x39c   :  { %v8269_v17 = vpop.f32.mrf.mxu1 }
 0x39d   :  { %v11851_v19 = vadd.f32 %v8268_v20, %v11696_v12  ;;  %8637 = vmatpush3.bf16.msra.mxu1 %v9547_v41  ;;  %v2488_v12 = vpack.c.bf16 %v11744_v26, %v11724_v34  ;;  %v9552_v41 = vld [vmem:[%s12913_s3 + $0x4d8] sm:$0xff]   ;;  %v2477_v26 = vld [vmem:[#allocation2 + $0xa0] sm:$0xff] }
 0x39e   :  { %v8270_v27 = vpop.f32.mrf.mxu1  ;;  %8638 = vmatprep.subr.bf16.mxu1 %v9548_v24  ;;  %v11874_v24 = vld [vmem:[#allocation2 + $0x64] sm:$0xff]  ;;  %v11879_v20 = vld [vmem:[#allocation2 + $0x74] sm:$0xff] }
 0x39f   :  { %v8271_v43 = vadd.f32 %v8270_v27, %v8269_v17  ;;  %v9553_v17 = vld [vmem:[%s12913_s3 + $0x498] sm:$0xff]   ;;  %v2463_v27 = vpack.c.bf16 %v11879_v20, %v11874_v24 }
 0x3a0   :  { %v8272_v58 = vpop.f32.mrf.mxu1  ;;  %5038 = vmatmul.mubr.bf16.gmra.mxu1 %v2462_v63  ;;  %v9554_v63 = vld [vmem:[%s12913_s3 + $0x4d0] sm:$0xff]  }
 0x3a1   :  { %v11866_v48 = vadd.f32 %v8271_v43, %v11711_v53  ;;  %5045 = vmatprep.mubr.bf16.mxu1 %v2488_v12  ;;  %8639 = vmatpush3.bf16.msra.mxu1 %v9549_v62 }
 0x3a2   :  { %v8273_v54 = vpop.f32.mrf.mxu1  ;;  %8640 = vmatprep.subr.bf16.mxu1 %v9550_v23 }
 0x3a3   :  { %v8274_v39 = vadd.f32 %v8273_v54, %v8272_v58  ;;  %v9555_v58 = vld [vmem:[%s12913_s3 + $0x490] sm:$0xff]   ;;  %v9556_v54 = vld [vmem:[%s12913_s3 + $0x4c8] sm:$0xff]  }
 0x3a4   :  { %v8275_v34 = vpop.f32.mrf.mxu1 }
 0x3a5   :  { %v11877_v53 = vadd.f32 %v8274_v39, %v11722_v52  ;;  %8641 = vmatpush3.bf16.msra.mxu1 %v9551_v7  ;;  %v2489_v52 = vpack.c.bf16 %v2477_v26, %v11749_v15  ;;  %v11899_v39 = vld [vmem:[#allocation2 + $0x84] sm:$0xff] }
 0x3a6   :  { %v8276_v62 = vpop.f32.mrf.mxu1  ;;  %8642 = vmatprep.subr.bf16.mxu1 %v9552_v41  ;;  %v9557_v26 = vld [vmem:[%s12913_s3 + $0x488] sm:$0xff]  }
 0x3a7   :  { %v8277_v23 = vadd.f32 %v8276_v62, %v8275_v34 }
 0x3a8   :  { %v8278_v43 = vpop.f32.mrf.mxu1  ;;  %5046 = vmatmul.mubr.bf16.gmra.mxu1 %v2463_v27  ;;  %v9558_v27 = vld [vmem:[%s12913_s3 + $0x4c0] sm:$0xff]  }
 0x3a9   :  { %v11891_v12 = vadd.f32 %v8277_v23, %v11736_v35  ;;  %5053 = vmatprep.mubr.bf16.mxu1 %v2489_v52  ;;  %8643 = vmatpush3.bf16.msra.mxu1 %v9553_v17  ;;  %v11904_v35 = vld [vmem:[#allocation2 + $0x94] sm:$0xff] }
 0x3aa   :  { %v8279_v7 = vpop.f32.mrf.mxu1  ;;  %8644 = vmatprep.subr.bf16.mxu1 %v9554_v63  ;;  %v2464_v62 = vpack.c.bf16 %v11904_v35, %v11899_v39 }
 0x3ab   :  { %v8280_v41 = vadd.f32 %v8279_v7, %v8278_v43  ;;  %v9559_v43 = vld [vmem:[%s12913_s3 + $0x480] sm:$0xff]   ;;  %v9560_v7 = vld [vmem:[%s12913_s3 + $0x5f8] sm:$0xff]  }
 0x3ac   :  { %v8281_v15 = vpop.f32.mrf.mxu1 }
 0x3ad   :  { %v11902_v34 = vadd.f32 %v8280_v41, %v11747_v60  ;;  %8645 = vmatpush3.bf16.msra.mxu1 %v9555_v58  ;;  %v2490_v60 = vpack.c.bf16 %v11783_v1, %v11774_v57  ;;  %v2453_v41 = vld [vmem:[#allocation2 + $0xe4] sm:$0xff] }
 0x3ae   :  { %v8282_v17 = vpop.f32.mrf.mxu1  ;;  %8646 = vmatprep.subr.bf16.mxu1 %v9556_v54 }
 0x3af   :  { %v8283_v63 = vadd.f32 %v8282_v17, %v8281_v15 }
 0x3b0   :  { %v8284_v23 = vpop.f32.mrf.mxu1  ;;  %5054 = vmatmul.mubr.bf16.gmra.mxu1 %v2464_v62  ;;  %v2491_v62 = vpack.c.bf16 %v11798_v8, %v11788_v13 }
 0x3b1   :  { %v11917_v52 = vadd.f32 %v8283_v63, %v11760_v59  ;;  %5061 = vmatprep.mubr.bf16.mxu1 %v2490_v60  ;;  %8647 = vmatpush3.bf16.msra.mxu1 %v9557_v26  ;;  %v11928_v59 = vld [vmem:[#allocation2 + $0xf4] sm:$0xff] }
 0x3b2   :  { %v8285_v58 = vpop.f32.mrf.mxu1  ;;  %8648 = vmatprep.subr.bf16.mxu1 %v9558_v27  ;;  %v2465_v26 = vpack.c.bf16 %v11928_v59, %v2453_v41 }
 0x3b3   :  { %v8286_v54 = vadd.f32 %v8285_v58, %v8284_v23  ;;  %v11936_v23 = vld [vmem:[#allocation2 + $0x104] sm:$0xff] }
 0x3b4   :  { %v8287_v57 = vpop.f32.mrf.mxu1 }
 0x3b5   :  { %v11926_v1 = vadd.f32 %v8286_v54, %v11772_v37  ;;  %8649 = vmatpush3.bf16.msra.mxu1 %v9559_v43  ;;  %v11941_v54 = vld [vmem:[#allocation2 + $0x114] sm:$0xff] }
 0x3b6   :  { %v8288_v15 = vpop.f32.mrf.mxu1  ;;  %8762 = vmatprep.subr.bf16.mxu1 %v9560_v7  ;;  %v2466_v13 = vpack.c.bf16 %v11941_v54, %v11936_v23 }
 0x3b7   :  { %v8289_v17 = vadd.f32 %v8288_v15, %v8287_v57 }
 0x3b8   :  { %v8290_v27 = vpop.f32.mrf.mxu1  ;;  %5062 = vmatmul.mubr.bf16.gmra.mxu1 %v2465_v26 }
 0x3b9   :  { %v11934_v63 = vadd.f32 %v8289_v17, %v11778_v28  ;;  %5069 = vmatprep.mubr.bf16.mxu1 %v2491_v62  ;;  %v2492_v28 = vpack.c.bf16 %v11811_v55, %v11803_v10  ;;  %v2485_v62 = vld [vmem:[#allocation2 + $0x160] sm:$0xff] }
 0x3ba   :  { %v8291_v60 = vpop.f32.mrf.mxu1 }
 0x3bb   :  { %v8292_v37 = vadd.f32 %v8291_v60, %v8290_v27  ;;  %v11955_v60 = vld [vmem:[#allocation2 + $0x134] sm:$0xff] }
 0x3bc   :  { %v8293_v58 = vpop.f32.mrf.mxu1 }
 0x3bd   :  { %v11939_v43 = vadd.f32 %v8292_v37, %v11786_v3  ;;  %v11950_v3 = vld [vmem:[#allocation2 + $0x124] sm:$0xff] }
 0x3be   :  { %v8294_v7 = vpop.f32.mrf.mxu1  ;;  %v2467_v10 = vpack.c.bf16 %v11955_v60, %v11950_v3 }
 0x3bf   :  { %v8295_v8 = vadd.f32 %v8294_v7, %v8293_v58 }
 0x3c0   :  { %v8296_v41 = vpop.f32.mrf.mxu1  ;;  %5070 = vmatmul.mubr.bf16.gmra.mxu1 %v2466_v13 }
 0x3c1   :  { %v11948_v57 = vadd.f32 %v8295_v8, %v11793_v22  ;;  %5077 = vmatprep.mubr.bf16.mxu1 %v2492_v28  ;;  %v2493_v22 = vpack.c.bf16 %v2485_v62, %v11816_v49  ;;  %v11963_v28 = vld [vmem:[#allocation2 + $0x144] sm:$0xff] }
 0x3c2   :  { %v8297_v15 = vpop.f32.mrf.mxu1 }
 0x3c3   :  { %v8298_v26 = vadd.f32 %v8297_v15, %v8296_v41  ;;  %v11968_v15 = vld [vmem:[#allocation2 + $0x154] sm:$0xff] }
 0x3c4   :  { %v8299_v17 = vpop.f32.mrf.mxu1  ;;  %v2468_v49 = vpack.c.bf16 %v11968_v15, %v11963_v28 }
 0x3c5   :  { %v11953_v27 = vadd.f32 %v8298_v26, %v11801_v29 }
 0x3c6   :  { %v8300_v37 = vpop.f32.mrf.mxu1 }
 0x3c7   :  { %v8301_v55 = vadd.f32 %v8300_v37, %v8299_v17 }
 0x3c8   :  { %v8302_v58 = vpop.f32.mrf.mxu1  ;;  %5078 = vmatmul.mubr.bf16.gmra.mxu1 %v2467_v10 }
 0x3c9   :  { %v11961_v7 = vadd.f32 %v8301_v55, %v11809_v0  ;;  %5085 = vmatprep.mubr.bf16.mxu1 %v2493_v22  ;;  %v2582_v0 = vpack.c.bf16 %v11848_v50, %v11828_v33 }
 0x3ca   :  { %v8303_v13 = vpop.f32.mrf.mxu1 }
 0x3cb   :  { %v8304_v8 = vadd.f32 %v8303_v13, %v8302_v58  ;;  %v2542_v13 = vld [vmem:[#allocation2 + $0x33] sm:$0xff] }
 0x3cc   :  { %v8305_v29 = vpop.f32.mrf.mxu1 }
 0x3cd   :  { %v11966_v41 = vadd.f32 %v8304_v8, %v11814_v18  ;;  %v11977_v18 = vld [vmem:[#allocation2 + $0x43] sm:$0xff]  ;;  %v9561_v8 = vld [vmem:[%s12913_s3 + $0x5b8] sm:$0xff]  }
 0x3ce   :  { %v8306_v26 = vpop.f32.mrf.mxu1  ;;  %v2558_v50 = vpack.c.bf16 %v11977_v18, %v2542_v13 }
 0x3cf   :  { %v8307_v17 = vadd.f32 %v8306_v26, %v8305_v29  ;;  %v2583_v26 = vpack.c.bf16 %v11874_v24, %v11853_v46 }
 0x3d0   :  { %v8308_v62 = vpop.f32.mrf.mxu1  ;;  %5086 = vmatmul.mubr.bf16.gmra.mxu1 %v2468_v49 }
 0x3d1   :  { %v11975_v37 = vadd.f32 %v8307_v17, %v11823_v9  ;;  %5223 = vmatprep.mubr.bf16.mxu1 %v2582_v0  ;;  %v9562_v9 = vld [vmem:[%s12913_s3 + $0x5f0] sm:$0xff]  }
 0x3d2   :  { %v8309_v10 = vpop.f32.mrf.mxu1  ;;  %v9563_v17 = vld [vmem:[%s12913_s3 + $0x5b0] sm:$0xff]  }
 0x3d3   :  { %v8310_v55 = vadd.f32 %v8309_v10, %v8308_v62  ;;  %v9564_v62 = vld [vmem:[%s12913_s3 + $0x5e8] sm:$0xff]  }
 0x3d4   :  { %v8311_v22 = vpop.f32.mrf.mxu1 }
 0x3d5   :  { %v11980_v58 = vadd.f32 %v8310_v55, %v11826_v2  ;;  %v12000_v55 = vld [vmem:[#allocation2 + $0x63] sm:$0xff] }
 0x3d6   :  { %v8312_v33 = vpop.f32.mrf.mxu1 }
 0x3d7   :  { %v8313_v29 = vadd.f32 %v8312_v33, %v8311_v22  ;;  %v9565_v22 = vld [vmem:[%s12913_s3 + $0x5a8] sm:$0xff]   ;;  %v9566_v33 = vld [vmem:[%s12913_s3 + $0x5e0] sm:$0xff]  }
 0x3d8   :  { %v8330_v49 = vpop.f32.mrf.mxu1  ;;  %5224 = vmatmul.mubr.bf16.vlgmr.msra.gmra.mxu1 %v2558_v50 }
 0x3d9   :  { %v11992_v2 = vadd.f32 %v8313_v29, %v11840_v31  ;;  %8763 = vmatpush3.bf16.msra.mxu1 %v9561_v8  ;;  %5231 = vmatprep.mubr.bf16.mxu1 %v2583_v26  ;;  %v12005_v31 = vld [vmem:[#allocation2 + $0x53] sm:$0xff]  ;;  %v9567_v26 = vld [vmem:[%s12913_s3 + $0x5a0] sm:$0xff]  }
 0x3da   :  { %v8331_v0 = vpop.f32.mrf.mxu1  ;;  %8764 = vmatprep.subr.bf16.mxu1 %v9562_v9  ;;  %v2559_v8 = vpack.c.bf16 %v12000_v55, %v12005_v31 }
 0x3db   :  { %v8332_v10 = vadd.f32 %v8331_v0, %v8330_v49 }
 0x3dc   :  { %v8333_v46 = vpop.f32.mrf.mxu1 }
 0x3dd   :  { %v12003_v24 = vadd.f32 %v8332_v10, %v11851_v19  ;;  %8765 = vmatpush3.bf16.msra.mxu1 %v9563_v17  ;;  %v2584_v19 = vpack.c.bf16 %v11899_v39, %v11879_v20  ;;  %v9568_v17 = vld [vmem:[%s12913_s3 + $0x5d8] sm:$0xff]   ;;  %v2573_v39 = vld [vmem:[#allocation2 + $0xa4] sm:$0xff] }
 0x3de   :  { %v8334_v13 = vpop.f32.mrf.mxu1  ;;  %8766 = vmatprep.subr.bf16.mxu1 %v9564_v62  ;;  %v12026_v62 = vld [vmem:[#allocation2 + $0x83] sm:$0xff]  ;;  %v12031_v10 = vld [vmem:[#allocation2 + $0x73] sm:$0xff] }
 0x3df   :  { %v8335_v50 = vadd.f32 %v8334_v13, %v8333_v46  ;;  %v9569_v46 = vld [vmem:[%s12913_s3 + $0x598] sm:$0xff]   ;;  %v2560_v13 = vpack.c.bf16 %v12026_v62, %v12031_v10 }
 0x3e0   :  { %v8336_v9 = vpop.f32.mrf.mxu1  ;;  %5232 = vmatmul.mubr.bf16.gmra.mxu1 %v2559_v8  ;;  %v9570_v8 = vld [vmem:[%s12913_s3 + $0x5d0] sm:$0xff]  }
 0x3e1   :  { %v12018_v29 = vadd.f32 %v8335_v50, %v11866_v48  ;;  %5239 = vmatprep.mubr.bf16.mxu1 %v2584_v19  ;;  %8767 = vmatpush3.bf16.msra.mxu1 %v9565_v22 }
 0x3e2   :  { %v8337_v49 = vpop.f32.mrf.mxu1  ;;  %8768 = vmatprep.subr.bf16.mxu1 %v9566_v33 }
 0x3e3   :  { %v8338_v0 = vadd.f32 %v8337_v49, %v8336_v9  ;;  %v9571_v9 = vld [vmem:[%s12913_s3 + $0x590] sm:$0xff]   ;;  %v9572_v49 = vld [vmem:[%s12913_s3 + $0x5c8] sm:$0xff]  }
 0x3e4   :  { %v8339_v20 = vpop.f32.mrf.mxu1 }
 0x3e5   :  { %v12029_v48 = vadd.f32 %v8338_v0, %v11877_v53  ;;  %8769 = vmatpush3.bf16.msra.mxu1 %v9567_v26  ;;  %v2585_v53 = vpack.c.bf16 %v2573_v39, %v11904_v35  ;;  %v12051_v0 = vld [vmem:[#allocation2 + $0xa3] sm:$0xff] }
 0x3e6   :  { %v8340_v22 = vpop.f32.mrf.mxu1  ;;  %8770 = vmatprep.subr.bf16.mxu1 %v9568_v17  ;;  %v9573_v39 = vld [vmem:[%s12913_s3 + $0x588] sm:$0xff]  }
 0x3e7   :  { %v8341_v33 = vadd.f32 %v8340_v22, %v8339_v20 }
 0x3e8   :  { %v8342_v50 = vpop.f32.mrf.mxu1  ;;  %5240 = vmatmul.mubr.bf16.gmra.mxu1 %v2560_v13  ;;  %v9574_v13 = vld [vmem:[%s12913_s3 + $0x5c0] sm:$0xff]  }
 0x3e9   :  { %v12043_v19 = vadd.f32 %v8341_v33, %v11891_v12  ;;  %5247 = vmatprep.mubr.bf16.mxu1 %v2585_v53  ;;  %8771 = vmatpush3.bf16.msra.mxu1 %v9569_v46  ;;  %v12056_v12 = vld [vmem:[#allocation2 + $0x93] sm:$0xff] }
 0x3ea   :  { %v8343_v26 = vpop.f32.mrf.mxu1  ;;  %8772 = vmatprep.subr.bf16.mxu1 %v9570_v8  ;;  %v2561_v22 = vpack.c.bf16 %v12051_v0, %v12056_v12 }
 0x3eb   :  { %v8344_v17 = vadd.f32 %v8343_v26, %v8342_v50  ;;  %v9575_v50 = vld [vmem:[%s12913_s3 + $0x580] sm:$0xff]  }
 0x3ec   :  { %v8345_v35 = vpop.f32.mrf.mxu1 }
 0x3ed   :  { %v12054_v20 = vadd.f32 %v8344_v17, %v11902_v34  ;;  %8773 = vmatpush3.bf16.msra.mxu1 %v9571_v9  ;;  %v2586_v34 = vpack.c.bf16 %v11936_v23, %v11928_v59  ;;  %v2550_v59 = vld [vmem:[#allocation2 + $0xf3] sm:$0xff] }
 0x3ee   :  { %v8346_v46 = vpop.f32.mrf.mxu1  ;;  %8774 = vmatprep.subr.bf16.mxu1 %v9572_v49  ;;  %v12074_v49 = vld [vmem:[#allocation2 + $0x103] sm:$0xff] }
 0x3ef   :  { %v8347_v8 = vadd.f32 %v8346_v46, %v8345_v35 }
 0x3f0   :  { %v8348_v33 = vpop.f32.mrf.mxu1  ;;  %5248 = vmatmul.mubr.bf16.gmra.mxu1 %v2561_v22 }
 0x3f1   :  { %v12069_v53 = vadd.f32 %v8347_v8, %v11917_v52  ;;  %5255 = vmatprep.mubr.bf16.mxu1 %v2586_v34  ;;  %8775 = vmatpush3.bf16.msra.mxu1 %v9573_v39  ;;  %v2562_v52 = vpack.c.bf16 %v12074_v49, %v2550_v59  ;;  %v2587_v39 = vpack.c.bf16 %v11950_v3, %v11941_v54 }
 0x3f2   :  { %v8349_v9 = vpop.f32.mrf.mxu1  ;;  %8776 = vmatprep.subr.bf16.mxu1 %v9574_v13 }
 0x3f3   :  { %v8350_v26 = vadd.f32 %v8349_v9, %v8348_v33  ;;  %v12085_v33 = vld [vmem:[#allocation2 + $0x123] sm:$0xff]  ;;  %v12090_v9 = vld [vmem:[#allocation2 + $0x113] sm:$0xff] }
 0x3f4   :  { %v8351_v17 = vpop.f32.mrf.mxu1  ;;  %v2563_v54 = vpack.c.bf16 %v12085_v33, %v12090_v9 }
 0x3f5   :  { %v12077_v35 = vadd.f32 %v8350_v26, %v11926_v1  ;;  %8777 = vmatpush3.bf16.msra.mxu1 %v9575_v50 }
 0x3f6   :  { %v8352_v23 = vpop.f32.mrf.mxu1 }
 0x3f7   :  { %v8353_v46 = vadd.f32 %v8352_v23, %v8351_v17 }
 0x3f8   :  { %v8354_v22 = vpop.f32.mrf.mxu1  ;;  %5256 = vmatmul.mubr.bf16.gmra.mxu1 %v2562_v52 }
 0x3f9   :  { %v12083_v13 = vadd.f32 %v8353_v46, %v11934_v63  ;;  %5263 = vmatprep.mubr.bf16.mxu1 %v2587_v39  ;;  %v2588_v63 = vpack.c.bf16 %v11963_v28, %v11955_v60  ;;  %v2581_v39 = vld [vmem:[#allocation2 + $0x164] sm:$0xff] }
 0x3fa   :  { %v8355_v8 = vpop.f32.mrf.mxu1 }
 0x3fb   :  { %v8356_v34 = vadd.f32 %v8355_v8, %v8354_v22  ;;  %v12104_v8 = vld [vmem:[#allocation2 + $0x133] sm:$0xff] }
 0x3fc   :  { %v8357_v1 = vpop.f32.mrf.mxu1 }
 0x3fd   :  { %v12088_v50 = vadd.f32 %v8356_v34, %v11939_v43  ;;  %v12099_v43 = vld [vmem:[#allocation2 + $0x143] sm:$0xff] }
 0x3fe   :  { %v8358_v26 = vpop.f32.mrf.mxu1  ;;  %v2564_v60 = vpack.c.bf16 %v12099_v43, %v12104_v8 }
 0x3ff   :  { %v8359_v3 = vadd.f32 %v8358_v26, %v8357_v1 }
 0x400   :  { %v8360_v17 = vpop.f32.mrf.mxu1  ;;  %5264 = vmatmul.mubr.bf16.gmra.mxu1 %v2563_v54 }
 0x401   :  { %v12097_v59 = vadd.f32 %v8359_v3, %v11948_v57  ;;  %5271 = vmatprep.mubr.bf16.mxu1 %v2588_v63  ;;  %v2589_v57 = vpack.c.bf16 %v2581_v39, %v11968_v15  ;;  %v12112_v63 = vld [vmem:[#allocation2 + $0x163] sm:$0xff] }
 0x402   :  { %v8361_v23 = vpop.f32.mrf.mxu1 }
 0x403   :  { %v8362_v52 = vadd.f32 %v8361_v23, %v8360_v17  ;;  %v12117_v23 = vld [vmem:[#allocation2 + $0x153] sm:$0xff] }
 0x404   :  { %v8363_v46 = vpop.f32.mrf.mxu1  ;;  %v2565_v15 = vpack.c.bf16 %v12112_v63, %v12117_v23 }
 0x405   :  { %v12102_v22 = vadd.f32 %v8362_v52, %v11953_v27 }
 0x406   :  { %v8364_v34 = vpop.f32.mrf.mxu1 }
 0x407   :  { %v8365_v28 = vadd.f32 %v8364_v34, %v8363_v46 }
 0x408   :  { %v8366_v1 = vpop.f32.mrf.mxu1  ;;  %5272 = vmatmul.mubr.bf16.gmra.mxu1 %v2564_v60 }
 0x409   :  { %v12110_v26 = vadd.f32 %v8365_v28, %v11961_v7  ;;  %5279 = vmatprep.mubr.bf16.mxu1 %v2589_v57  ;;  %v2679_v7 = vpack.c.bf16 %v12005_v31, %v11977_v18  ;;  %v2680_v18 = vpack.c.bf16 %v12031_v10, %v12000_v55 }
 0x40a   :  { %v8367_v54 = vpop.f32.mrf.mxu1 }
 0x40b   :  { %v8368_v3 = vadd.f32 %v8367_v54, %v8366_v1  ;;  %v2640_v54 = vld [vmem:[#allocation2 + $0x52] sm:$0xff] }
 0x40c   :  { %v8369_v27 = vpop.f32.mrf.mxu1 }
 0x40d   :  { %v12115_v17 = vadd.f32 %v8368_v3, %v11966_v41  ;;  %v2639_v41 = vld [vmem:[#allocation2 + $0x42] sm:$0xff] }
 0x40e   :  { %v8370_v52 = vpop.f32.mrf.mxu1  ;;  %v2655_v14 = vpack.c.bf16 %v2640_v54, %v2639_v41 }
 0x40f   :  { %v8371_v46 = vadd.f32 %v8370_v52, %v8369_v27 }
 0x410   :  { %v8372_v39 = vpop.f32.mrf.mxu1  ;;  %5280 = vmatmul.mubr.bf16.gmra.mxu1 %v2565_v15 }
 0x411   :  { %v12124_v34 = vadd.f32 %v8371_v46, %v11975_v37  ;;  %5417 = vmatprep.mubr.bf16.mxu1 %v2679_v7  ;;  %v2641_v46 = vld [vmem:[#allocation2 + $0x62] sm:$0xff] }
 0x412   :  { %v8373_v60 = vpop.f32.mrf.mxu1 }
 0x413   :  { %v8374_v28 = vadd.f32 %v8373_v60, %v8372_v39  ;;  %v2642_v39 = vld [vmem:[#allocation2 + $0x72] sm:$0xff] }
 0x414   :  { %v8375_v57 = vpop.f32.mrf.mxu1 }
 0x415   :  { %v12127_v1 = vadd.f32 %v8374_v28, %v11980_v58  ;;  %v2656_v28 = vpack.c.bf16 %v2642_v39, %v2641_v46  ;;  %v2645_v39 = vld [vmem:[#allocation2 + $0xa2] sm:$0xff] }
 0x416   :  { %v8376_v3 = vpop.f32.mrf.mxu1 }
 0x417   :  { %v8377_v27 = vadd.f32 %v8376_v3, %v8375_v57  ;;  %v2681_v57 = vpack.c.bf16 %v12056_v12, %v12026_v62  ;;  %v2643_v3 = vld [vmem:[#allocation2 + $0x82] sm:$0xff]  ;;  %v2644_v62 = vld [vmem:[#allocation2 + $0x92] sm:$0xff] }
 0x418   :  { %v8394_v31 = vpop.f32.mrf.mxu1  ;;  %5418 = vmatmul.mubr.bf16.vlgmr.msra.gmra.mxu1 %v2655_v14 }
 0x419   :  { %v12132_v37 = vadd.f32 %v8377_v27, %v11992_v2  ;;  %5425 = vmatprep.mubr.bf16.mxu1 %v2680_v18  ;;  %v8463_v2 = vadd.f32 %v11375_v16, %v11370_v51 }
 0x41a   :  { %v8395_v52 = vpop.f32.mrf.mxu1 }
 0x41b   :  { %v8396_v15 = vadd.f32 %v8395_v52, %v8394_v31  ;;  %v2670_v52 = vld [vmem:[#allocation2 + $0xb3] sm:$0xff] }
 0x41c   :  { %v8397_v7 = vpop.f32.mrf.mxu1  ;;  %v2682_v46 = vpack.c.bf16 %v2670_v52, %v12051_v0  ;;  %v2646_v0 = vld [vmem:[#allocation2 + $0xb2] sm:$0xff] }
 0x41d   :  { %v4838_v58 = vadd.f32 %v8396_v15, %v12003_v24 }
 0x41e   :  { %v8398_v60 = vpop.f32.mrf.mxu1 }
 0x41f   :  { %v8399_v41 = vadd.f32 %v8398_v60, %v8397_v7  ;;  %v12138_v55 = vadd.f32 %v11368_v4, %v4838_v58  ;;  %v2657_v4 = vpack.c.bf16 %v2644_v62, %v2643_v3 }
 0x420   :  { %v8400_v14 = vpop.f32.mrf.mxu1  ;;  %5426 = vmatmul.mubr.bf16.gmra.mxu1 %v2656_v28 }
 0x421   :  { %v4841_v10 = vadd.f32 %v8399_v41, %v12018_v29  ;;  %5433 = vmatprep.mubr.bf16.mxu1 %v2681_v57  ;;  %v8469_v29 = vadd.f32 %v11395_v21, %v11393_v30 }
 0x422   :  { %v8401_v54 = vpop.f32.mrf.mxu1 }
 0x423   :  { %v8402_v24 = vadd.f32 %v8401_v54, %v8400_v14  ;;  %v12143_v27 = vadd.f32 %v8463_v2, %v4841_v10  ;;  %v2683_v2 = vpack.c.bf16 %v12090_v9, %v12074_v49  ;;  %v2648_v49 = vld [vmem:[#allocation2 + $0x112] sm:$0xff] }
 0x424   :  { %v8403_v18 = vpop.f32.mrf.mxu1 }
 0x425   :  { %v4846_v31 = vadd.f32 %v8402_v24, %v12029_v48  ;;  %v2647_v24 = vld [vmem:[#allocation2 + $0x102] sm:$0xff] }
 0x426   :  { %v8404_v12 = vpop.f32.mrf.mxu1 }
 0x427   :  { %v8405_v15 = vadd.f32 %v8404_v12, %v8403_v18  ;;  %v12148_v51 = vadd.f32 %v11391_v5, %v4846_v31  ;;  %v2658_v5 = vpack.c.bf16 %v2646_v0, %v2645_v39  ;;  %v2684_v12 = vpack.c.bf16 %v12104_v8, %v12085_v33  ;;  %v2650_v33 = vld [vmem:[#allocation2 + $0x132] sm:$0xff] }
 0x428   :  { %v8406_v16 = vpop.f32.mrf.mxu1  ;;  %5434 = vmatmul.mubr.bf16.gmra.mxu1 %v2657_v4  ;;  %v13176_v4 = vld [vmem:[#allocation10_spill] sm:$0xff]  ;;  %v2685_v39 = vpack.c.bf16 %v12117_v23, %v12099_v43 }
 0x429   :  { %v4849_v7 = vadd.f32 %v8405_v15, %v12043_v19  ;;  %5441 = vmatprep.mubr.bf16.mxu1 %v2682_v46  ;;  %v8475_v19 = vadd.f32 %v11419_v47, %v11417_v32  ;;  %v2678_v23 = vld [vmem:[#allocation2 + $0x173] sm:$0xff] }
 0x42a   :  { %v8407_v58 = vpop.f32.mrf.mxu1 }
 0x42b   :  { %v8408_v48 = vadd.f32 %v8407_v58, %v8406_v16  ;;  %v12153_v60 = vadd.f32 %v8469_v29, %v4849_v7  ;;  %v2649_v16 = vld [vmem:[#allocation2 + $0x122] sm:$0xff] }
 0x42c   :  { %v8409_v28 = vpop.f32.mrf.mxu1 }
 0x42d   :  { %v4854_v41 = vadd.f32 %v8408_v48, %v12054_v20 }
 0x42e   :  { %v8410_v57 = vpop.f32.mrf.mxu1 }
 0x42f   :  { %v8411_v14 = vadd.f32 %v8410_v57, %v8409_v28  ;;  %v12159_v30 = vadd.f32 %v11412_v25, %v4854_v41  ;;  %v2659_v25 = vpack.c.bf16 %v2648_v49, %v2647_v24  ;;  %v13177_v28 = vld [vmem:[#allocation71_spill] sm:$0xff]  ;;  %v2686_v24 = vpack.c.bf16 %v2678_v23, %v12112_v63 }
 0x430   :  { %v8412_v21 = vpop.f32.mrf.mxu1  ;;  %5442 = vmatmul.mubr.bf16.gmra.mxu1 %v2658_v5 }
 0x431   :  { %v4857_v10 = vadd.f32 %v8411_v14, %v12069_v53  ;;  %5449 = vmatprep.mubr.bf16.mxu1 %v2683_v2  ;;  %v13175_v53 = vld [vmem:[#allocation41_spill] sm:$0xff]  ;;  %v2651_v14 = vld [vmem:[#allocation2 + $0x142] sm:$0xff]  ;;  %v13178_v2 = vld [vmem:[#allocation72_spill] sm:$0xff] }
 0x432   :  { %v8413_v54 = vpop.f32.mrf.mxu1  ;;  %v8481_v52 = vadd.f32 %v13176_v4, %v13175_v53  ;;  %v2654_v4 = vld [vmem:[#allocation2 + $0x172] sm:$0xff] }
 0x433   :  { %v8414_v20 = vadd.f32 %v8413_v54, %v8412_v21  ;;  %v12164_v3 = vadd.f32 %v8475_v19, %v4857_v10  ;;  %v2652_v10 = vld [vmem:[#allocation2 + $0x152] sm:$0xff] }
 0x434   :  { %v8415_v18 = vpop.f32.mrf.mxu1  ;;  %v2661_v43 = vpack.c.bf16 %v2652_v10, %v2651_v14 }
 0x435   :  { %v4862_v31 = vadd.f32 %v8414_v20, %v12077_v35 }
 0x436   :  { %v8416_v9 = vpop.f32.mrf.mxu1 }
 0x437   :  { %v8417_v62 = vadd.f32 %v8416_v9, %v8415_v18  ;;  %v12170_v32 = vadd.f32 %v11436_v11, %v4862_v31  ;;  %v2660_v11 = vpack.c.bf16 %v2650_v33, %v2649_v16  ;;  %v13179_v18 = vld [vmem:[#allocation42_spill] sm:$0xff]  ;;  %v13182_v33 = vld [vmem:[#allocation43_spill] sm:$0xff] }
 0x438   :  { %v8418_v47 = vpop.f32.mrf.mxu1  ;;  %5450 = vmatmul.mubr.bf16.gmra.mxu1 %v2659_v25 }
 0x439   :  { %v4865_v15 = vadd.f32 %v8417_v62, %v12083_v13  ;;  %5457 = vmatprep.mubr.bf16.mxu1 %v2684_v12  ;;  %v2653_v62 = vld [vmem:[#allocation2 + $0x162] sm:$0xff] }
 0x43a   :  { %v8419_v46 = vpop.f32.mrf.mxu1  ;;  %v13180_v12 = vld [vmem:[#allocation11_spill] sm:$0xff]  ;;  %v2662_v63 = vpack.c.bf16 %v2654_v4, %v2653_v62  ;;  %v9579_v62 = vld [vmem:[%s12915_s5 + $0x30] sm:$0xff]  }
 0x43b   :  { %v8420_v35 = vadd.f32 %v8419_v46, %v8418_v47  ;;  %v12175_v29 = vadd.f32 %v8481_v52, %v4865_v15  ;;  %v13181_v46 = vld [vmem:[#allocation73_spill] sm:$0xff] }
 0x43c   :  { %v8421_v7 = vpop.f32.mrf.mxu1 }
 0x43d   :  { %v4870_v58 = vadd.f32 %v8420_v35, %v12088_v50 }
 0x43e   :  { %v8422_v8 = vpop.f32.mrf.mxu1 }
 0x43f   :  { %v8423_v48 = vadd.f32 %v8422_v8, %v8421_v7  ;;  %v12181_v41 = vadd.f32 %v13177_v28, %v4870_v58 }
 0x440   :  { %v8424_v13 = vpop.f32.mrf.mxu1  ;;  %5458 = vmatmul.mubr.bf16.gmra.mxu1 %v2660_v11 }
 0x441   :  { %v4873_v0 = vadd.f32 %v8423_v48, %v12097_v59  ;;  %5465 = vmatprep.mubr.bf16.mxu1 %v2685_v39 }
 0x442   :  { %v8425_v57 = vpop.f32.mrf.mxu1 }
 0x443   :  { %v8426_v5 = vadd.f32 %v8425_v57, %v8424_v13  ;;  %v12185_v50 = vadd.f32 %v13178_v2, %v4873_v0 }
 0x444   :  { %v8427_v21 = vpop.f32.mrf.mxu1 }
 0x445   :  { %v4878_v19 = vadd.f32 %v8426_v5, %v12102_v22  ;;  %v9577_v5 = vld [vmem:[%s12915_s5 + $0x38] sm:$0xff]  }
 0x446   :  { %v8428_v54 = vpop.f32.mrf.mxu1 }
 0x447   :  { %v8429_v20 = vadd.f32 %v8428_v54, %v8427_v21  ;;  %v12190_v31 = vadd.f32 %v13179_v18, %v4878_v19 }
 0x448   :  { %v8430_v59 = vpop.f32.mrf.mxu1  ;;  %5466 = vmatmul.mubr.bf16.gmra.mxu1 %v2661_v43  ;;  %v13183_v43 = vld [vmem:[#allocation12_spill] sm:$0xff] }
 0x449   :  { %v4881_v49 = vadd.f32 %v8429_v20, %v12110_v26  ;;  %5473 = vmatprep.mubr.bf16.mxu1 %v2686_v24 }
 0x44a   :  { %v8431_v9 = vpop.f32.mrf.mxu1 }
 0x44b   :  { %v8432_v25 = vadd.f32 %v8431_v9, %v8430_v59  ;;  %v12194_v22 = vadd.f32 %v13180_v12, %v4881_v49 }
 0x44c   :  { %v8433_v47 = vpop.f32.mrf.mxu1 }
 0x44d   :  { %v4886_v53 = vadd.f32 %v8432_v25, %v12115_v17  ;;  %v12205_v17 = vpop.f32.mrf.mxu0  ;;  %v9578_v25 = vld [vmem:[%s12915_s5 + $0x70] sm:$0xff]  }
 0x44e   :  { %v8434_v52 = vpop.f32.mrf.mxu1 }
 0x44f   :  { %v8435_v15 = vadd.f32 %v8434_v52, %v8433_v47  ;;  %v12198_v35 = vadd.f32 %v13181_v46, %v4886_v53  ;;  %v12217_v14 = vpop.f32.mrf.mxu0  ;;  %v13184_v53 = vld [vmem:[#allocation74_spill] sm:$0xff]  ;;  %v13185_v46 = vld [vmem:[#allocation44_spill] sm:$0xff] }
 0x450   :  { %v8436_v16 = vpop.f32.mrf.mxu1  ;;  %5474 = vmatmul.mubr.bf16.gmra.mxu1 %v2662_v63 }
 0x451   :  { %v4889_v26 = vadd.f32 %v8435_v15, %v12124_v34  ;;  %v9576_v34 = vld [vmem:[%s12915_s5 + $0x78] sm:$0xff]   ;;  %v12223_v19 = vpop.f32.mrf.mxu0 }
 0x452   :  { %v8437_v7 = vpop.f32.mrf.mxu1  ;;  %8842 = vmatprep.subr.bf16.mxu1 %v9576_v34 }
 0x453   :  { %v8438_v58 = vadd.f32 %v8437_v7, %v8436_v16  ;;  %v12202_v8 = vadd.f32 %v13182_v33, %v4889_v26  ;;  %8843 = vmatpush3.bf16.msra.mxu1 %v9577_v5  ;;  %v12229_v18 = vpop.f32.mrf.mxu0  ;;  %v9581_v33 = vld [vmem:[%s12915_s5 + $0x28] sm:$0xff]  }
 0x454   :  { %v8439_v11 = vpop.f32.mrf.mxu1  ;;  %8844 = vmatprep.subr.bf16.mxu1 %v9578_v25 }
 0x455   :  { %v4894_v48 = vadd.f32 %v8438_v58, %v12127_v1  ;;  %v12241_v12 = vpop.f32.mrf.mxu0  ;;  %v9580_v58 = vld [vmem:[%s12915_s5 + $0x68] sm:$0xff]  }
 0x456   :  { %v8440_v39 = vpop.f32.mrf.mxu1 }
 0x457   :  { %v8441_v28 = vadd.f32 %v8440_v39, %v8439_v11  ;;  %v12208_v13 = vadd.f32 %v11525_v40, %v4894_v48  ;;  %8845 = vmatpush3.bf16.msra.mxu1 %v9579_v62  ;;  %v12247_v52 = vpop.f32.mrf.mxu0 }
 0x458   :  { %v8522_v0 = vpop.f32.mrf.mxu1  ;;  %8846 = vmatprep.subr.bf16.mxu1 %v9580_v58  ;;  %v9591_v58 = vld [vmem:[%s12915_s5 + $0xe8] sm:$0xff]  }
 0x459   :  { %v4897_v57 = vadd.f32 %v8441_v28, %v12132_v37  ;;  %v12259_v11 = vpop.f32.mrf.mxu0 }
 0x45a   :  { %v8523_v1 = vpop.f32.mrf.mxu1 }
 0x45b   :  { %v8524_v2 = vadd.f32 %v8523_v1, %v8522_v0  ;;  %v12220_v21 = vadd.f32 %v11537_v44, %v4897_v57  ;;  %8847 = vmatpush3.bf16.msra.mxu1 %v9581_v33  ;;  %v12265_v0 = vpop.f32.mrf.mxu0  ;;  %v9592_v33 = vld [vmem:[%s12915_s5 + $0x10] sm:$0xff]  }
 0x45c   :  { %v8525_v40 = vpop.f32.mrf.mxu1 }
 0x45d   :  { %v5032_v37 = vadd.f32 %v8524_v2, %v12138_v55 }
 0x45e   :  { %v8526_v10 = vpop.f32.mrf.mxu1 }
 0x45f   :  { %v8527_v54 = vadd.f32 %v8526_v10, %v8525_v40  ;;  %v12226_v23 = vadd.f32 %v13183_v43, %v5032_v37  ;;  %v9583_v40 = vld [vmem:[%s12915_s5 + $0x20] sm:$0xff]   ;;  %v12277_v37 = vpop.f32.mrf.mxu0 }
 0x460   :  { %v8528_v20 = vpop.f32.mrf.mxu1 }
 0x461   :  { %v5035_v24 = vadd.f32 %v8527_v54, %v12143_v27  ;;  %v12283_v43 = vpop.f32.mrf.mxu0 }
 0x462   :  { %v8529_v59 = vpop.f32.mrf.mxu1 }
 0x463   :  { %v8530_v44 = vadd.f32 %v8529_v59, %v8528_v20  ;;  %v12232_v49 = vadd.f32 %v11564_v61, %v5035_v24  ;;  %v12298_v25 = vpop.f32.mrf.mxu0 }
 0x464   :  { %v8531_v9 = vpop.f32.mrf.mxu1 }
 0x465   :  { %v5040_v55 = vadd.f32 %v8530_v44, %v12148_v51 }
 0x466   :  { %v8532_v27 = vpop.f32.mrf.mxu1 }
 0x467   :  { %v8533_v47 = vadd.f32 %v8532_v27, %v8531_v9  ;;  %v12244_v4 = vadd.f32 %v13184_v53, %v5040_v55  ;;  %v9585_v55 = vld [vmem:[%s12915_s5 + $0xf8] sm:$0xff]  }
 0x468   :  { %v8534_v61 = vpop.f32.mrf.mxu1  ;;  %8864 = vmatprep.subr.bf16.mxu0 %v9585_v55  ;;  %v9599_v55 = vld [vmem:[%s12915_s5 + $0x98] sm:$0xff]  }
 0x469   :  { %v5043_v51 = vadd.f32 %v8533_v47, %v12153_v60 }
 0x46a   :  { %v8535_v63 = vpop.f32.mrf.mxu1 }
 0x46b   :  { %v8536_v15 = vadd.f32 %v8535_v63, %v8534_v61  ;;  %v12250_v16 = vadd.f32 %v13185_v46, %v5043_v51  ;;  %v9588_v61 = vld [vmem:[%s12915_s5 + $0xf0] sm:$0xff]   ;;  %v12313_v63 = vpop.f32.mrf.mxu0 }
 0x46c   :  { %v8537_v26 = vpop.f32.mrf.mxu1  ;;  %v9589_v51 = vld [vmem:[%s12915_s5 + $0xb0] sm:$0xff]  }
 0x46d   :  { %v5048_v7 = vadd.f32 %v8536_v15, %v12159_v30 }
 0x46e   :  { %v8538_v60 = vpop.f32.mrf.mxu1 }
 0x46f   :  { %v8539_v48 = vadd.f32 %v8538_v60, %v8537_v26  ;;  %v12262_v39 = vadd.f32 %v11606_v38, %v5048_v7  ;;  %v9582_v38 = vld [vmem:[%s12915_s5 + $0x60] sm:$0xff]   ;;  %v9590_v7 = vld [vmem:[%s12915_s5 + $0x50] sm:$0xff]   ;;  %v12328_v60 = vpop.f32.mrf.mxu0 }
 0x470   :  { %v8540_v28 = vpop.f32.mrf.mxu1  ;;  %8848 = vmatprep.subr.bf16.mxu1 %v9582_v38 }
 0x471   :  { %v5051_v30 = vadd.f32 %v8539_v48, %v12164_v3  ;;  %8849 = vmatpush3.bf16.msra.mxu1 %v9583_v40  ;;  %v9593_v48 = vld [vmem:[%s12915_s5 + $0xa8] sm:$0xff]   ;;  %v12343_v38 = vpop.f32.mrf.mxu0 }
 0x472   :  { %v8541_v57 = vpop.f32.mrf.mxu1 }
 0x473   :  { %v8542_v34 = vadd.f32 %v8541_v57, %v8540_v28  ;;  %v12268_v5 = vadd.f32 %v11612_v36, %v5051_v30  ;;  %v13187_v28 = vld [vmem:[#allocation13_spill] sm:$0xff] }
 0x474   :  { %v8543_v1 = vpop.f32.mrf.mxu1 }
 0x475   :  { %v5056_v2 = vadd.f32 %v8542_v34, %v12170_v32 }
 0x476   :  { %v8544_v3 = vpop.f32.mrf.mxu1 }
 0x477   :  { %v8545_v10 = vadd.f32 %v8544_v3, %v8543_v1  ;;  %v12280_v54 = vadd.f32 %v11621_v6, %v5056_v2  ;;  %v9584_v6 = vld [vmem:[%s12915_s5 + $0x58] sm:$0xff]   ;;  %v9594_v1 = vld [vmem:[%s12915_s5 + $0xe0] sm:$0xff]  }
 0x478   :  { %v8546_v36 = vpop.f32.mrf.mxu1  ;;  %8850 = vmatprep.subr.bf16.mxu1 %v9584_v6  ;;  %v9595_v2 = vld [vmem:[%s12915_s5 + $0xa0] sm:$0xff]  }
 0x479   :  { %v5059_v32 = vadd.f32 %v8545_v10, %v12175_v29  ;;  %v9586_v29 = vld [vmem:[%s12915_s5 + $0x18] sm:$0xff]  }
 0x47a   :  { %v8547_v20 = vpop.f32.mrf.mxu1  ;;  %8851 = vmatpush3.bf16.msra.mxu1 %v9586_v29  ;;  %v13189_v10 = vld [vmem:[#allocation45_spill] sm:$0xff]  ;;  %v13191_v29 = vld [vmem:[#allocation14_spill] sm:$0xff] }
 0x47b   :  { %v8548_v24 = vadd.f32 %v8547_v20, %v8546_v36  ;;  %v12286_v59 = vadd.f32 %v11627_v45, %v5059_v32  ;;  %v9587_v45 = vld [vmem:[%s12915_s5 + $0xb8] sm:$0xff]   ;;  %8852 = vmatprep.subr.bf16.mxu1 %v9590_v7  ;;  %v9596_v20 = vld [vmem:[%s12915_s5 + $0x48] sm:$0xff]   ;;  %v9602_v7 = vld [vmem:[%s12915_s5 + $0x40] sm:$0xff]  }
 0x47c   :  { %v8549_v44 = vpop.f32.mrf.mxu1  ;;  %8865 = vmatpush3.bf16.msra.mxu0 %v9587_v45 }
 0x47d   :  { %v5064_v9 = vadd.f32 %v8548_v24, %v12181_v41  ;;  %8866 = vmatprep.subr.bf16.mxu0 %v9588_v61  ;;  %v9597_v24 = vld [vmem:[%s12915_s5 + $0xd8] sm:$0xff]  }
 0x47e   :  { %v8550_v62 = vpop.f32.mrf.mxu1  ;;  %8853 = vmatpush3.bf16.msra.mxu1 %v9592_v33  ;;  %v9604_v33 = vld [vmem:[%s12915_s5] sm:$0xff]  }
 0x47f   :  { %v8551_v41 = vadd.f32 %v8550_v62, %v8549_v44  ;;  %v12304_v27 = vadd.f32 %v11636_v56, %v5064_v9  ;;  %v9598_v44 = vld [vmem:[%s12915_s5 + $0x8] sm:$0xff]   ;;  %v12358_v9 = vpop.f32.mrf.mxu0  ;;  %8854 = vmatprep.subr.bf16.mxu1 %v9596_v20 }
 0x480   :  { %v8552_v47 = vpop.f32.mrf.mxu1  ;;  %8867 = vmatpush3.bf16.msra.mxu0 %v9589_v51 }
 0x481   :  { %v5067_v53 = vadd.f32 %v8551_v41, %v12185_v50  ;;  %8868 = vmatprep.subr.bf16.mxu0 %v9591_v58  ;;  %v12373_v61 = vpop.f32.mrf.mxu0  ;;  %v9603_v58 = vld [vmem:[%s12915_s5 + $0xc8] sm:$0xff]  }
 0x482   :  { %v8553_v15 = vpop.f32.mrf.mxu1  ;;  %8855 = vmatpush3.bf16.msra.mxu1 %v9598_v44 }
 0x483   :  { %v8554_v56 = vadd.f32 %v8553_v15, %v8552_v47  ;;  %v12316_v46 = vadd.f32 %v11642_v42, %v5067_v53  ;;  %v9600_v47 = vld [vmem:[%s12915_s5 + $0xd0] sm:$0xff]   ;;  %8856 = vmatprep.subr.bf16.mxu1 %v9602_v7 }
 0x484   :  { %v8555_v26 = vpop.f32.mrf.mxu1  ;;  %8869 = vmatpush3.bf16.msra.mxu0 %v9593_v48  ;;  %v9601_v53 = vld [vmem:[%s12915_s5 + $0x90] sm:$0xff]  }
 0x485   :  { %13186 = vst [vmem:[#allocation15_spill] sm:$0xff] %v12316_v46  ;;  %v5072_v50 = vadd.f32 %v8554_v56, %v12190_v31  ;;  %8870 = vmatprep.subr.bf16.mxu0 %v9594_v1  ;;  %v13193_v56 = vld [vmem:[#allocation75_spill] sm:$0xff] }
 0x486   :  { %v8556_v42 = vpop.f32.mrf.mxu1  ;;  %8857 = vmatpush3.bf16.msra.mxu1 %v9604_v33 }
 0x487   :  { %v8557_v31 = vadd.f32 %v8556_v42, %v8555_v26  ;;  %v12334_v30 = vadd.f32 %v13187_v28, %v5072_v50  ;;  %v12388_v42 = vpop.f32.mrf.mxu0  ;;  %v13195_v28 = vld [vmem:[#allocation76_spill] sm:$0xff] }
 0x488   :  { %v8558_v57 = vpop.f32.mrf.mxu1  ;;  %8871 = vmatpush3.bf16.msra.mxu0 %v9595_v2  ;;  %v9606_v2 = vld [vmem:[%s12915_s5 + $0xc0] sm:$0xff]  }
 0x489   :  { %13188 = vst [vmem:[#allocation77_spill] sm:$0xff] %v12334_v30  ;;  %v5075_v34 = vadd.f32 %v8557_v31, %v12194_v22  ;;  %8872 = vmatprep.subr.bf16.mxu0 %v9597_v24  ;;  %v9605_v31 = vld [vmem:[%s12915_s5 + $0x88] sm:$0xff]   ;;  %v9609_v24 = vld [vmem:[%s12915_s5 + $0x1f8] sm:$0xff]  }
 0x48a   :  { %v8559_v40 = vpop.f32.mrf.mxu1 }
 0x48b   :  { %v8560_v3 = vadd.f32 %v8559_v40, %v8558_v57  ;;  %v12346_v36 = vadd.f32 %v13189_v10, %v5075_v34  ;;  %v9607_v40 = vld [vmem:[%s12915_s5 + $0x80] sm:$0xff]  }
 0x48c   :  { %v8561_v32 = vpop.f32.mrf.mxu1  ;;  %8873 = vmatpush3.bf16.msra.mxu0 %v9599_v55 }
 0x48d   :  { %13190 = vst [vmem:[#allocation47_spill] sm:$0xff] %v12346_v36  ;;  %v5080_v22 = vadd.f32 %v8560_v3, %v12198_v35  ;;  %8874 = vmatprep.subr.bf16.mxu0 %v9600_v47  ;;  %v12403_v3 = vpop.f32.mrf.mxu0 }
 0x48e   :  { %v8562_v6 = vpop.f32.mrf.mxu1 }
 0x48f   :  { %v8563_v35 = vadd.f32 %v8562_v6, %v8561_v32  ;;  %v12364_v62 = vadd.f32 %v13191_v29, %v5080_v22  ;;  %v13197_v32 = vld [vmem:[#allocation46_spill] sm:$0xff]  ;;  %v12414_v44 = vpop.f32.mrf.mxu0 }
 0x490   :  { %v8564_v45 = vpop.f32.mrf.mxu1  ;;  %8875 = vmatpush3.bf16.msra.mxu0 %v9601_v53  ;;  %13199 = vst [vmem:[#allocation49_spill] sm:$0xff] %v12414_v44 }
 0x491   :  { %13192 = vst [vmem:[#allocation16_spill] sm:$0xff] %v12364_v62  ;;  %v5083_v41 = vadd.f32 %v8563_v35, %v12202_v8  ;;  %8876 = vmatprep.subr.bf16.mxu0 %v9603_v58  ;;  %v12416_v35 = vpop.f32.mrf.mxu0 }
 0x492   :  { %v8565_v51 = vpop.f32.mrf.mxu1  ;;  %13200 = vst [vmem:[#allocation18_spill] sm:$0xff] %v12416_v35 }
 0x493   :  { %v8566_v15 = vadd.f32 %v8565_v51, %v8564_v45  ;;  %v12376_v26 = vadd.f32 %v13193_v56, %v5083_v41  ;;  %v12418_v41 = vpop.f32.mrf.mxu0 }
 0x494   :  { %v8567_v50 = vpop.f32.mrf.mxu1  ;;  %8877 = vmatpush3.bf16.msra.mxu0 %v9605_v31  ;;  %13201 = vst [vmem:[#allocation79_spill] sm:$0xff] %v12418_v41 }
 0x495   :  { %13194 = vst [vmem:[#allocation78_spill] sm:$0xff] %v12376_v26  ;;  %v5088_v8 = vadd.f32 %v8566_v15, %v12208_v13  ;;  %8878 = vmatprep.subr.bf16.mxu0 %v9606_v2  ;;  %v12420_v51 = vpop.f32.mrf.mxu0 }
 0x496   :  { %v8568_v48 = vpop.f32.mrf.mxu1  ;;  %13202 = vst [vmem:[#allocation80_spill] sm:$0xff] %v12420_v51 }
 0x497   :  { %v8569_v13 = vadd.f32 %v8568_v48, %v8567_v50  ;;  %v12394_v57 = vadd.f32 %v13195_v28, %v5088_v8  ;;  %v12424_v50 = vpop.f32.mrf.mxu0 }
 0x498   :  { %v8650_v34 = vpop.f32.mrf.mxu1  ;;  %8879 = vmatpush3.bf16.msra.mxu0 %v9607_v40  ;;  %13203 = vst [vmem:[#allocation50_spill] sm:$0xff] %v12424_v50 }
 0x499   :  { %13196 = vst [vmem:[#allocation48_spill] sm:$0xff] %v12394_v57  ;;  %v5091_v1 = vadd.f32 %v8569_v13, %v12220_v21  ;;  %v9608_v21 = vld [vmem:[%s12915_s5 + $0x178] sm:$0xff]   ;;  %8908 = vmatprep.subr.bf16.mxu0 %v9609_v24  ;;  %v12430_v58 = vpop.f32.mrf.mxu0 }
 0x49a   :  { %v8651_v10 = vpop.f32.mrf.mxu1  ;;  %8886 = vmatprep.subr.bf16.mxu1 %v9608_v21  ;;  %13204 = vst [vmem:[#allocation19_spill] sm:$0xff] %v12430_v58 }
 0x49b   :  { %v12406_v22 = vadd.f32 %v13197_v32, %v5091_v1  ;;  %v12436_v31 = vpop.f32.mrf.mxu0 }
 0x49c   :  { %v8653_v20 = vpop.f32.mrf.mxu1  ;;  %13205 = vst [vmem:[#allocation81_spill] sm:$0xff] %v12436_v31 }
 0x49d   :  { %13198 = vst [vmem:[#allocation17_spill] sm:$0xff] %v12406_v22  ;;  %v12442_v1 = vpop.f32.mrf.mxu0 }
 0x49e   :  { %v8654_v6 = vpop.f32.mrf.mxu1  ;;  %13206 = vst [vmem:[#allocation51_spill] sm:$0xff] %v12442_v1 }
 0x49f   :  { %v12448_v32 = vpop.f32.mrf.mxu0  ;;  %v8655_v30 = vadd.f32 %v8654_v6, %v8653_v20 }
 0x4a0   :  { %v8656_v55 = vpop.f32.mrf.mxu1  ;;  %13207 = vst [vmem:[#allocation20_spill] sm:$0xff] %v12448_v32 }
 0x4a1   :  { %v12454_v22 = vpop.f32.mrf.mxu0 }
 0x4a2   :  { %v8657_v29 = vpop.f32.mrf.mxu1  ;;  %13208 = vst [vmem:[#allocation82_spill] sm:$0xff] %v12454_v22 }
 0x4a3   :  { %v12460_v31 = vpop.f32.mrf.mxu0 }
 0x4a4   :  { %v8659_v45 = vpop.f32.mrf.mxu1  ;;  %13210 = vst [vmem:[#allocation21_spill] sm:$0xff] %v12460_v31  ;;  %v8652_v31 = vadd.f32 %v8651_v10, %v8650_v34  ;;  %v8719_v34 = vadd.f32 %v12229_v18, %v12223_v19 }
 0x4a5   :  { %v12466_v58 = vpop.f32.mrf.mxu0 }
 0x4a6   :  { %v8660_v47 = vpop.f32.mrf.mxu1  ;;  %13213 = vst [vmem:[#allocation22_spill] sm:$0xff] %v12466_v58 }
 0x4a7   :  { %v12472_v36 = vpop.f32.mrf.mxu0 }
 0x4a8   :  { %v8662_v53 = vpop.f32.mrf.mxu1  ;;  %13216 = vst [vmem:[#allocation23_spill] sm:$0xff] %v12472_v36  ;;  %v8716_v36 = vadd.f32 %v12217_v14, %v12205_v17 }
 0x4a9   :  { %v12478_v41 = vpop.f32.mrf.mxu0 }
 0x4aa   :  { %v8663_v15 = vpop.f32.mrf.mxu1  ;;  %13219 = vst [vmem:[#allocation24_spill] sm:$0xff] %v12478_v41  ;;  %v8658_v41 = vadd.f32 %v8657_v29, %v8656_v55 }
 0x4ab   :  { %v8664_v55 = vadd.f32 %v8663_v15, %v8662_v53 }
 0x4ac   :  { %v12422_v56 = vpop.f32.mrf.mxu1 }
 0x4ae   :  { %v12426_v8 = vpop.f32.mrf.mxu1 }
 0x4b0   :  { %v12428_v7 = vpop.f32.mrf.mxu1 }
 0x4b2   :  { %v12432_v33 = vpop.f32.mrf.mxu1 }
 0x4b4   :  { %v12434_v48 = vpop.f32.mrf.mxu1 }
 0x4b6   :  { %v12438_v13 = vpop.f32.mrf.mxu1 }
 0x4b8   :  { %v12440_v28 = vpop.f32.mrf.mxu1 }
 0x4ba   :  { %v12444_v2 = vpop.f32.mrf.mxu1 }
 0x4bc   :  { %v12446_v40 = vpop.f32.mrf.mxu1 }
 0x4be   :  { %v12450_v21 = vpop.f32.mrf.mxu1 }
 0x4c0   :  { %v12452_v24 = vpop.f32.mrf.mxu1 }
 0x4c2   :  { %v12456_v57 = vpop.f32.mrf.mxu1 }
 0x4c4   :  { %v12458_v26 = vpop.f32.mrf.mxu1 }
 0x4c5   :  { %13209 = vst [vmem:[#allocation52_spill] sm:$0xff] %v12458_v26 }
 0x4c6   :  { %v12462_v62 = vpop.f32.mrf.mxu1 }
 0x4c7   :  { %13211 = vst [vmem:[#allocation83_spill] sm:$0xff] %v12462_v62 }
 0x4c8   :  { %v12464_v1 = vpop.f32.mrf.mxu1 }
 0x4c9   :  { %13212 = vst [vmem:[#allocation53_spill] sm:$0xff] %v12464_v1  ;;  %v9241_v1 = vpop.f32.mrf.mxu0 }
 0x4ca   :  { %v12468_v50 = vpop.f32.mrf.mxu1 }
 0x4cb   :  { %13214 = vst [vmem:[#allocation84_spill] sm:$0xff] %v12468_v50  ;;  %v5226_v50 = vadd.f32 %v8652_v31, %v12226_v23  ;;  %v5234_v23 = vadd.f32 %v8658_v41, %v12244_v4  ;;  %v8661_v31 = vadd.f32 %v8660_v47, %v8659_v45  ;;  %v8725_v4 = vadd.f32 %v12265_v0, %v12259_v11 }
 0x4cc   :  { %v12470_v32 = vpop.f32.mrf.mxu1  ;;  %v5242_v45 = vadd.f32 %v8664_v55, %v12262_v39  ;;  %v8670_v39 = vadd.f32 %v12432_v33, %v12428_v7  ;;  %v8734_v7 = vadd.f32 %v12343_v38, %v12328_v60 }
 0x4cd   :  { %13215 = vst [vmem:[#allocation54_spill] sm:$0xff] %v12470_v32  ;;  %v5323_v44 = vadd.f32 %v8716_v36, %v5226_v50  ;;  %v5237_v19 = vadd.f32 %v8661_v31, %v12250_v16  ;;  %v8728_v16 = vadd.f32 %v12283_v43, %v12277_v37  ;;  %v8673_v43 = vadd.f32 %v12438_v13, %v12434_v48 }
 0x4ce   :  { %v12474_v51 = vpop.f32.mrf.mxu1 }
 0x4cf   :  { %13217 = vst [vmem:[#allocation85_spill] sm:$0xff] %v12474_v51  ;;  %v5516_v51 = vpop.f32.mrf.mxu0  ;;  %v5334_v41 = vadd.f32 %v8725_v4, %v5237_v19  ;;  %v5339_v11 = vadd.f32 %v8728_v16, %v5242_v45 }
 0x4d0   :  { %v12476_v22 = vpop.f32.mrf.mxu1 }
 0x4d1   :  { %13218 = vst [vmem:[#allocation55_spill] sm:$0xff] %v12476_v22  ;;  %v5229_v22 = vadd.f32 %v8655_v30, %v12232_v49  ;;  %v9242_v6 = vpop.f32.mrf.mxu0  ;;  %v8722_v49 = vadd.f32 %v12247_v52, %v12241_v12  ;;  %v8667_v52 = vadd.f32 %v12426_v8, %v12422_v56  ;;  %v8731_v8 = vadd.f32 %v12313_v63, %v12298_v25 }
 0x4d2   :  { %v12480_v26 = vpop.f32.mrf.mxu1  ;;  %v5253_v25 = vadd.f32 %v8673_v43, %v12286_v59  ;;  %v8679_v59 = vadd.f32 %v12450_v21, %v12446_v40  ;;  %v13224_v40 = vld [vmem:[#allocation49_spill] sm:$0xff]  ;;  %v13225_v21 = vld [vmem:[#allocation18_spill] sm:$0xff] }
 0x4d3   :  { %13220 = vst [vmem:[#allocation86_spill] sm:$0xff] %v12480_v26  ;;  %v5519_v36 = vpop.f32.mrf.mxu0  ;;  %v5245_v50 = vadd.f32 %v8667_v52, %v12268_v5 }
 0x4d4   :  { %v12482_v62 = vpop.f32.mrf.mxu1 }
 0x4d5   :  { %13221 = vst [vmem:[#allocation56_spill] sm:$0xff] %v12482_v62  ;;  %v9245_v29 = vpop.f32.mrf.mxu0  ;;  %v5342_v5 = vadd.f32 %v8731_v8, %v5245_v50  ;;  %v13231_v50 = vld [vmem:[#allocation53_spill] sm:$0xff]  ;;  %v13233_v8 = vld [vmem:[#allocation47_spill] sm:$0xff] }
 0x4d6   :  { %v12484_v58 = vpop.f32.mrf.mxu1 }
 0x4d7   :  { %13222 = vst [vmem:[#allocation25_spill] sm:$0xff] %v12484_v58  ;;  %v5326_v58 = vadd.f32 %v8719_v34, %v5229_v22  ;;  %v5532_v15 = vpop.f32.mrf.mxu0 }
 0x4d8   :  { %v8778_v32 = vpop.f32.mrf.mxu1 }
 0x4d9   :  { %v9246_v37 = vpop.f32.mrf.mxu0 }
 0x4da   :  { %v8779_v35 = vpop.f32.mrf.mxu1 }
 0x4db   :  { %v8780_v26 = vadd.f32 %v8779_v35, %v8778_v32 }
 0x4dc   :  { %v8781_v10 = vpop.f32.mrf.mxu1 }
 0x4dd   :  { %v5420_v20 = vadd.f32 %v8780_v26, %v5323_v44  ;;  %v5331_v26 = vadd.f32 %v8722_v49, %v5234_v23 }
 0x4de   :  { %v8782_v62 = vpop.f32.mrf.mxu1 }
 0x4df   :  { %v5517_v46 = vadd.f32 %v5516_v51, %v5420_v20  ;;  %v8783_v17 = vadd.f32 %v8782_v62, %v8781_v10  ;;  %v5250_v10 = vadd.f32 %v8670_v39, %v12280_v54  ;;  %v8737_v54 = vadd.f32 %v12373_v61, %v12358_v9  ;;  %v13232_v39 = vld [vmem:[#allocation84_spill] sm:$0xff] }
 0x4e0   :  { %v8784_v14 = vpop.f32.mrf.mxu1  ;;  %v8682_v61 = vadd.f32 %v12456_v57, %v12452_v24 }
 0x4e1   :  { %5579 = vst [vmem:[#allocation3] sm:$0xff] %v5517_v46  ;;  %v5423_v30 = vadd.f32 %v8783_v17, %v5326_v58  ;;  %v8676_v17 = vadd.f32 %v12444_v2, %v12440_v28  ;;  %v5347_v13 = vadd.f32 %v8734_v7, %v5250_v10  ;;  %v5350_v60 = vadd.f32 %v8737_v54, %v5253_v25  ;;  %v13235_v10 = vld [vmem:[#allocation85_spill] sm:$0xff]  ;;  %v13239_v25 = vld [vmem:[#allocation19_spill] sm:$0xff]  ;;  %v13242_v54 = vld [vmem:[#allocation16_spill] sm:$0xff] }
 0x4e2   :  { %v8785_v35 = vpop.f32.mrf.mxu1  ;;  %v8740_v2 = vadd.f32 %v12403_v3, %v12388_v42  ;;  %v13226_v42 = vld [vmem:[#allocation77_spill] sm:$0xff] }
 0x4e3   :  { %v5520_v18 = vadd.f32 %v5519_v36, %v5423_v30  ;;  %v8786_v22 = vadd.f32 %v8785_v35, %v8784_v14  ;;  %v5258_v55 = vadd.f32 %v8676_v17, %v12304_v27  ;;  %v5266_v3 = vadd.f32 %v8682_v61, %v13226_v42  ;;  %v13240_v17 = vld [vmem:[#allocation56_spill] sm:$0xff] }
 0x4e4   :  { %v8787_v44 = vpop.f32.mrf.mxu1 }
 0x4e5   :  { %5580 = vst [vmem:[#allocation3 + $0x8] sm:$0xff] %v5520_v18  ;;  %v5428_v62 = vadd.f32 %v8786_v22, %v5331_v26  ;;  %v13223_v22 = vld [vmem:[#allocation15_spill] sm:$0xff]  ;;  %v5355_v27 = vadd.f32 %v8740_v2, %v5258_v55 }
 0x4e6   :  { %v8788_v12 = vpop.f32.mrf.mxu1 }
 0x4e7   :  { %v5525_v46 = vadd.f32 %v9241_v1, %v5428_v62  ;;  %v8789_v47 = vadd.f32 %v8788_v12, %v8787_v44  ;;  %v5261_v44 = vadd.f32 %v8679_v59, %v13223_v22 }
 0x4e8   :  { %v8790_v53 = vpop.f32.mrf.mxu1  ;;  %v5614_v22 = vld [vmem:[#allocation3 + $0x2] ss:$64 sm:$0x1] }
 0x4e9   :  { %5581 = vst [vmem:[#allocation3 + $0x10] sm:$0xff] %v5525_v46  ;;  %v5431_v51 = vadd.f32 %v8789_v47, %v5334_v41  ;;  %v13227_v46 = vld [vmem:[#allocation52_spill] sm:$0xff]  ;;  %v13228_v41 = vld [vmem:[#allocation83_spill] sm:$0xff] }
 0x4ea   :  { %v8791_v0 = vpop.f32.mrf.mxu1  ;;  %v8685_v47 = vadd.f32 %v13228_v41, %v13227_v46  ;;  %v13250_v46 = vld [vmem:[#allocation21_spill] sm:$0xff]  ;;  %v13251_v41 = vld [vmem:[#allocation22_spill] sm:$0xff] }
 0x4eb   :  { %v5528_v58 = vadd.f32 %v9242_v6, %v5431_v51  ;;  %v8792_v32 = vadd.f32 %v8791_v0, %v8790_v53  ;;  %v5535_v6 = vpop.f32.mrf.mxu0  ;;  %v13229_v51 = vld [vmem:[#allocation79_spill] sm:$0xff] }
 0x4ec   :  { %v8793_v56 = vpop.f32.mrf.mxu1 }
 0x4ed   :  { %5582 = vst [vmem:[#allocation3 + $0x18] sm:$0xff] %v5528_v58  ;;  %v5436_v1 = vadd.f32 %v8792_v32, %v5339_v11  ;;  %v9249_v36 = vpop.f32.mrf.mxu0  ;;  %v8688_v58 = vadd.f32 %v13232_v39, %v13231_v50  ;;  %v12564_v50 = vld [vmem:[#allocation3 + $0x4] ss:$64 sm:$0x1] }
 0x4ee   :  { %v8794_v34 = vpop.f32.mrf.mxu1 }
 0x4ef   :  { %v5533_v20 = vadd.f32 %v5532_v15, %v5436_v1  ;;  %v8795_v23 = vadd.f32 %v8794_v34, %v8793_v56  ;;  %v5548_v9 = vpop.f32.mrf.mxu0  ;;  %v13230_v15 = vld [vmem:[#allocation80_spill] sm:$0xff]  ;;  %v5269_v1 = vadd.f32 %v8685_v47, %v13233_v8  ;;  %v13234_v34 = vld [vmem:[#allocation54_spill] sm:$0xff]  ;;  %v8758_v47 = vadd.f32 %v13251_v41, %v13250_v46 }
 0x4f0   :  { %v8796_v31 = vpop.f32.mrf.mxu1  ;;  %v8746_v11 = vadd.f32 %v13230_v15, %v13229_v51  ;;  %v5622_v8 = vld [vmem:[#allocation3 + $0xa] ss:$64 sm:$0x1]  ;;  %v12576_v46 = vld [vmem:[#allocation3 + $0x12] ss:$64 sm:$0x1] }
 0x4f1   :  { %5583 = vst [vmem:[#allocation3 + $0x20] sm:$0xff] %v5533_v20  ;;  %v5439_v33 = vadd.f32 %v8795_v23, %v5342_v5  ;;  %v12528_v52 = vpop.f32.mrf.mxu0  ;;  %v8691_v20 = vadd.f32 %v13235_v10, %v13234_v34  ;;  %v13236_v5 = vld [vmem:[#allocation55_spill] sm:$0xff]  ;;  %v13237_v23 = vld [vmem:[#allocation86_spill] sm:$0xff] }
 0x4f2   :  { %v8797_v63 = vpop.f32.mrf.mxu1 }
 0x4f3   :  { %v5536_v48 = vadd.f32 %v5535_v6, %v5439_v33  ;;  %v8798_v14 = vadd.f32 %v8797_v63, %v8796_v31  ;;  %v5551_v56 = vpop.f32.mrf.mxu0  ;;  %v8694_v31 = vadd.f32 %v13237_v23, %v13236_v5  ;;  %v13238_v6 = vld [vmem:[#allocation50_spill] sm:$0xff] }
 0x4f4   :  { %v8799_v49 = vpop.f32.mrf.mxu1  ;;  %v8749_v63 = vadd.f32 %v13239_v25, %v13238_v6  ;;  %v5664_v6 = vld [vmem:[#allocation3 + $0xf] ss:$64 sm:$0x1] }
 0x4f5   :  { %5584 = vst [vmem:[#allocation3 + $0x28] sm:$0xff] %v5536_v48  ;;  %v5444_v30 = vadd.f32 %v8798_v14, %v5347_v13  ;;  %v13241_v48 = vld [vmem:[#allocation25_spill] sm:$0xff]  ;;  %v12549_v59 = vpop.f32.mrf.mxu0 }
 0x4f6   :  { %v8800_v38 = vpop.f32.mrf.mxu1  ;;  %v8697_v13 = vadd.f32 %v13241_v48, %v13240_v17 }
 0x4f7   :  { %v5541_v35 = vadd.f32 %v9245_v29, %v5444_v30  ;;  %v8801_v19 = vadd.f32 %v8800_v38, %v8799_v49  ;;  %v8743_v29 = vadd.f32 %v13225_v21, %v13224_v40  ;;  %v5274_v49 = vadd.f32 %v8688_v58, %v13242_v54  ;;  %v13244_v38 = vld [vmem:[#allocation51_spill] sm:$0xff]  ;;  %v13249_v21 = vld [vmem:[#allocation17_spill] sm:$0xff]  ;;  %v5564_v39 = vpop.f32.mrf.mxu0 }
 0x4f8   :  { %v8802_v28 = vpop.f32.mrf.mxu1 }
 0x4f9   :  { %5585 = vst [vmem:[#allocation3 + $0x30] sm:$0xff] %v5541_v35  ;;  %v5447_v18 = vadd.f32 %v8801_v19, %v5350_v60  ;;  %v5358_v16 = vadd.f32 %v8743_v29, %v5261_v44  ;;  %v13243_v60 = vld [vmem:[#allocation81_spill] sm:$0xff]  ;;  %v5366_v35 = vadd.f32 %v8749_v63, %v5269_v1  ;;  %v5618_v44 = vld [vmem:[#allocation3 + $0x3] ss:$64 sm:$0x1]  ;;  %v5285_v29 = vadd.f32 %v8697_v13, %v13249_v21 }
 0x4fa   :  { %v8803_v26 = vpop.f32.mrf.mxu1  ;;  %v8752_v55 = vadd.f32 %v13244_v38, %v13243_v60  ;;  %v5626_v1 = vld [vmem:[#allocation3 + $0xb] ss:$64 sm:$0x1] }
 0x4fb   :  { %v5544_v4 = vadd.f32 %v9246_v37, %v5447_v18  ;;  %v8804_v62 = vadd.f32 %v8803_v26, %v8802_v28  ;;  %v5363_v37 = vadd.f32 %v8746_v11, %v5266_v3  ;;  %v13245_v28 = vld [vmem:[#allocation78_spill] sm:$0xff]  ;;  %v13246_v18 = vld [vmem:[#allocation48_spill] sm:$0xff] }
 0x4fc   :  { %v8805_v45 = vpop.f32.mrf.mxu1  ;;  %v5277_v2 = vadd.f32 %v8691_v20, %v13245_v28  ;;  %v12560_v11 = vld [vmem:[#allocation3] ss:$64 sm:$0x1]  ;;  %v5637_v20 = vld [vmem:[#allocation3 + $0x5] ss:$64 sm:$0x1] }
 0x4fd   :  { %5586 = vst [vmem:[#allocation3 + $0x38] sm:$0xff] %v5544_v4  ;;  %v5452_v12 = vadd.f32 %v8804_v62, %v5355_v27  ;;  %v5652_v4 = vld [vmem:[#allocation3 + $0x6] ss:$64 sm:$0x1]  ;;  %v13247_v62 = vld [vmem:[#allocation20_spill] sm:$0xff] }
 0x4fe   :  { %v8806_v57 = vpop.f32.mrf.mxu1  ;;  %v5656_v27 = vld [vmem:[#allocation3 + $0x7] ss:$64 sm:$0x1]  ;;  %v5607_v28 = vld [vmem:[#allocation3 + $0x9] ss:$64 sm:$0x1] }
 0x4ff   :  { %v5549_v24 = vadd.f32 %v5548_v9, %v5452_v12  ;;  %v8807_v53 = vadd.f32 %v8806_v57, %v8805_v45  ;;  %v5282_v9 = vadd.f32 %v8694_v31, %v13246_v18  ;;  %v13248_v45 = vld [vmem:[#allocation82_spill] sm:$0xff]  ;;  %v13252_v57 = vld [vmem:[#allocation23_spill] sm:$0xff]  ;;  %v5641_v18 = vld [vmem:[#allocation3 + $0xc] ss:$64 sm:$0x1] }
 0x500   :  { %v8808_v0 = vpop.f32.mrf.mxu1  ;;  %v8755_v40 = vadd.f32 %v13248_v45, %v13247_v62 }
 0x501   :  { %5587 = vst [vmem:[#allocation3 + $0x40] sm:$0xff] %v5549_v24  ;;  %v5455_v32 = vadd.f32 %v8807_v53, %v5358_v16  ;;  %v13253_v24 = vld [vmem:[#allocation24_spill] sm:$0xff]  ;;  %v5371_v53 = vadd.f32 %v8752_v55, %v5274_v49 }
 0x502   :  { %v8809_v43 = vpop.f32.mrf.mxu1  ;;  %v8761_v16 = vadd.f32 %v13253_v24, %v13252_v57  ;;  %v5374_v31 = vadd.f32 %v8755_v40, %v5277_v2 }
 0x503   :  { %v5552_v7 = vadd.f32 %v5551_v56, %v5455_v32  ;;  %v8810_v33 = vadd.f32 %v8809_v43, %v8808_v0  ;;  %v12562_v0 = vld [vmem:[#allocation3 + $0x1] ss:$64 sm:$0x1] }
 0x504   :  { %v8811_v14 = vpop.f32.mrf.mxu1  ;;  %v12569_v48 = vadd.f32 %v8761_v16, %v5285_v29 }
 0x505   :  { %5588 = vst [vmem:[#allocation3 + $0x48] sm:$0xff] %v5552_v7  ;;  %v5460_v30 = vadd.f32 %v8810_v33, %v5363_v37  ;;  %v12567_v7 = vadd.f32 %v8758_v47, %v5282_v9  ;;  %v5660_v33 = vld [vmem:[#allocation3 + $0xe] ss:$64 sm:$0x1] }
 0x506   :  { %v8812_v19 = vpop.f32.mrf.mxu1  ;;  %v5645_v9 = vld [vmem:[#allocation3 + $0xd] ss:$64 sm:$0x1] }
 0x507   :  { %v5557_v61 = vadd.f32 %v9249_v36, %v5460_v30  ;;  %v8813_v26 = vadd.f32 %v8812_v19, %v8811_v14  ;;  %v5603_v30 = vld [vmem:[#allocation3 + $0x8] ss:$64 sm:$0x1] }
 0x508   :  { %v8814_v12 = vpop.f32.mrf.mxu1  ;;  %v5615_v42 = vld [vmem:[#allocation3 + $0x2] ss:$64 sm:$0x2]  ;;  %v5619_v3 = vld [vmem:[#allocation3 + $0x3] ss:$64 sm:$0x2] }
 0x509   :  { %5589 = vst [vmem:[#allocation3 + $0x50] sm:$0xff] %v5557_v61  ;;  %v5463_v36 = vadd.f32 %v8813_v26, %v5366_v35  ;;  %v5653_v51 = vld [vmem:[#allocation3 + $0x6] ss:$64 sm:$0x2]  ;;  %v5616_v32 = vor.u32 %v5615_v42, %v5614_v22  ;;  %v5620_v56 = vor.u32 %v5619_v3, %v5618_v44  ;;  %v12574_v61 = vpop.f32.mrf.mxu0 }
 0x50a   :  { %v5657_v15 = vld [vmem:[#allocation3 + $0x7] ss:$64 sm:$0x2]  ;;  %v8815_v58 = vpop.f32.mrf.mxu1  ;;  %v5654_v37 = vor.u32 %v5653_v51, %v5652_v4  ;;  %v5596_v34 = vld [vmem:[#allocation3] ss:$64 sm:$0x2] }
 0x50b   :  { %v5658_v43 = vor.u32 %v5657_v15, %v5656_v27  ;;  %v5600_v10 = vld [vmem:[#allocation3 + $0x1] ss:$64 sm:$0x2]  ;;  %v5560_v5 = vadd.f32 %v12528_v52, %v5463_v36  ;;  %v8816_v23 = vadd.f32 %v8815_v58, %v8814_v12  ;;  %v5634_v25 = vld [vmem:[#allocation3 + $0x4] ss:$64 sm:$0x2]  ;;  %v5597_v54 = vor.u32 %v5596_v34, %v12560_v11 }
 0x50c   :  { %v5638_v63 = vld [vmem:[#allocation3 + $0x5] ss:$64 sm:$0x2]  ;;  %v8817_v17 = vpop.f32.mrf.mxu1  ;;  %v5623_v13 = vld [vmem:[#allocation3 + $0xa] ss:$64 sm:$0x2]  ;;  %v5601_v49 = vor.u32 %v5600_v10, %v12562_v0  ;;  %v5635_v52 = vor.u32 %v5634_v25, %v12564_v50  ;;  %v5629_v22 = vmax.f32 %v5616_v32, %v5620_v56  ;;  %v5567_v32 = vpop.f32.mrf.mxu0 }
 0x50d   :  { %v5627_v14 = vld [vmem:[#allocation3 + $0xb] ss:$64 sm:$0x2]  ;;  %5590 = vst [vmem:[#allocation3 + $0x58] sm:$0xff] %v5560_v5  ;;  %v5468_v60 = vadd.f32 %v8816_v23, %v5371_v53  ;;  %v5624_v38 = vor.u32 %v5623_v13, %v5622_v8  ;;  %v5639_v2 = vor.u32 %v5638_v63, %v5637_v20  ;;  %v5667_v27 = vmax.f32 %v5654_v37, %v5658_v43 }
 0x50e   :  { %v5628_v55 = vor.u32 %v5627_v14, %v5626_v1  ;;  %v5661_v35 = vld [vmem:[#allocation3 + $0xe] ss:$64 sm:$0x2]  ;;  %v5665_v19 = vld [vmem:[#allocation3 + $0xf] ss:$64 sm:$0x2]  ;;  %v8818_v26 = vpop.f32.mrf.mxu1  ;;  %v5610_v0 = vmax.f32 %v5597_v54, %v5601_v49 }
 0x50f   :  { %v5662_v44 = vor.u32 %v5661_v35, %v5660_v33  ;;  %v5666_v4 = vor.u32 %v5665_v19, %v5664_v6  ;;  %v5604_v62 = vld [vmem:[#allocation3 + $0x8] ss:$64 sm:$0x2]  ;;  %v5608_v45 = vld [vmem:[#allocation3 + $0x9] ss:$64 sm:$0x2]  ;;  %v5565_v40 = vadd.f32 %v5564_v39, %v5468_v60  ;;  %v8819_v21 = vadd.f32 %v8818_v26, %v8817_v17 }
 0x510   :  { %v5630_v29 = vmax.f32 %v5624_v38, %v5628_v55  ;;  %v5605_v12 = vor.u32 %v5604_v62, %v5603_v30  ;;  %v5642_v42 = vld [vmem:[#allocation3 + $0xc] ss:$64 sm:$0x2]  ;;  %v5646_v3 = vld [vmem:[#allocation3 + $0xd] ss:$64 sm:$0x2]  ;;  %v8820_v41 = vpop.f32.mrf.mxu1  ;;  %v5609_v57 = vor.u32 %v5608_v45, %v5607_v28  ;;  %v5648_v50 = vmax.f32 %v5635_v52, %v5639_v2 }
 0x511   :  { %v5668_v47 = vmax.f32 %v5662_v44, %v5666_v4  ;;  %v5643_v24 = vor.u32 %v5642_v42, %v5641_v18  ;;  %v5647_v16 = vor.u32 %v5646_v3, %v5645_v9  ;;  %v5691_v36 = vld [vmem:[#allocation3 + $0x12] ss:$64 sm:$0x2]  ;;  %v5694_v53 = vld [vmem:[#allocation3 + $0x13] ss:$64 sm:$0x1]  ;;  %v5471_v15 = vadd.f32 %v8819_v21, %v5374_v31 }
 0x512   :  { %v5695_v51 = vld [vmem:[#allocation3 + $0x13] ss:$64 sm:$0x2]  ;;  %5591 = vst [vmem:[#allocation3 + $0x60] sm:$0xff] %v5565_v40  ;;  %v5631_v11 = vmax.f32 %v5629_v22, %v5630_v29  ;;  %v8821_v56 = vpop.f32.mrf.mxu1  ;;  %v5611_v1 = vmax.f32 %v5605_v12, %v5609_v57  ;;  %v5692_v43 = vor.u32 %v5691_v36, %v12576_v46 }
 0x513   :  { %v5728_v39 = vld [vmem:[#allocation3 + $0x16] ss:$64 sm:$0x1]  ;;  %v5669_v8 = vmax.f32 %v5667_v27, %v5668_v47  ;;  %v5649_v37 = vmax.f32 %v5643_v24, %v5647_v16  ;;  %v5698_v34 = vld [vmem:[#allocation3 + $0x1a] ss:$64 sm:$0x1]  ;;  %v5568_v5 = vadd.f32 %v5567_v32, %v5471_v15  ;;  %v8822_v23 = vadd.f32 %v8821_v56, %v8820_v41 }
 0x514   :  { %v5729_v58 = vld [vmem:[#allocation3 + $0x16] ss:$64 sm:$0x2]  ;;  %v5732_v10 = vld [vmem:[#allocation3 + $0x17] ss:$64 sm:$0x1]  ;;  %v5696_v6 = vor.u32 %v5695_v51, %v5694_v53  ;;  %v8823_v25 = vpop.f32.mrf.mxu1  ;;  %v5612_v17 = vmax.f32 %v5610_v0, %v5611_v1 }
 0x515   :  { %v5733_v20 = vld [vmem:[#allocation3 + $0x17] ss:$64 sm:$0x2]  ;;  %v5899_v33 = vmax.f32 %v5631_v11, 0.0  ;;  %v5901_v63 = vmax.f32 %v5669_v8, 0.0  ;;  %v5650_v13 = vmax.f32 %v5648_v50, %v5649_v37  ;;  %v5730_v54 = vor.u32 %v5729_v58, %v5728_v39  ;;  %5592 = vst [vmem:[#allocation3 + $0x68] sm:$0xff] %v5568_v5 }
 0x516   :  { %v5702_v31 = vld [vmem:[#allocation3 + $0x1b] ss:$64 sm:$0x1]  ;;  %v5699_v14 = vld [vmem:[#allocation3 + $0x1a] ss:$64 sm:$0x2]  ;;  %v5476_v52 = vadd.f32 %v8822_v23, %v12567_v7  ;;  %v5734_v35 = vor.u32 %v5733_v20, %v5732_v10  ;;  %v8824_v28 = vpop.f32.mrf.mxu1  ;;  %v5705_v12 = vmax.f32 %v5692_v43, %v5696_v6 }
 0x517   :  { %v5736_v49 = vld [vmem:[#allocation3 + $0x1e] ss:$64 sm:$0x1]  ;;  %v5740_v30 = vld [vmem:[#allocation3 + $0x1f] ss:$64 sm:$0x1]  ;;  %v5915_v60 = vpack.c.bf16 %v5899_v33, %v5899_v33  ;;  %v5700_v38 = vor.u32 %v5699_v14, %v5698_v34  ;;  %v5917_v2 = vpack.c.bf16 %v5901_v63, %v5901_v63  ;;  %v8825_v4 = vadd.f32 %v8824_v28, %v8823_v25 }
 0x518   :  { %v5703_v55 = vld [vmem:[#allocation3 + $0x1b] ss:$64 sm:$0x2]  ;;  %v5737_v19 = vld [vmem:[#allocation3 + $0x1e] ss:$64 sm:$0x2]  ;;  %v5573_v44 = vadd.f32 %v12549_v59, %v5476_v52  ;;  %v5743_v46 = vmax.f32 %v5730_v54, %v5734_v35 }
 0x519   :  { %v5898_v18 = vmax.f32 %v5612_v17, 0.0  ;;  %v5900_v9 = vmax.f32 %v5650_v13, 0.0  ;;  %v5704_v26 = vor.u32 %v5703_v55, %v5702_v31  ;;  %v5741_v22 = vld [vmem:[#allocation3 + $0x1f] ss:$64 sm:$0x2]  ;;  %6993 = vmatprep.mubr.bf16.mxu1 %v5915_v60  ;;  %v5738_v62 = vor.u32 %v5737_v19, %v5736_v49  ;;  %7033 = vmatprep.mubr.bf16.mxu0 %v5917_v2  ;;  %v9612_v29 = vld [vmem:[%s12915_s5 + $0x170] sm:$0xff]  }
 0x51a   :  { %v9610_v27 = vld [vmem:[%s12915_s5 + $0x138] sm:$0xff]   ;;  %v5742_v45 = vor.u32 %v5741_v22, %v5740_v30  ;;  %v9613_v59 = vld [vmem:[%s12915_s5 + $0x1f0] sm:$0xff]   ;;  %5593 = vst [vmem:[#allocation3 + $0x70] sm:$0xff] %v5573_v44  ;;  %v5479_v3 = vadd.f32 %v8825_v4, %v12569_v48  ;;  %v9616_v48 = vld [vmem:[%s12915_s5 + $0x168] sm:$0xff]  }
 0x51b   :  { %v9611_v7 = vld [vmem:[%s12915_s5 + $0x1b8] sm:$0xff]   ;;  %v5914_v40 = vpack.c.bf16 %v5898_v18, %v5898_v18  ;;  %v5916_v21 = vpack.c.bf16 %v5900_v9, %v5900_v9  ;;  %v5706_v42 = vmax.f32 %v5700_v38, %v5704_v26  ;;  %v9614_v24 = vld [vmem:[%s12915_s5 + $0x130] sm:$0xff]   ;;  %v9618_v0 = vld [vmem:[%s12915_s5 + $0x128] sm:$0xff]  }
 0x51c   :  { %v5744_v41 = vmax.f32 %v5738_v62, %v5742_v45  ;;  %v5576_v57 = vadd.f32 %v12574_v61, %v5479_v3  ;;  %v9615_v16 = vld [vmem:[%s12915_s5 + $0x1b0] sm:$0xff]   ;;  %v9617_v61 = vld [vmem:[%s12915_s5 + $0x1e8] sm:$0xff]   ;;  %v9620_v39 = vld [vmem:[%s12915_s5 + $0x160] sm:$0xff]  }
 0x51d   :  { %6994 = vmatmul.mubr.bf16.vlgmr.msra.gmra.mxu1 %v5914_v40  ;;  %7034 = vmatmul.mubr.bf16.vlgmr.msra.gmra.mxu0 %v5916_v21  ;;  %v5707_v47 = vmax.f32 %v5705_v12, %v5706_v42  ;;  %v9619_v50 = vld [vmem:[%s12915_s5 + $0x1a8] sm:$0xff]   ;;  %v9621_v58 = vld [vmem:[%s12915_s5 + $0x1e0] sm:$0xff]   ;;  %v9624_v8 = vld [vmem:[%s12915_s5 + $0x158] sm:$0xff]  }
 0x51e   :  { %8887 = vmatpush3.bf16.msra.mxu1 %v9610_v27  ;;  %8909 = vmatpush3.bf16.msra.mxu0 %v9611_v7  ;;  %v5745_v36 = vmax.f32 %v5743_v46, %v5744_v41  ;;  %5594 = vst [vmem:[#allocation3 + $0x78] sm:$0xff] %v5576_v57  ;;  %v9622_v32 = vld [vmem:[%s12915_s5 + $0x120] sm:$0xff]   ;;  %v9625_v1 = vld [vmem:[%s12915_s5 + $0x1d8] sm:$0xff]   ;;  %v12631_v37 = vld [vmem:[#allocation3 + $0x10] ss:$64 sm:$0x2] }
 0x51f   :  { %8888 = vmatprep.subr.bf16.mxu1 %v9612_v29  ;;  %8910 = vmatprep.subr.bf16.mxu0 %v9613_v59  ;;  %v5903_v53 = vmax.f32 %v5707_v47, 0.0  ;;  %v9623_v56 = vld [vmem:[%s12915_s5 + $0x1a0] sm:$0xff]   ;;  %v12633_v43 = vld [vmem:[#allocation3 + $0x11] ss:$64 sm:$0x2]  ;;  %v9626_v23 = vld [vmem:[%s12915_s5 + $0x118] sm:$0xff]  }
 0x520   :  { %v5905_v51 = vmax.f32 %v5745_v36, 0.0  ;;  %v5679_v34 = vld [vmem:[#allocation3 + $0x18] ss:$64 sm:$0x1]  ;;  %v9628_v14 = vld [vmem:[%s12915_s5 + $0x150] sm:$0xff]  }
 0x521   :  { %v5919_v15 = vpack.c.bf16 %v5903_v53, %v5903_v53  ;;  %v5680_v10 = vld [vmem:[#allocation3 + $0x18] ss:$64 sm:$0x2]  ;;  %v5683_v20 = vld [vmem:[#allocation3 + $0x19] ss:$64 sm:$0x1] }
 0x522   :  { %8889 = vmatpush3.bf16.msra.mxu1 %v9614_v24  ;;  %8911 = vmatpush3.bf16.msra.mxu0 %v9615_v16  ;;  %v5921_v11 = vpack.c.bf16 %v5905_v51, %v5905_v51  ;;  %v5684_v5 = vld [vmem:[#allocation3 + $0x19] ss:$64 sm:$0x2]  ;;  %v5710_v6 = vld [vmem:[#allocation3 + $0x14] ss:$64 sm:$0x2]  ;;  %v5681_v35 = vor.u32 %v5680_v10, %v5679_v34 }
 0x523   :  { %8890 = vmatprep.subr.bf16.mxu1 %v9616_v48  ;;  %7073 = vmatprep.mubr.bf16.mxu1 %v5919_v15  ;;  %v9627_v33 = vld [vmem:[%s12915_s5 + $0x198] sm:$0xff]   ;;  %v5714_v31 = vld [vmem:[#allocation3 + $0x15] ss:$64 sm:$0x2]  ;;  %v5685_v19 = vor.u32 %v5684_v5, %v5683_v20  ;;  %v9632_v51 = vld [vmem:[%s12915_s5 + $0x148] sm:$0xff]  }
 0x524   :  { %8912 = vmatprep.subr.bf16.mxu0 %v9617_v61  ;;  %7113 = vmatprep.mubr.bf16.mxu0 %v5921_v11  ;;  %v5717_v25 = vld [vmem:[#allocation3 + $0x1c] ss:$64 sm:$0x1]  ;;  %v5721_v17 = vld [vmem:[#allocation3 + $0x1d] ss:$64 sm:$0x1] }
 0x525   :  { %v5718_v63 = vld [vmem:[#allocation3 + $0x1c] ss:$64 sm:$0x2]  ;;  %v5722_v13 = vld [vmem:[#allocation3 + $0x1d] ss:$64 sm:$0x2]  ;;  %v5687_v16 = vmax.f32 %v5681_v35, %v5685_v19 }
 0x526   :  { %8891 = vmatpush3.bf16.msra.mxu1 %v9618_v0  ;;  %8913 = vmatpush3.bf16.msra.mxu0 %v9619_v50  ;;  %v9629_v54 = vld [vmem:[%s12915_s5 + $0x1d0] sm:$0xff]   ;;  %v5774_v52 = vld [vmem:[#allocation3 + $0x2a] ss:$64 sm:$0x1]  ;;  %v5719_v44 = vor.u32 %v5718_v63, %v5717_v25  ;;  %v5723_v4 = vor.u32 %v5722_v13, %v5721_v17  ;;  %v9637_v34 = vld [vmem:[%s12915_s5 + $0x1c0] sm:$0xff]  }
 0x527   :  { %8892 = vmatprep.subr.bf16.mxu1 %v9620_v39  ;;  %8914 = vmatprep.subr.bf16.mxu0 %v9621_v58  ;;  %v5671_v49 = vld [vmem:[#allocation3 + $0x10] ss:$64 sm:$0x1]  ;;  %v5675_v30 = vld [vmem:[#allocation3 + $0x11] ss:$64 sm:$0x1] }
 0x528   :  { %v5775_v60 = vld [vmem:[#allocation3 + $0x2a] ss:$64 sm:$0x2]  ;;  %v5778_v38 = vld [vmem:[#allocation3 + $0x2b] ss:$64 sm:$0x1]  ;;  %v5673_v40 = vor.u32 %v12631_v37, %v5671_v49  ;;  %v5677_v21 = vor.u32 %v12633_v43, %v5675_v30  ;;  %v5725_v11 = vmax.f32 %v5719_v44, %v5723_v4 }
 0x529   :  { %v5779_v55 = vld [vmem:[#allocation3 + $0x2b] ss:$64 sm:$0x2]  ;;  %v5709_v28 = vld [vmem:[#allocation3 + $0x14] ss:$64 sm:$0x1]  ;;  %v5776_v29 = vor.u32 %v5775_v60, %v5774_v52 }
 0x52a   :  { %8893 = vmatpush3.bf16.msra.mxu1 %v9622_v32  ;;  %8915 = vmatpush3.bf16.msra.mxu0 %v9623_v56  ;;  %v5713_v2 = vld [vmem:[#allocation3 + $0x15] ss:$64 sm:$0x1]  ;;  %v5812_v18 = vld [vmem:[#allocation3 + $0x2e] ss:$64 sm:$0x1]  ;;  %v5780_v59 = vor.u32 %v5779_v55, %v5778_v38  ;;  %v5711_v3 = vor.u32 %v5710_v6, %v5709_v28  ;;  %v5686_v58 = vmax.f32 %v5673_v40, %v5677_v21 }
 0x52b   :  { %v5813_v9 = vld [vmem:[#allocation3 + $0x2e] ss:$64 sm:$0x2]  ;;  %v5816_v26 = vld [vmem:[#allocation3 + $0x2f] ss:$64 sm:$0x1]  ;;  %8894 = vmatprep.subr.bf16.mxu1 %v9624_v8  ;;  %8916 = vmatprep.subr.bf16.mxu0 %v9625_v1  ;;  %v5715_v46 = vor.u32 %v5714_v31, %v5713_v2 }
 0x52c   :  { %v5817_v22 = vld [vmem:[#allocation3 + $0x2f] ss:$64 sm:$0x2]  ;;  %v5767_v27 = vld [vmem:[#allocation3 + $0x22] ss:$64 sm:$0x2]  ;;  %v5814_v57 = vor.u32 %v5813_v9, %v5812_v18  ;;  %v5782_v39 = vmax.f32 %v5776_v29, %v5780_v59  ;;  %v5688_v10 = vmax.f32 %v5686_v58, %v5687_v16 }
 0x52d   :  { %v5771_v7 = vld [vmem:[#allocation3 + $0x23] ss:$64 sm:$0x2]  ;;  %v9630_v62 = vld [vmem:[%s12915_s5 + $0x110] sm:$0xff]   ;;  %v5818_v24 = vor.u32 %v5817_v22, %v5816_v26  ;;  %v9633_v15 = vld [vmem:[%s12915_s5 + $0x1c8] sm:$0xff]   ;;  %v5724_v32 = vmax.f32 %v5711_v3, %v5715_v46 }
 0x52e   :  { %v9631_v45 = vld [vmem:[%s12915_s5 + $0x190] sm:$0xff]   ;;  %v5805_v12 = vld [vmem:[#allocation3 + $0x26] ss:$64 sm:$0x2]  ;;  %8895 = vmatpush3.bf16.msra.mxu1 %v9626_v23  ;;  %8917 = vmatpush3.bf16.msra.mxu0 %v9627_v33  ;;  %v9634_v8 = vld [vmem:[%s12915_s5 + $0x108] sm:$0xff]   ;;  %v5902_v25 = vmax.f32 %v5688_v10, 0.0 }
 0x52f   :  { %v5809_v42 = vld [vmem:[#allocation3 + $0x27] ss:$64 sm:$0x2]  ;;  %v5766_v41 = vld [vmem:[#allocation3 + $0x22] ss:$64 sm:$0x1]  ;;  %8896 = vmatprep.subr.bf16.mxu1 %v9628_v14  ;;  %8918 = vmatprep.subr.bf16.mxu0 %v9629_v54  ;;  %v5820_v56 = vmax.f32 %v5814_v57, %v5818_v24  ;;  %v5726_v20 = vmax.f32 %v5724_v32, %v5725_v11 }
 0x530   :  { %v5770_v47 = vld [vmem:[#allocation3 + $0x23] ss:$64 sm:$0x1]  ;;  %v5768_v36 = vor.u32 %v5767_v27, %v5766_v41  ;;  %v5804_v53 = vld [vmem:[#allocation3 + $0x26] ss:$64 sm:$0x1]  ;;  %v5918_v30 = vpack.c.bf16 %v5902_v25, %v5902_v25 }
 0x531   :  { %v5772_v48 = vor.u32 %v5771_v7, %v5770_v47  ;;  %v5808_v61 = vld [vmem:[#allocation3 + $0x27] ss:$64 sm:$0x1]  ;;  %v5806_v0 = vor.u32 %v5805_v12, %v5804_v53  ;;  %v9635_v1 = vld [vmem:[%s12915_s5 + $0x188] sm:$0xff]   ;;  %v5904_v63 = vmax.f32 %v5726_v20, 0.0  ;;  %v9640_v17 = vld [vmem:[%s12915_s5 + $0x278] sm:$0xff]  }
 0x532   :  { %v5810_v50 = vor.u32 %v5809_v42, %v5808_v61  ;;  %8897 = vmatpush3.bf16.msra.mxu1 %v9630_v62  ;;  %8919 = vmatpush3.bf16.msra.mxu0 %v9631_v45  ;;  %v9636_v43 = vld [vmem:[%s12915_s5 + $0x140] sm:$0xff]   ;;  %v9641_v13 = vld [vmem:[%s12915_s5 + $0x2f8] sm:$0xff]   ;;  %v9644_v55 = vld [vmem:[%s12915_s5 + $0x270] sm:$0xff]  }
 0x533   :  { %v5781_v37 = vmax.f32 %v5768_v36, %v5772_v48  ;;  %8898 = vmatprep.subr.bf16.mxu1 %v9632_v51  ;;  %8920 = vmatprep.subr.bf16.mxu0 %v9633_v15  ;;  %v9638_v6 = vld [vmem:[%s12915_s5 + $0x100] sm:$0xff]   ;;  %v9642_v49 = vld [vmem:[%s12915_s5 + $0x238] sm:$0xff]   ;;  %v5920_v52 = vpack.c.bf16 %v5904_v63, %v5904_v63  ;;  %v9645_v35 = vld [vmem:[%s12915_s5 + $0x2f0] sm:$0xff]  }
 0x534   :  { %v5819_v5 = vmax.f32 %v5806_v0, %v5810_v50  ;;  %v9639_v31 = vld [vmem:[%s12915_s5 + $0x180] sm:$0xff]   ;;  %v9643_v60 = vld [vmem:[%s12915_s5 + $0x2b8] sm:$0xff]   ;;  %v9646_v28 = vld [vmem:[%s12915_s5 + $0x230] sm:$0xff]  }
 0x535   :  { %v5783_v23 = vmax.f32 %v5781_v37, %v5782_v39  ;;  %v9647_v2 = vld [vmem:[%s12915_s5 + $0x2b0] sm:$0xff]   ;;  %v9648_v18 = vld [vmem:[%s12915_s5 + $0x268] sm:$0xff]   ;;  %v9652_v44 = vld [vmem:[%s12915_s5 + $0x260] sm:$0xff]  }
 0x536   :  { %v5821_v33 = vmax.f32 %v5819_v5, %v5820_v56  ;;  %8899 = vmatpush3.bf16.msra.mxu1 %v9634_v8  ;;  %8921 = vmatpush3.bf16.msra.mxu0 %v9635_v1  ;;  %v9649_v9 = vld [vmem:[%s12915_s5 + $0x2e8] sm:$0xff]   ;;  %v9653_v4 = vld [vmem:[%s12915_s5 + $0x2e0] sm:$0xff]   ;;  %v9656_v62 = vld [vmem:[%s12915_s5 + $0x258] sm:$0xff]  }
 0x537   :  { %8900 = vmatprep.subr.bf16.mxu1 %v9636_v43  ;;  %8922 = vmatprep.subr.bf16.mxu0 %v9637_v34  ;;  %v5907_v14 = vmax.f32 %v5783_v23, 0.0  ;;  %v9650_v26 = vld [vmem:[%s12915_s5 + $0x228] sm:$0xff]   ;;  %v9654_v27 = vld [vmem:[%s12915_s5 + $0x220] sm:$0xff]   ;;  %v9657_v45 = vld [vmem:[%s12915_s5 + $0x2d8] sm:$0xff]  }
 0x538   :  { %v5909_v54 = vmax.f32 %v5821_v33, 0.0  ;;  %v9651_v22 = vld [vmem:[%s12915_s5 + $0x2a8] sm:$0xff]   ;;  %v9655_v7 = vld [vmem:[%s12915_s5 + $0x2a0] sm:$0xff]   ;;  %v9658_v40 = vld [vmem:[%s12915_s5 + $0x218] sm:$0xff]  }
 0x539   :  { %v5923_v38 = vpack.c.bf16 %v5907_v14, %v5907_v14  ;;  %v12736_v21 = vld [vmem:[#allocation3 + $0x20] ss:$64 sm:$0x2]  ;;  %v12738_v29 = vld [vmem:[#allocation3 + $0x21] ss:$64 sm:$0x2] }
 0x53a   :  { %8901 = vmatpush3.bf16.msra.mxu1 %v9638_v6  ;;  %8923 = vmatpush3.bf16.msra.mxu0 %v9639_v31  ;;  %v5925_v19 = vpack.c.bf16 %v5909_v54, %v5909_v54  ;;  %v5755_v59 = vld [vmem:[#allocation3 + $0x28] ss:$64 sm:$0x1]  ;;  %v5759_v42 = vld [vmem:[#allocation3 + $0x29] ss:$64 sm:$0x1] }
 0x53b   :  { %8930 = vmatprep.subr.bf16.mxu1 %v9640_v17  ;;  %8952 = vmatprep.subr.bf16.mxu0 %v9641_v13  ;;  %v5756_v12 = vld [vmem:[#allocation3 + $0x28] ss:$64 sm:$0x2]  ;;  %v5760_v3 = vld [vmem:[#allocation3 + $0x29] ss:$64 sm:$0x2] }
 0x53c   :  { %v9659_v46 = vld [vmem:[%s12915_s5 + $0x298] sm:$0xff]   ;;  %v9660_v41 = vld [vmem:[%s12915_s5 + $0x250] sm:$0xff]   ;;  %v5786_v47 = vld [vmem:[#allocation3 + $0x24] ss:$64 sm:$0x2]  ;;  %v5757_v39 = vor.u32 %v5756_v12, %v5755_v59  ;;  %v5761_v58 = vor.u32 %v5760_v3, %v5759_v42 }
 0x53d   :  { %7074 = vmatmul.mubr.bf16.vlgmr.msra.gmra.mxu1 %v5918_v30  ;;  %7114 = vmatmul.mubr.bf16.vlgmr.msra.gmra.mxu0 %v5920_v52  ;;  %v5790_v57 = vld [vmem:[#allocation3 + $0x25] ss:$64 sm:$0x2]  ;;  %v5793_v24 = vld [vmem:[#allocation3 + $0x2c] ss:$64 sm:$0x1] }
 0x53e   :  { %8931 = vmatpush3.bf16.msra.mxu1 %v9642_v49  ;;  %7153 = vmatprep.mubr.bf16.mxu1 %v5923_v38  ;;  %v5794_v16 = vld [vmem:[#allocation3 + $0x2c] ss:$64 sm:$0x2]  ;;  %v5797_v36 = vld [vmem:[#allocation3 + $0x2d] ss:$64 sm:$0x1] }
 0x53f   :  { %8953 = vmatpush3.bf16.msra.mxu0 %v9643_v60  ;;  %7193 = vmatprep.mubr.bf16.mxu0 %v5925_v19  ;;  %v5798_v48 = vld [vmem:[#allocation3 + $0x2d] ss:$64 sm:$0x2]  ;;  %v9661_v53 = vld [vmem:[%s12915_s5 + $0x2d0] sm:$0xff]   ;;  %v5795_v10 = vor.u32 %v5794_v16, %v5793_v24  ;;  %v9669_v59 = vld [vmem:[%s12915_s5 + $0x2c0] sm:$0xff]  }
 0x540   :  { %8932 = vmatprep.subr.bf16.mxu1 %v9644_v55  ;;  %8954 = vmatprep.subr.bf16.mxu0 %v9645_v35  ;;  %v5747_v61 = vld [vmem:[#allocation3 + $0x20] ss:$64 sm:$0x1]  ;;  %v5751_v51 = vld [vmem:[#allocation3 + $0x21] ss:$64 sm:$0x1]  ;;  %v5799_v20 = vor.u32 %v5798_v48, %v5797_v36  ;;  %v5763_v55 = vmax.f32 %v5757_v39, %v5761_v58 }
 0x541   :  { %v5850_v15 = vld [vmem:[#allocation3 + $0x3a] ss:$64 sm:$0x1]  ;;  %v5854_v0 = vld [vmem:[#allocation3 + $0x3b] ss:$64 sm:$0x1]  ;;  %v5749_v31 = vor.u32 %v12736_v21, %v5747_v61  ;;  %v5753_v25 = vor.u32 %v12738_v29, %v5751_v51 }
 0x542   :  { %8933 = vmatpush3.bf16.msra.mxu1 %v9646_v28  ;;  %v5851_v11 = vld [vmem:[#allocation3 + $0x3a] ss:$64 sm:$0x2]  ;;  %v5855_v50 = vld [vmem:[#allocation3 + $0x3b] ss:$64 sm:$0x2] }
 0x543   :  { %8955 = vmatpush3.bf16.msra.mxu0 %v9647_v2  ;;  %8934 = vmatprep.subr.bf16.mxu1 %v9648_v18  ;;  %v5785_v32 = vld [vmem:[#allocation3 + $0x24] ss:$64 sm:$0x1]  ;;  %v5789_v56 = vld [vmem:[#allocation3 + $0x25] ss:$64 sm:$0x1]  ;;  %v5852_v63 = vor.u32 %v5851_v11, %v5850_v15  ;;  %v5856_v17 = vor.u32 %v5855_v50, %v5854_v0 }
 0x544   :  { %8956 = vmatprep.subr.bf16.mxu0 %v9649_v9  ;;  %v5888_v8 = vld [vmem:[#allocation3 + $0x3e] ss:$64 sm:$0x1]  ;;  %v5892_v37 = vld [vmem:[#allocation3 + $0x3f] ss:$64 sm:$0x1]  ;;  %v5787_v54 = vor.u32 %v5786_v47, %v5785_v32  ;;  %v5791_v49 = vor.u32 %v5790_v57, %v5789_v56  ;;  %v5801_v9 = vmax.f32 %v5795_v10, %v5799_v20 }
 0x545   :  { %v5889_v1 = vld [vmem:[#allocation3 + $0x3e] ss:$64 sm:$0x2]  ;;  %v5893_v43 = vld [vmem:[#allocation3 + $0x3f] ss:$64 sm:$0x2] }
 0x546   :  { %8935 = vmatpush3.bf16.msra.mxu1 %v9650_v26  ;;  %v9662_v34 = vld [vmem:[%s12915_s5 + $0x210] sm:$0xff]   ;;  %v9664_v6 = vld [vmem:[%s12915_s5 + $0x248] sm:$0xff]   ;;  %v5890_v60 = vor.u32 %v5889_v1, %v5888_v8  ;;  %v5894_v38 = vor.u32 %v5893_v43, %v5892_v37  ;;  %v9671_v47 = vld [vmem:[%s12915_s5 + $0x280] sm:$0xff]  }
 0x547   :  { %8957 = vmatpush3.bf16.msra.mxu0 %v9651_v22  ;;  %8936 = vmatprep.subr.bf16.mxu1 %v9652_v44  ;;  %v5843_v5 = vld [vmem:[#allocation3 + $0x32] ss:$64 sm:$0x2]  ;;  %v5847_v23 = vld [vmem:[#allocation3 + $0x33] ss:$64 sm:$0x2]  ;;  %v5762_v44 = vmax.f32 %v5749_v31, %v5753_v25 }
 0x548   :  { %8958 = vmatprep.subr.bf16.mxu0 %v9653_v4  ;;  %v9663_v33 = vld [vmem:[%s12915_s5 + $0x290] sm:$0xff]   ;;  %v9665_v18 = vld [vmem:[%s12915_s5 + $0x2c8] sm:$0xff]   ;;  %v5858_v4 = vmax.f32 %v5852_v63, %v5856_v17  ;;  %v9672_v24 = vld [vmem:[%s12915_s5 + $0x378] sm:$0xff]  }
 0x549   :  { %v5881_v13 = vld [vmem:[#allocation3 + $0x36] ss:$64 sm:$0x2]  ;;  %v5885_v14 = vld [vmem:[#allocation3 + $0x37] ss:$64 sm:$0x2]  ;;  %v5764_v21 = vmax.f32 %v5762_v44, %v5763_v55 }
 0x54a   :  { %8937 = vmatpush3.bf16.msra.mxu1 %v9654_v27  ;;  %v5842_v30 = vld [vmem:[#allocation3 + $0x32] ss:$64 sm:$0x1]  ;;  %v5846_v52 = vld [vmem:[#allocation3 + $0x33] ss:$64 sm:$0x1] }
 0x54b   :  { %8959 = vmatpush3.bf16.msra.mxu0 %v9655_v7  ;;  %8938 = vmatprep.subr.bf16.mxu1 %v9656_v62  ;;  %v5844_v35 = vor.u32 %v5843_v5, %v5842_v30  ;;  %v5848_v19 = vor.u32 %v5847_v23, %v5846_v52  ;;  %v5880_v28 = vld [vmem:[#allocation3 + $0x36] ss:$64 sm:$0x1]  ;;  %v5884_v2 = vld [vmem:[#allocation3 + $0x37] ss:$64 sm:$0x1]  ;;  %v5800_v7 = vmax.f32 %v5787_v54, %v5791_v49 }
 0x54c   :  { %8960 = vmatprep.subr.bf16.mxu0 %v9657_v45  ;;  %v5882_v26 = vor.u32 %v5881_v13, %v5880_v28  ;;  %v5886_v22 = vor.u32 %v5885_v14, %v5884_v2  ;;  %v9666_v27 = vld [vmem:[%s12915_s5 + $0x208] sm:$0xff]   ;;  %v5896_v62 = vmax.f32 %v5890_v60, %v5894_v38  ;;  %v5906_v57 = vmax.f32 %v5764_v21, 0.0  ;;  %v9673_v36 = vld [vmem:[%s12915_s5 + $0x3f8] sm:$0xff]   ;;  %v9676_v0 = vld [vmem:[%s12915_s5 + $0x370] sm:$0xff]  }
 0x54d   :  { %v9667_v45 = vld [vmem:[%s12915_s5 + $0x288] sm:$0xff]   ;;  %v5857_v29 = vmax.f32 %v5844_v35, %v5848_v19  ;;  %v5802_v12 = vmax.f32 %v5800_v7, %v5801_v9  ;;  %v9675_v15 = vld [vmem:[%s12915_s5 + $0x3b8] sm:$0xff]   ;;  %v9677_v39 = vld [vmem:[%s12915_s5 + $0x3f0] sm:$0xff]  }
 0x54e   :  { %8939 = vmatpush3.bf16.msra.mxu1 %v9658_v40  ;;  %v9668_v40 = vld [vmem:[%s12915_s5 + $0x240] sm:$0xff]   ;;  %v5895_v42 = vmax.f32 %v5882_v26, %v5886_v22  ;;  %v5922_v51 = vpack.c.bf16 %v5906_v57, %v5906_v57  ;;  %v9678_v32 = vld [vmem:[%s12915_s5 + $0x330] sm:$0xff]   ;;  %v9680_v8 = vld [vmem:[%s12915_s5 + $0x368] sm:$0xff]  }
 0x54f   :  { %8961 = vmatpush3.bf16.msra.mxu0 %v9659_v46  ;;  %8940 = vmatprep.subr.bf16.mxu1 %v9660_v41  ;;  %v5859_v3 = vmax.f32 %v5857_v29, %v5858_v4  ;;  %v9670_v46 = vld [vmem:[%s12915_s5 + $0x200] sm:$0xff]   ;;  %v5908_v16 = vmax.f32 %v5802_v12, 0.0  ;;  %v9679_v56 = vld [vmem:[%s12915_s5 + $0x3b0] sm:$0xff]   ;;  %v9681_v1 = vld [vmem:[%s12915_s5 + $0x3e8] sm:$0xff]  }
 0x550   :  { %8962 = vmatprep.subr.bf16.mxu0 %v9661_v53  ;;  %v5897_v41 = vmax.f32 %v5895_v42, %v5896_v62  ;;  %v9674_v53 = vld [vmem:[%s12915_s5 + $0x338] sm:$0xff]   ;;  %v9682_v37 = vld [vmem:[%s12915_s5 + $0x328] sm:$0xff]   ;;  %v9685_v10 = vld [vmem:[%s12915_s5 + $0x3e0] sm:$0xff]  }
 0x551   :  { %v5911_v48 = vmax.f32 %v5859_v3, 0.0  ;;  %v5924_v11 = vpack.c.bf16 %v5908_v16, %v5908_v16  ;;  %v9683_v43 = vld [vmem:[%s12915_s5 + $0x3a8] sm:$0xff]   ;;  %v9686_v20 = vld [vmem:[%s12915_s5 + $0x320] sm:$0xff]   ;;  %v9688_v23 = vld [vmem:[%s12915_s5 + $0x358] sm:$0xff]  }
 0x552   :  { %8941 = vmatpush3.bf16.msra.mxu1 %v9662_v34  ;;  %v5913_v61 = vmax.f32 %v5897_v41, 0.0  ;;  %v9684_v34 = vld [vmem:[%s12915_s5 + $0x360] sm:$0xff]   ;;  %v9690_v31 = vld [vmem:[%s12915_s5 + $0x318] sm:$0xff]   ;;  %v5824_v25 = vld [vmem:[#allocation3 + $0x30] ss:$64 sm:$0x2] }
 0x553   :  { %8963 = vmatpush3.bf16.msra.mxu0 %v9663_v33  ;;  %8942 = vmatprep.subr.bf16.mxu1 %v9664_v6  ;;  %v5927_v50 = vpack.c.bf16 %v5911_v48, %v5911_v48  ;;  %v9687_v5 = vld [vmem:[%s12915_s5 + $0x3a0] sm:$0xff]   ;;  %v9689_v33 = vld [vmem:[%s12915_s5 + $0x3d8] sm:$0xff]   ;;  %v5828_v63 = vld [vmem:[#allocation3 + $0x31] ss:$64 sm:$0x2] }
 0x554   :  { %8964 = vmatprep.subr.bf16.mxu0 %v9665_v18  ;;  %v5929_v58 = vpack.c.bf16 %v5913_v61, %v5913_v61  ;;  %v5832_v6 = vld [vmem:[#allocation3 + $0x38] ss:$64 sm:$0x2]  ;;  %v5835_v13 = vld [vmem:[#allocation3 + $0x39] ss:$64 sm:$0x1] }
 0x555   :  { %v5831_v17 = vld [vmem:[#allocation3 + $0x38] ss:$64 sm:$0x1]  ;;  %v5836_v14 = vld [vmem:[#allocation3 + $0x39] ss:$64 sm:$0x2] }
 0x556   :  { %8943 = vmatpush3.bf16.msra.mxu1 %v9666_v27  ;;  %v9691_v54 = vld [vmem:[%s12915_s5 + $0x398] sm:$0xff]   ;;  %v9692_v49 = vld [vmem:[%s12915_s5 + $0x350] sm:$0xff]   ;;  %v5833_v35 = vor.u32 %v5832_v6, %v5831_v17  ;;  %v5837_v19 = vor.u32 %v5836_v14, %v5835_v13  ;;  %v9696_v29 = vld [vmem:[%s12915_s5 + $0x348] sm:$0xff]  }
 0x557   :  { %8965 = vmatpush3.bf16.msra.mxu0 %v9667_v45  ;;  %8944 = vmatprep.subr.bf16.mxu1 %v9668_v40  ;;  %v5870_v30 = vld [vmem:[#allocation3 + $0x3c] ss:$64 sm:$0x2]  ;;  %v5874_v52 = vld [vmem:[#allocation3 + $0x3d] ss:$64 sm:$0x2] }
 0x558   :  { %8966 = vmatprep.subr.bf16.mxu0 %v9669_v59  ;;  %v9693_v60 = vld [vmem:[%s12915_s5 + $0x3d0] sm:$0xff]   ;;  %v5869_v28 = vld [vmem:[#allocation3 + $0x3c] ss:$64 sm:$0x1]  ;;  %v5839_v59 = vmax.f32 %v5833_v35, %v5837_v19  ;;  %v9697_v12 = vld [vmem:[%s12915_s5 + $0x3c8] sm:$0xff]  }
 0x559   :  { %v5862_v38 = vld [vmem:[#allocation3 + $0x34] ss:$64 sm:$0x2]  ;;  %v5866_v55 = vld [vmem:[#allocation3 + $0x35] ss:$64 sm:$0x2]  ;;  %v5871_v26 = vor.u32 %v5870_v30, %v5869_v28 }
 0x55a   :  { %8945 = vmatpush3.bf16.msra.mxu1 %v9670_v46  ;;  %v5873_v2 = vld [vmem:[#allocation3 + $0x3d] ss:$64 sm:$0x1]  ;;  %v5823_v18 = vld [vmem:[#allocation3 + $0x30] ss:$64 sm:$0x1] }
 0x55b   :  { %8967 = vmatpush3.bf16.msra.mxu0 %v9671_v47  ;;  %8974 = vmatprep.subr.bf16.mxu1 %v9672_v24  ;;  %v5827_v9 = vld [vmem:[#allocation3 + $0x31] ss:$64 sm:$0x1]  ;;  %v5875_v22 = vor.u32 %v5874_v52, %v5873_v2  ;;  %v5825_v44 = vor.u32 %v5824_v25, %v5823_v18  ;;  %v5861_v27 = vld [vmem:[#allocation3 + $0x34] ss:$64 sm:$0x1] }
 0x55c   :  { %8996 = vmatprep.subr.bf16.mxu0 %v9673_v36  ;;  %v5829_v4 = vor.u32 %v5828_v63, %v5827_v9  ;;  %v5865_v7 = vld [vmem:[#allocation3 + $0x35] ss:$64 sm:$0x1]  ;;  %v5863_v45 = vor.u32 %v5862_v38, %v5861_v27  ;;  %v9698_v46 = vld [vmem:[%s12915_s5 + $0x308] sm:$0xff]   ;;  %v9700_v57 = vld [vmem:[%s12915_s5 + $0x340] sm:$0xff]  }
 0x55d   :  { %7154 = vmatmul.mubr.bf16.vlgmr.msra.gmra.mxu1 %v5922_v51  ;;  %v9694_v62 = vld [vmem:[%s12915_s5 + $0x310] sm:$0xff]   ;;  %v5867_v40 = vor.u32 %v5866_v55, %v5865_v7  ;;  %v5877_v42 = vmax.f32 %v5871_v26, %v5875_v22  ;;  %v9699_v47 = vld [vmem:[%s12915_s5 + $0x388] sm:$0xff]   ;;  %v9701_v16 = vld [vmem:[%s12915_s5 + $0x3c0] sm:$0xff]  }
 0x55e   :  { %7194 = vmatmul.mubr.bf16.vlgmr.msra.gmra.mxu0 %v5924_v11  ;;  %8975 = vmatpush3.bf16.msra.mxu1 %v9674_v53  ;;  %v9695_v21 = vld [vmem:[%s12915_s5 + $0x390] sm:$0xff]   ;;  %v5838_v3 = vmax.f32 %v5825_v44, %v5829_v4  ;;  %v9702_v48 = vld [vmem:[%s12915_s5 + $0x300] sm:$0xff]  }
 0x55f   :  { %7233 = vmatprep.mubr.bf16.mxu1 %v5927_v50  ;;  %8997 = vmatpush3.bf16.msra.mxu0 %v9675_v15  ;;  %v5876_v41 = vmax.f32 %v5863_v45, %v5867_v40  ;;  %v9703_v53 = vld [vmem:[%s12915_s5 + $0x380] sm:$0xff]   ;;  %v9745_v50 = vmov 0.0  }
 0x560   :  { %7273 = vmatprep.mubr.bf16.mxu0 %v5929_v58  ;;  %8976 = vmatprep.subr.bf16.mxu1 %v9676_v0  ;;  %v5840_v24 = vmax.f32 %v5838_v3, %v5839_v59  ;;  %v9704_v0 = vld [vmem:[%s12917_s7 + $0x38] sm:$0xff]   ;;  %v9706_v58 = vld [vmem:[%s12917_s7 + $0x28] sm:$0xff]  }
 0x561   :  { %8998 = vmatprep.subr.bf16.mxu0 %v9677_v39  ;;  %v5878_v36 = vmax.f32 %v5876_v41, %v5877_v42  ;;  %v9705_v39 = vld [vmem:[%s12917_s7 + $0x30] sm:$0xff]  }
 0x562   :  { %8977 = vmatpush3.bf16.msra.mxu1 %v9678_v32  ;;  %v5910_v61 = vmax.f32 %v5840_v24, 0.0  ;;  %v9707_v32 = vld [vmem:[%s12917_s7 + $0x20] sm:$0xff]  }
 0x563   :  { %8999 = vmatpush3.bf16.msra.mxu0 %v9679_v56  ;;  %8978 = vmatprep.subr.bf16.mxu1 %v9680_v8  ;;  %v5912_v51 = vmax.f32 %v5878_v36, 0.0  ;;  %v9708_v56 = vld [vmem:[%s12917_s7 + $0x18] sm:$0xff]   ;;  %v9709_v8 = vld [vmem:[%s12917_s7 + $0x10] sm:$0xff]  }
 0x564   :  { %9000 = vmatprep.subr.bf16.mxu0 %v9681_v1  ;;  %v5926_v15 = vpack.c.bf16 %v5910_v61, %v5910_v61  ;;  %v9710_v1 = vld [vmem:[%s12917_s7 + $0x8] sm:$0xff]   ;;  %v7394_v61 = vlaneseq }
 0x565   :  { %v5928_v11 = vpack.c.bf16 %v5912_v51, %v5912_v51 }
 0x566   :  { %8979 = vmatpush3.bf16.msra.mxu1 %v9682_v37  ;;  %v9711_v37 = vld [vmem:[%s12917_s7] sm:$0xff]   ;;  %v7395_v51 = vand.u32 127, %v7394_v61 }
 0x567   :  { %9001 = vmatpush3.bf16.msra.mxu0 %v9683_v43  ;;  %8980 = vmatprep.subr.bf16.mxu1 %v9684_v34 }
 0x568   :  { %9002 = vmatprep.subr.bf16.mxu0 %v9685_v10  ;;  %v7822_v10 = vld [vmem:[%s12916_s6] ss:$0 sm:$0xff]  ;;  %vm7396_vm2 = vcmp.lt.s32.totalorder %v7395_v51, 10 }
 0x56a   :  { %8981 = vmatpush3.bf16.msra.mxu1 %v9686_v20 }
 0x56b   :  { %9003 = vmatpush3.bf16.msra.mxu0 %v9687_v5  ;;  %8982 = vmatprep.subr.bf16.mxu1 %v9688_v23 }
 0x56c   :  { %9004 = vmatprep.subr.bf16.mxu0 %v9689_v33 }
 0x56e   :  { %8983 = vmatpush3.bf16.msra.mxu1 %v9690_v31 }
 0x56f   :  { %9005 = vmatpush3.bf16.msra.mxu0 %v9691_v54  ;;  %8984 = vmatprep.subr.bf16.mxu1 %v9692_v49 }
 0x570   :  { %9006 = vmatprep.subr.bf16.mxu0 %v9693_v60 }
 0x572   :  { %8985 = vmatpush3.bf16.msra.mxu1 %v9694_v62 }
 0x573   :  { %9007 = vmatpush3.bf16.msra.mxu0 %v9695_v21  ;;  %8986 = vmatprep.subr.bf16.mxu1 %v9696_v29 }
 0x574   :  { %9008 = vmatprep.subr.bf16.mxu0 %v9697_v12 }
 0x576   :  { %8987 = vmatpush3.bf16.msra.mxu1 %v9698_v46 }
 0x577   :  { %9009 = vmatpush3.bf16.msra.mxu0 %v9699_v47  ;;  %8988 = vmatprep.subr.bf16.mxu1 %v9700_v57 }
 0x578   :  { %9010 = vmatprep.subr.bf16.mxu0 %v9701_v16 }
 0x57a   :  { %8989 = vmatpush3.bf16.msra.mxu1 %v9702_v48 }
 0x57b   :  { %9011 = vmatpush3.bf16.msra.mxu0 %v9703_v53  ;;  %9255 = vmatprep.subr.bf16.mxu1 %v9745_v50 }
 0x57d   :  { %7234 = vmatmul.mubr.bf16.vlgmr.msra.gmra.mxu1 %v5926_v15  ;;  %v7951_v15 = vld [vmem:[%s12918_s8] ss:$0 sm:$0xff]  ;;  %s9747_s8 = smov [#allocation4]  }
 0x57e   :  { %7274 = vmatmul.mubr.bf16.vlgmr.msra.gmra.mxu0 %v5928_v11  ;;  %9256 = vmatpush3.bf16.msra.mxu1 %v9704_v0  ;;  %s7418_s18 = sshll.u32 %s9747_s8, 4  ;;  %s7419_s18 = int_to_ptr.vmem [resolvable:$true] %s7418_s18 }
 0x57f   :  { %9257 = vmatprep.subr.bf16.mxu1 %v9745_v50  ;;  %9271 = vmatprep.mubr.msk.bf16.mxu1 %vm9746_vm1, %v9745_v50  ;;  %s9723_s0 = scalar_lea.vmem %s7419_s18, 32  ;;  %p9728_p1 = scmp.lt.s32.totalorder %s7419_s18, %s7419_s18 }
 0x580   :  { %p9724_p0 = scmp.ne.s32.totalorder %s7419_s18, %s9723_s0  ;;  %p9729_p2 = scmp.lt.s32.totalorder %s9723_s0, %s9723_s0 }
 0x582   :  { %9258 = vmatpush3.bf16.msra.mxu1 %v9705_v39  ;;  %p9730_p3 = por %p9729_p2, %p9728_p1 }
 0x583   :  { %9259 = vmatprep.subr.bf16.mxu1 %v9745_v50 }
 0x584   :  { %p9731_p4 = pnand %p9730_p3, %p9724_p0 }
 0x586   :  { %9260 = vmatpush3.bf16.msra.mxu1 %v9706_v58 }
 0x587   :  { %9261 = vmatprep.subr.bf16.mxu1 %v9745_v50 }
 0x58a   :  { %9262 = vmatpush3.bf16.msra.mxu1 %v9707_v32 }
 0x58b   :  { %9263 = vmatprep.subr.bf16.mxu1 %v9745_v50 }
 0x58e   :  { %9264 = vmatpush3.bf16.msra.mxu1 %v9708_v56 }
 0x58f   :  { %9265 = vmatprep.subr.bf16.mxu1 %v9745_v50 }
 0x592   :  { %9266 = vmatpush3.bf16.msra.mxu1 %v9709_v8 }
 0x593   :  { %9267 = vmatprep.subr.bf16.mxu1 %v9745_v50 }
 0x596   :  { %9268 = vmatpush3.bf16.msra.mxu1 %v9710_v1 }
 0x597   :  { %9269 = vmatprep.subr.bf16.mxu1 %v9745_v50 }
 0x59a   :  { %9270 = vmatpush3.bf16.msra.mxu1 %v9711_v37 }
 0x5dd   :  { %v8858_v43 = vpop.f32.mrf.mxu1  ;;  %v8880_v34 = vpop.f32.mrf.mxu0 }
 0x5df   :  { %v8859_v20 = vpop.f32.mrf.mxu1  ;;  %v8881_v5 = vpop.f32.mrf.mxu0 }
 0x5e0   :  { %v8860_v23 = vadd.f32 %v8859_v20, %v8858_v43  ;;  %v8882_v33 = vadd.f32 %v8881_v5, %v8880_v34 }
 0x5e1   :  { %v8861_v6 = vpop.f32.mrf.mxu1  ;;  %v8883_v31 = vpop.f32.mrf.mxu0 }
 0x5e2   :  { %v6996_v25 = vadd.f32 %v8860_v23, %v7822_v10 }
 0x5e3   :  { %v8862_v63 = vpop.f32.mrf.mxu1  ;;  %v8884_v17 = vpop.f32.mrf.mxu0 }
 0x5e4   :  { %v7036_v13 = vadd.f32 %v8882_v33, %v6996_v25 }
 0x5fd   :  { %v8902_v14 = vpop.f32.mrf.mxu1  ;;  %v8924_v54 = vpop.f32.mrf.mxu0 }
 0x5ff   :  { %v8903_v49 = vpop.f32.mrf.mxu1  ;;  %v8925_v30 = vpop.f32.mrf.mxu0 }
 0x600   :  { %v8904_v44 = vadd.f32 %v8903_v49, %v8902_v14  ;;  %v8926_v27 = vadd.f32 %v8925_v30, %v8924_v54 }
 0x601   :  { %v8905_v52 = vpop.f32.mrf.mxu1  ;;  %v8927_v60 = vpop.f32.mrf.mxu0 }
 0x602   :  { %v7076_v4 = vadd.f32 %v8904_v44, %v7036_v13 }
 0x603   :  { %v8906_v38 = vpop.f32.mrf.mxu1  ;;  %v8928_v55 = vpop.f32.mrf.mxu0 }
 0x604   :  { %v7116_v62 = vadd.f32 %v8926_v27, %v7076_v4 }
 0x61d   :  { %v8946_v35 = vpop.f32.mrf.mxu1 }
 0x61e   :  { %v8968_v19 = vpop.f32.mrf.mxu0 }
 0x61f   :  { %v8947_v28 = vpop.f32.mrf.mxu1 }
 0x620   :  { %v8969_v2 = vpop.f32.mrf.mxu0  ;;  %v8948_v7 = vadd.f32 %v8947_v28, %v8946_v35 }
 0x621   :  { %v8949_v18 = vpop.f32.mrf.mxu1  ;;  %v8970_v21 = vadd.f32 %v8969_v2, %v8968_v19 }
 0x622   :  { %v8971_v9 = vpop.f32.mrf.mxu0  ;;  %v7156_v45 = vadd.f32 %v8948_v7, %v7116_v62 }
 0x623   :  { %v8950_v26 = vpop.f32.mrf.mxu1 }
 0x624   :  { %v8972_v22 = vpop.f32.mrf.mxu0  ;;  %v7196_v12 = vadd.f32 %v8970_v21, %v7156_v45 }
 0x63d   :  { %v8990_v40 = vpop.f32.mrf.mxu1 }
 0x63e   :  { %v9012_v29 = vpop.f32.mrf.mxu0 }
 0x63f   :  { %v8991_v59 = vpop.f32.mrf.mxu1 }
 0x640   :  { %v8992_v42 = vadd.f32 %v8991_v59, %v8990_v40  ;;  %v9013_v3 = vpop.f32.mrf.mxu0 }
 0x641   :  { %v8993_v46 = vpop.f32.mrf.mxu1  ;;  %v9014_v47 = vadd.f32 %v9013_v3, %v9012_v29 }
 0x642   :  { %v7236_v41 = vadd.f32 %v8992_v42, %v7196_v12  ;;  %v9015_v57 = vpop.f32.mrf.mxu0 }
 0x643   :  { %v8994_v24 = vpop.f32.mrf.mxu1 }
 0x644   :  { %v7276_v16 = vadd.f32 %v9014_v47, %v7236_v41  ;;  %v9016_v36 = vpop.f32.mrf.mxu0 }
 0x646   :  { %v7281_v48 = vmax.f32 %v7276_v16, 0.0 }
 0x648   :  { %v7282_v53 = vpack.c.bf16 %v7281_v48, %v7281_v48 }
 0x64a   :  { %9272 = vmatmul.mubr.bf16.vlgmr.msra.gmra.mxu1 %v7282_v53 }
 0x70a   :  { %v7388_v11 = vpop.f32.mrf.mxu1 }
 0x70b   :  { %v7389_v0 = vadd.f32 %v7951_v15, %v7388_v11 }
 0x70c   :  { %v9273_v50 = vpop.f32.mrf.mxu1 }
 0x70d   :  { %v7397_v39 = vsel %vm7396_vm2, %v7389_v0, -1e+30 }
 0x70e   :  { %v7391_v58 = vpop.f32.mrf.mxu1  ;;  %v7399_v32 = vsel %vm7398_vm3, %v7397_v39, -inf }
 0x70f   :  { %7400 = vmax.xlane.f32.xlu0 %v7399_v32 }
 0x710   :  { %v9274_v56 = vpop.f32.mrf.mxu1 }
 0x798   :  { %v7401_v8 = vpop.xlane.xlu0 %7400 }
 0x799   :  { %v7402_v1 = vsub.f32 %v7397_v39, %v7401_v8 }
 0x79b   :  { %v7403_v37 = vmul.f32 1.442695, %v7402_v1 }
 0x79d   :  { %9712 = vpow2.f32 %v7403_v37 }
 0x7aa   :  { %v9713_v43 = vpop.eup %9712 }
 0x7ab   :  { %v7405_v34 = vsel %vm7398_vm3, %v9713_v43, 0.0 }
 0x7ac   :  { %7406 = vadd.xlane.f32.xlu0 %v7405_v34 }
 0x835   :  { %v7407_v10 = vpop.xlane.xlu0 %7406 }
 0x836   :  { %9714 = vlog2.f32 %v7407_v10 }
 0x843   :  { %v9715_v20 = vpop.eup %9714 }
 0x844   :  { %v7409_v5 = vmul.f32 0.6931472, %v9715_v20 }
 0x846   :  { %v7410_v23 = vsub.f32 %v7402_v1, %v7409_v5 }
 0x848   :  { %7411 = vst [vmem:[#allocation4] sm:$0x3] %v7410_v23 }
 0x849   :  { %9734 = shalt.err (!%p9731_p4)
}
 0x84a   :  { %7421 = dma.vmem_to_hbm [thread:$0]  %s7419_s18, 32, %s12919_s9, [#allocation5]  }
 0x84b   :  { %9743 = dma.done.wait [#allocation5], 32  }
 0x84c   :  { %9744 = vsyncadd [#allocation5], 4294967264 }
 0x84d   :  { %7425 = vsyncpa [#allocation5], 1 }

</bundles_post_ra>
